<compile_context>
chip_gen: v7x
topology: tpu7x:2x2x1
jax: 0.10.0
libtpu: 0.0.40
codegen_flags: <defaults>
</compile_context>

<pallas_src>
import math

import jax
import jax.numpy as jnp
from jax.experimental import pallas as pl
from jax.experimental.pallas import tpu as pltpu

INPUT_SIZE = 784
LW = 1024           # slab lane width

# Row layout of the packed int8 weight slab.  All block starts are multiples
# of 32 so int8 (32,128) sublane tiling is never split at a block boundary.
L1_W = 0            # w1 : rows [   0,  784)  lanes [0,1024)
L2_W = 800          # w2 : rows [ 800, 1312)  w2[:512]->lanes[0,512), w2[512:]->[512,1024)
L3_W = 1312         # w3 : rows [1312, 1440)  4 K-blocks of (128,256) at lanes i*256
L4_W = 1440         # w4 : rows [1440, 1568)  2 K-blocks, col 0 of each 128-lane window
ROWS = 1568

# Row layout of the f32 aux array (biases + per-output-channel scales).
B1_ROW, S1_ROW = 0, 1
B2_ROW, S2_ROW = 2, 3
B3_ROW, S3_ROW = 4, 5
B4_ROW, S4_ROW = 6, 7
AUX_ROWS = 8


def _round_up(n, m):
    return ((n + m - 1) // m) * m


def _leaky_relu(x, slope=0.2):
    return jnp.where(x > 0, x, slope * x)


def discriminator_kernel(x_ref, w_ref, aux_ref, o_ref):
    f32, bf16 = jnp.float32, jnp.bfloat16

    xb = x_ref[...].astype(bf16)                               # (TB, 784)

    # ---- layer 1: 784 -> 1024 ----------------------------------------------
    z = jnp.dot(xb, w_ref[L1_W:L1_W + INPUT_SIZE, :].astype(bf16),
                preferred_element_type=f32)
    z = z * aux_ref[S1_ROW:S1_ROW + 1, :] + aux_ref[B1_ROW:B1_ROW + 1, :]
    hb = _leaky_relu(z).astype(bf16)                           # (TB, 1024)

    # ---- layer 2: 1024 -> 512 (K split into 2 x 512) ------------------------
    z = (jnp.dot(hb[:, 0:512],
                 w_ref[L2_W:L2_W + 512, 0:512].astype(bf16),
                 preferred_element_type=f32)
         + jnp.dot(hb[:, 512:1024],
                   w_ref[L2_W:L2_W + 512, 512:1024].astype(bf16),
                   preferred_element_type=f32))
    z = z * aux_ref[S2_ROW:S2_ROW + 1, 0:512] + aux_ref[B2_ROW:B2_ROW + 1, 0:512]
    hb = _leaky_relu(z).astype(bf16)                           # (TB, 512)

    # ---- layer 3: 512 -> 256 (K split into 4 x 128) --------------------------
    z = jnp.dot(hb[:, 0:128], w_ref[L3_W:L3_W + 128, 0:256].astype(bf16),
                preferred_element_type=f32)
    for i in range(1, 4):
        z = z + jnp.dot(hb[:, i * 128:(i + 1) * 128],
                        w_ref[L3_W:L3_W + 128, i * 256:(i + 1) * 256].astype(bf16),
                        preferred_element_type=f32)
    z = z * aux_ref[S3_ROW:S3_ROW + 1, 0:256] + aux_ref[B3_ROW:B3_ROW + 1, 0:256]
    hb = _leaky_relu(z).astype(bf16)                           # (TB, 256)

    # ---- layer 4: 256 -> 1, padded to 128 output lanes (K split into 2) -----
    z = (jnp.dot(hb[:, 0:128], w_ref[L4_W:L4_W + 128, 0:128].astype(bf16),
                 preferred_element_type=f32)
         + jnp.dot(hb[:, 128:256], w_ref[L4_W:L4_W + 128, 128:256].astype(bf16),
                   preferred_element_type=f32))
    z = z * aux_ref[S4_ROW:S4_ROW + 1, 0:128] + aux_ref[B4_ROW:B4_ROW + 1, 0:128]
    # Lane-dense (TB, 128) bf16 store; only column 0 is meaningful.
    o_ref[...] = jax.nn.sigmoid(z).astype(o_ref.dtype)


# ------------------------------ param packing --------------------------------

def init_params(key, input_size=INPUT_SIZE, dtype=jnp.float32):
    sizes = [(input_size, 1024), (1024, 512), (512, 256), (256, 1)]
    params = []
    for fan_in, fan_out in sizes:
        kw, kb, key = jax.random.split(key, 3)
        # PyTorch nn.Linear default init: U(-1/sqrt(fan_in), 1/sqrt(fan_in))
        bound = 1.0 / math.sqrt(fan_in)
        w = jax.random.uniform(kw, (fan_in, fan_out), dtype, -bound, bound)
        b = jax.random.uniform(kb, (fan_out,), dtype, -bound, bound)
        params.append((w, b))
    return params


def _quantize_per_channel(w):
    """Symmetric per-output-channel int8 quantization."""
    amax = jnp.max(jnp.abs(w), axis=0)                         # (out,)
    scale = jnp.maximum(amax, 1e-12) / 127.0
    q = jnp.clip(jnp.round(w / scale), -127, 127).astype(jnp.int8)
    return q, scale.astype(jnp.float32)


def pack_params(params):
    """Pack int8 weights into one (ROWS, LW) slab + f32 biases/scales aux."""
    (w1, b1), (w2, b2), (w3, b3), (w4, b4) = params
    q1, s1 = _quantize_per_channel(w1)
    q2, s2 = _quantize_per_channel(w2)
    q3, s3 = _quantize_per_channel(w3)
    q4, s4 = _quantize_per_channel(w4)

    slab = jnp.zeros((ROWS, LW), jnp.int8)
    slab = slab.at[L1_W:L1_W + INPUT_SIZE, :].set(q1)
    slab = slab.at[L2_W:L2_W + 512, 0:512].set(q2[0:512, :])
    slab = slab.at[L2_W:L2_W + 512, 512:1024].set(q2[512:1024, :])
    for i in range(4):
        slab = slab.at[L3_W:L3_W + 128, i * 256:(i + 1) * 256].set(
            q3[i * 128:(i + 1) * 128, :])
    slab = slab.at[L4_W:L4_W + 128, 0].set(q4[0:128, 0])
    slab = slab.at[L4_W:L4_W + 128, 128].set(q4[128:256, 0])

    f32 = jnp.float32
    aux = jnp.zeros((AUX_ROWS, LW), f32)
    aux = aux.at[B1_ROW, :].set(b1.astype(f32))
    aux = aux.at[S1_ROW, :].set(s1)
    aux = aux.at[B2_ROW, 0:512].set(b2.astype(f32))
    aux = aux.at[S2_ROW, 0:512].set(s2)
    aux = aux.at[B3_ROW, 0:256].set(b3.astype(f32))
    aux = aux.at[S3_ROW, 0:256].set(s3)
    aux = aux.at[B4_ROW, 0:128].set(jnp.broadcast_to(b4.astype(f32), (128,)))
    aux = aux.at[S4_ROW, 0:128].set(jnp.broadcast_to(s4, (128,)))
    return slab, aux


# -------------------------------- wrapper ------------------------------------

def discriminator_forward(x, slab, aux, *, max_block_batch=512):
    B, F = x.shape
    assert F == INPUT_SIZE, F

    # Batch tile: at least 2 grid steps for B >= 32 (v7x has 2 TensorCores),
    # multiple of 16 so the bf16 output tiling stays aligned, capped at 512.
    if B >= 16:
        TB = min(max_block_batch, _round_up(-(-B // 2), 16))
    else:
        TB = _round_up(B, 8)
    Bp = _round_up(B, TB)

    x = x.astype(jnp.float32)
    if Bp != B:
        x = jnp.pad(x, ((0, Bp - B), (0, 0)))

    out = pl.pallas_call(
        discriminator_kernel,
        out_shape=jax.ShapeDtypeStruct((Bp, 128), jnp.bfloat16),
        grid_spec=pltpu.PrefetchScalarGridSpec(
            num_scalar_prefetch=0,
            grid=(Bp // TB,),
            in_specs=[
                # batch tile, last dim == full array dim (784) -> legal block
                pl.BlockSpec((TB, INPUT_SIZE), lambda i: (i, 0)),
                # constant weight slab / aux: VMEM-resident, single-buffered
                pl.BlockSpec((ROWS, LW), lambda i: (0, 0),
                             pipeline_mode=pl.Buffered(1)),
                pl.BlockSpec((AUX_ROWS, LW), lambda i: (0, 0),
                             pipeline_mode=pl.Buffered(1)),
            ],
            out_specs=pl.BlockSpec((TB, 128), lambda i: (i, 0)),
        ),
        compiler_params=pltpu.CompilerParams(
            dimension_semantics=("parallel",),
            vmem_limit_bytes=32 << 20,
        ),
    )(x, slab, aux)

    return out[:B, 0:1].astype(jnp.float32)                    # (B, 1)


# ------------------------- pure-JAX references --------------------------------

def discriminator_ref(x, params):
    h = x
    for i, (w, b) in enumerate(params):
        h = h @ w + b
        if i < len(params) - 1:
            h = jnp.where(h > 0, h, 0.2 * h)
    return jax.nn.sigmoid(h)


def discriminator_ref_quant(x, params):
    """Mirrors the kernel's quantization: bf16 activations, int8 per-channel
    weights with f32 scales, f32 bias/LeakyReLU/sigmoid, bf16 output."""
    bf16, f32 = jnp.bfloat16, jnp.float32
    h = x.astype(bf16).astype(f32)
    n = len(params)
    z = None
    for i, (w, b) in enumerate(params):
        q, s = _quantize_per_channel(w)
        z = jnp.dot(h, q.astype(f32),
                    precision=jax.lax.Precision.HIGHEST) * s + b.astype(f32)
        if i < n - 1:
            h = jnp.where(z > 0, z, 0.2 * z).astype(bf16).astype(f32)
    return jax.nn.sigmoid(z).astype(bf16).astype(f32)


if __name__ == "__main__":
    key = jax.random.PRNGKey(0)
    k_x, k_p = jax.random.split(key)

    batch = 8
    x = jax.random.normal(k_x, (batch, INPUT_SIZE), dtype=jnp.float32)
    params = init_params(k_p)
    slab, aux = pack_params(params)

    out = discriminator_forward(x, slab, aux)
    out = jax.block_until_ready(out)
    assert out.shape == (batch, 1), out.shape

    ref_q = discriminator_ref_quant(x, params)   # matches kernel quantization
    ref_f = discriminator_ref(x, params)         # full-f32 semantics sanity check
    assert jnp.allclose(out, ref_q, atol=5e-3, rtol=1e-2), \
        float(jnp.max(jnp.abs(out - ref_q)))
    assert jnp.allclose(out, ref_f, atol=5e-2), \
        float(jnp.max(jnp.abs(out - ref_f)))

    print("KERNEL_OK")
</pallas_src>

<mosaic_0001>
module attributes {stable_mosaic.version = 11 : i64} {
  func.func @discriminator_kernel(%arg0: i32, %arg1: memref<8x784xf32, #tpu.memory_space<vmem>>, %arg2: memref<1568x1024xi8, #tpu.memory_space<vmem>>, %arg3: memref<8x1024xf32, #tpu.memory_space<vmem>>, %arg4: memref<8x128xbf16, #tpu.memory_space<vmem>>) attributes {dimension_semantics = [#tpu.dimension_semantics<parallel>], iteration_bounds = array<i64: 1>, scalar_prefetch = 0 : i64, scratch_operands = 0 : i64, tpu.core_type = #tpu.core_type<tc>, window_params = [{transform_indices = @transform_0, window_bounds = array<i64: 8, 784>}, {pipeline_mode = #tpu.pipeline_mode<synchronous>, transform_indices = @transform_1, window_bounds = array<i64: 1568, 1024>}, {pipeline_mode = #tpu.pipeline_mode<synchronous>, transform_indices = @transform_2, window_bounds = array<i64: 8, 1024>}, {transform_indices = @transform_3, window_bounds = array<i64: 8, 128>}]} {
    %c0 = arith.constant 0 : index
    %c0_0 = arith.constant 0 : index
    %0 = vector.load %arg1[%c0, %c0_0] : memref<8x784xf32, #tpu.memory_space<vmem>>, vector<8x784xf32>
    %1 = arith.truncf %0 : vector<8x784xf32> to vector<8x784xbf16>
    %c0_1 = arith.constant 0 : index
    %c0_2 = arith.constant 0 : index
    %2 = vector.load %arg2[%c0_1, %c0_2] : memref<1568x1024xi8, #tpu.memory_space<vmem>>, vector<784x1024xi8>
    %3 = arith.sitofp %2 : vector<784x1024xi8> to vector<784x1024xbf16>
    %cst = arith.constant dense<0.000000e+00> : vector<8x1024xf32>
    %4 = tpu.matmul %1, %3, %cst {dimension_numbers = #tpu.dot_dimension_numbers<[1], [0], [0], [1], [0, 0, 1, 1], [], []>} : vector<8x784xbf16>, vector<784x1024xbf16>, vector<8x1024xf32> -> vector<8x1024xf32>
    %c1 = arith.constant 1 : index
    %c0_3 = arith.constant 0 : index
    %5 = vector.load %arg3[%c1, %c0_3] : memref<8x1024xf32, #tpu.memory_space<vmem>>, vector<1x1024xf32>
    %6 = vector.broadcast %5 : vector<1x1024xf32> to vector<8x1024xf32>
    %7 = arith.mulf %4, %6 : vector<8x1024xf32>
    %c0_4 = arith.constant 0 : index
    %c0_5 = arith.constant 0 : index
    %8 = vector.load %arg3[%c0_4, %c0_5] : memref<8x1024xf32, #tpu.memory_space<vmem>>, vector<1x1024xf32>
    %9 = vector.broadcast %8 : vector<1x1024xf32> to vector<8x1024xf32>
    %10 = arith.addf %7, %9 : vector<8x1024xf32>
    %cst_6 = arith.constant 0.000000e+00 : f32
    %11 = vector.broadcast %cst_6 : f32 to vector<8x1024xf32>
    %12 = arith.cmpf ogt, %10, %11 : vector<8x1024xf32>
    %cst_7 = arith.constant 2.000000e-01 : f32
    %13 = vector.broadcast %cst_7 : f32 to vector<8x1024xf32>
    %14 = arith.mulf %13, %10 : vector<8x1024xf32>
    %15 = arith.select %12, %10, %14 : vector<8x1024xi1>, vector<8x1024xf32>
    %16 = arith.truncf %15 : vector<8x1024xf32> to vector<8x1024xbf16>
    %17 = vector.extract_strided_slice %16 {offsets = [0, 0], sizes = [8, 512], strides = [1, 1]} : vector<8x1024xbf16> to vector<8x512xbf16>
    %c800 = arith.constant 800 : index
    %c0_8 = arith.constant 0 : index
    %18 = vector.load %arg2[%c800, %c0_8] : memref<1568x1024xi8, #tpu.memory_space<vmem>>, vector<512x512xi8>
    %19 = arith.sitofp %18 : vector<512x512xi8> to vector<512x512xbf16>
    %cst_9 = arith.constant dense<0.000000e+00> : vector<8x512xf32>
    %20 = tpu.matmul %17, %19, %cst_9 {dimension_numbers = #tpu.dot_dimension_numbers<[1], [0], [0], [1], [0, 0, 1, 1], [], []>} : vector<8x512xbf16>, vector<512x512xbf16>, vector<8x512xf32> -> vector<8x512xf32>
    %21 = vector.extract_strided_slice %16 {offsets = [0, 512], sizes = [8, 512], strides = [1, 1]} : vector<8x1024xbf16> to vector<8x512xbf16>
    %c800_10 = arith.constant 800 : index
    %c512 = arith.constant 512 : index
    %22 = vector.load %arg2[%c800_10, %c512] : memref<1568x1024xi8, #tpu.memory_space<vmem>>, vector<512x512xi8>
    %23 = arith.sitofp %22 : vector<512x512xi8> to vector<512x512xbf16>
    %cst_11 = arith.constant dense<0.000000e+00> : vector<8x512xf32>
    %24 = tpu.matmul %21, %23, %cst_11 {dimension_numbers = #tpu.dot_dimension_numbers<[1], [0], [0], [1], [0, 0, 1, 1], [], []>} : vector<8x512xbf16>, vector<512x512xbf16>, vector<8x512xf32> -> vector<8x512xf32>
    %25 = arith.addf %20, %24 : vector<8x512xf32>
    %c3 = arith.constant 3 : index
    %c0_12 = arith.constant 0 : index
    %26 = vector.load %arg3[%c3, %c0_12] : memref<8x1024xf32, #tpu.memory_space<vmem>>, vector<1x512xf32>
    %27 = vector.broadcast %26 : vector<1x512xf32> to vector<8x512xf32>
    %28 = arith.mulf %25, %27 : vector<8x512xf32>
    %c2 = arith.constant 2 : index
    %c0_13 = arith.constant 0 : index
    %29 = vector.load %arg3[%c2, %c0_13] : memref<8x1024xf32, #tpu.memory_space<vmem>>, vector<1x512xf32>
    %30 = vector.broadcast %29 : vector<1x512xf32> to vector<8x512xf32>
    %31 = arith.addf %28, %30 : vector<8x512xf32>
    %cst_14 = arith.constant 0.000000e+00 : f32
    %32 = vector.broadcast %cst_14 : f32 to vector<8x512xf32>
    %33 = arith.cmpf ogt, %31, %32 : vector<8x512xf32>
    %cst_15 = arith.constant 2.000000e-01 : f32
    %34 = vector.broadcast %cst_15 : f32 to vector<8x512xf32>
    %35 = arith.mulf %34, %31 : vector<8x512xf32>
    %36 = arith.select %33, %31, %35 : vector<8x512xi1>, vector<8x512xf32>
    %37 = arith.truncf %36 : vector<8x512xf32> to vector<8x512xbf16>
    %38 = vector.extract_strided_slice %37 {offsets = [0, 0], sizes = [8, 128], strides = [1, 1]} : vector<8x512xbf16> to vector<8x128xbf16>
    %c1312 = arith.constant 1312 : index
    %c0_16 = arith.constant 0 : index
    %39 = vector.load %arg2[%c1312, %c0_16] : memref<1568x1024xi8, #tpu.memory_space<vmem>>, vector<128x256xi8>
    %40 = arith.sitofp %39 : vector<128x256xi8> to vector<128x256xbf16>
    %cst_17 = arith.constant dense<0.000000e+00> : vector<8x256xf32>
    %41 = tpu.matmul %38, %40, %cst_17 {dimension_numbers = #tpu.dot_dimension_numbers<[1], [0], [0], [1], [0, 0, 1, 1], [], []>} : vector<8x128xbf16>, vector<128x256xbf16>, vector<8x256xf32> -> vector<8x256xf32>
    %42 = vector.extract_strided_slice %37 {offsets = [0, 128], sizes = [8, 128], strides = [1, 1]} : vector<8x512xbf16> to vector<8x128xbf16>
    %c1312_18 = arith.constant 1312 : index
    %c256 = arith.constant 256 : index
    %43 = vector.load %arg2[%c1312_18, %c256] : memref<1568x1024xi8, #tpu.memory_space<vmem>>, vector<128x256xi8>
    %44 = arith.sitofp %43 : vector<128x256xi8> to vector<128x256xbf16>
    %cst_19 = arith.constant dense<0.000000e+00> : vector<8x256xf32>
    %45 = tpu.matmul %42, %44, %cst_19 {dimension_numbers = #tpu.dot_dimension_numbers<[1], [0], [0], [1], [0, 0, 1, 1], [], []>} : vector<8x128xbf16>, vector<128x256xbf16>, vector<8x256xf32> -> vector<8x256xf32>
    %46 = arith.addf %41, %45 : vector<8x256xf32>
    %47 = vector.extract_strided_slice %37 {offsets = [0, 256], sizes = [8, 128], strides = [1, 1]} : vector<8x512xbf16> to vector<8x128xbf16>
    %c1312_20 = arith.constant 1312 : index
    %c512_21 = arith.constant 512 : index
    %48 = vector.load %arg2[%c1312_20, %c512_21] : memref<1568x1024xi8, #tpu.memory_space<vmem>>, vector<128x256xi8>
    %49 = arith.sitofp %48 : vector<128x256xi8> to vector<128x256xbf16>
    %cst_22 = arith.constant dense<0.000000e+00> : vector<8x256xf32>
    %50 = tpu.matmul %47, %49, %cst_22 {dimension_numbers = #tpu.dot_dimension_numbers<[1], [0], [0], [1], [0, 0, 1, 1], [], []>} : vector<8x128xbf16>, vector<128x256xbf16>, vector<8x256xf32> -> vector<8x256xf32>
    %51 = arith.addf %46, %50 : vector<8x256xf32>
    %52 = vector.extract_strided_slice %37 {offsets = [0, 384], sizes = [8, 128], strides = [1, 1]} : vector<8x512xbf16> to vector<8x128xbf16>
    %c1312_23 = arith.constant 1312 : index
    %c768 = arith.constant 768 : index
    %53 = vector.load %arg2[%c1312_23, %c768] : memref<1568x1024xi8, #tpu.memory_space<vmem>>, vector<128x256xi8>
    %54 = arith.sitofp %53 : vector<128x256xi8> to vector<128x256xbf16>
    %cst_24 = arith.constant dense<0.000000e+00> : vector<8x256xf32>
    %55 = tpu.matmul %52, %54, %cst_24 {dimension_numbers = #tpu.dot_dimension_numbers<[1], [0], [0], [1], [0, 0, 1, 1], [], []>} : vector<8x128xbf16>, vector<128x256xbf16>, vector<8x256xf32> -> vector<8x256xf32>
    %56 = arith.addf %51, %55 : vector<8x256xf32>
    %c5 = arith.constant 5 : index
    %c0_25 = arith.constant 0 : index
    %57 = vector.load %arg3[%c5, %c0_25] : memref<8x1024xf32, #tpu.memory_space<vmem>>, vector<1x256xf32>
    %58 = vector.broadcast %57 : vector<1x256xf32> to vector<8x256xf32>
    %59 = arith.mulf %56, %58 : vector<8x256xf32>
    %c4 = arith.constant 4 : index
    %c0_26 = arith.constant 0 : index
    %60 = vector.load %arg3[%c4, %c0_26] : memref<8x1024xf32, #tpu.memory_space<vmem>>, vector<1x256xf32>
    %61 = vector.broadcast %60 : vector<1x256xf32> to vector<8x256xf32>
    %62 = arith.addf %59, %61 : vector<8x256xf32>
    %cst_27 = arith.constant 0.000000e+00 : f32
    %63 = vector.broadcast %cst_27 : f32 to vector<8x256xf32>
    %64 = arith.cmpf ogt, %62, %63 : vector<8x256xf32>
    %cst_28 = arith.constant 2.000000e-01 : f32
    %65 = vector.broadcast %cst_28 : f32 to vector<8x256xf32>
    %66 = arith.mulf %65, %62 : vector<8x256xf32>
    %67 = arith.select %64, %62, %66 : vector<8x256xi1>, vector<8x256xf32>
    %68 = arith.truncf %67 : vector<8x256xf32> to vector<8x256xbf16>
    %69 = vector.extract_strided_slice %68 {offsets = [0, 0], sizes = [8, 128], strides = [1, 1]} : vector<8x256xbf16> to vector<8x128xbf16>
    %c1440 = arith.constant 1440 : index
    %c0_29 = arith.constant 0 : index
    %70 = vector.load %arg2[%c1440, %c0_29] : memref<1568x1024xi8, #tpu.memory_space<vmem>>, vector<128x128xi8>
    %71 = arith.sitofp %70 : vector<128x128xi8> to vector<128x128xbf16>
    %cst_30 = arith.constant dense<0.000000e+00> : vector<8x128xf32>
    %72 = tpu.matmul %69, %71, %cst_30 {dimension_numbers = #tpu.dot_dimension_numbers<[1], [0], [0], [1], [0, 0, 1, 1], [], []>} : vector<8x128xbf16>, vector<128x128xbf16>, vector<8x128xf32> -> vector<8x128xf32>
    %73 = vector.extract_strided_slice %68 {offsets = [0, 128], sizes = [8, 128], strides = [1, 1]} : vector<8x256xbf16> to vector<8x128xbf16>
    %c1440_31 = arith.constant 1440 : index
    %c128 = arith.constant 128 : index
    %74 = vector.load %arg2[%c1440_31, %c128] : memref<1568x1024xi8, #tpu.memory_space<vmem>>, vector<128x128xi8>
    %75 = arith.sitofp %74 : vector<128x128xi8> to vector<128x128xbf16>
    %cst_32 = arith.constant dense<0.000000e+00> : vector<8x128xf32>
    %76 = tpu.matmul %73, %75, %cst_32 {dimension_numbers = #tpu.dot_dimension_numbers<[1], [0], [0], [1], [0, 0, 1, 1], [], []>} : vector<8x128xbf16>, vector<128x128xbf16>, vector<8x128xf32> -> vector<8x128xf32>
    %77 = arith.addf %72, %76 : vector<8x128xf32>
    %c7 = arith.constant 7 : index
    %c0_33 = arith.constant 0 : index
    %78 = vector.load %arg3[%c7, %c0_33] : memref<8x1024xf32, #tpu.memory_space<vmem>>, vector<1x128xf32>
    %79 = vector.broadcast %78 : vector<1x128xf32> to vector<8x128xf32>
    %80 = arith.mulf %77, %79 : vector<8x128xf32>
    %c6 = arith.constant 6 : index
    %c0_34 = arith.constant 0 : index
    %81 = vector.load %arg3[%c6, %c0_34] : memref<8x1024xf32, #tpu.memory_space<vmem>>, vector<1x128xf32>
    %82 = vector.broadcast %81 : vector<1x128xf32> to vector<8x128xf32>
    %83 = arith.addf %80, %82 : vector<8x128xf32>
    %84 = arith.negf %83 : vector<8x128xf32>
    %85 = math.exp %84 : vector<8x128xf32>
    %cst_35 = arith.constant 1.000000e+00 : f32
    %86 = vector.broadcast %cst_35 : f32 to vector<8x128xf32>
    %87 = arith.addf %86, %85 : vector<8x128xf32>
    %88 = arith.divf %86, %87 : vector<8x128xf32>
    %89 = arith.truncf %88 : vector<8x128xf32> to vector<8x128xbf16>
    %c0_36 = arith.constant 0 : index
    %c0_37 = arith.constant 0 : index
    %90 = vector.load %arg4[%c0_36, %c0_37] : memref<8x128xbf16, #tpu.memory_space<vmem>>, vector<8x128xbf16>
    tpu.vector_store %arg4[%c0_36, %c0_37], %89 {strides = array<i32>} : memref<8x128xbf16, #tpu.memory_space<vmem>>, vector<8x128xbf16>,
    return
  }
  func.func @transform_0(%arg0: i32) -> (i32, i32) {
    %c0_i32 = arith.constant 0 : i32
    %c0_i32_0 = arith.constant 0 : i32
    return %arg0, %c0_i32 : i32, i32
  }
  func.func @transform_1(%arg0: i32) -> (i32, i32) {
    %c0_i32 = arith.constant 0 : i32
    %c0_i32_0 = arith.constant 0 : i32
    %c0_i32_1 = arith.constant 0 : i32
    return %c0_i32, %c0_i32_0 : i32, i32
  }
  func.func @transform_2(%arg0: i32) -> (i32, i32) {
    %c0_i32 = arith.constant 0 : i32
    %c0_i32_0 = arith.constant 0 : i32
    %c0_i32_1 = arith.constant 0 : i32
    return %c0_i32, %c0_i32_0 : i32, i32
  }
  func.func @transform_3(%arg0: i32) -> (i32, i32) {
    %c0_i32 = arith.constant 0 : i32
    %c0_i32_0 = arith.constant 0 : i32
    return %arg0, %c0_i32 : i32, i32
  }
}

</mosaic_0001>

<bundles_post_ra>
// kernel: tpu_custom_call.1
= control target key start
LH: loop header
LB: loop body
LE: loop exit
PB: predicated region body
PF: predicated region fallthrough
CT: control target
= control target key end

     0   :  { %8 = vsyncpa [#allocation3], 0  ;;  %s3171_s0 = inlined_call_operand.hbm [shape: f32[8,784], index: 0, kind: input, shape index: {}]   ;;  %s3172_s1 = inlined_call_operand.hbm [shape: s8[1568,1024], index: 1, kind: input, shape index: {}]   ;;  %s3173_s2 = inlined_call_operand.hbm [shape: f32[8,1024], index: 2, kind: input, shape index: {}]   ;;  %s3174_s3 = inlined_call_operand.hbm [shape: bf16[8,128], index: 3, kind: output, shape index: {}]  }
   0x1   :  { %9 = vsyncpa [#allocation6], 0 }
   0x2   :  { %10 = vsyncpa [#allocation4], 0  ;;  %s2928_s12 = smov [#allocation5]   ;;  %s2834_s16 = scalar_lea.hbm %s3172_s1, 50176 }
   0x3   :  { %s26_s13 = sshll.u32 %s2928_s12, 4  ;;  %p2835_p0 = scmp.ne.s32.totalorder %s3172_s1, %s2834_s16  ;;  %s27_s13 = int_to_ptr.vmem [resolvable:$true] %s26_s13 }
   0x4   :  { %p2838_p1 = scmp.lt.u32.totalorder %s2834_s16, %s3172_s1 }
   0x6   :  { %p2840_p2 = pnand %p2838_p1, %p2835_p0 }
   0x8   :  { %2843 = shalt.err (!%p2840_p2)
}
   0x9   :  { %s2844_s21 = scalar_lea.vmem %s27_s13, 50176  ;;  %p2849_p4 = scmp.lt.s32.totalorder %s27_s13, %s27_s13 }
   0xa   :  { %p2845_p3 = scmp.ne.s32.totalorder %s27_s13, %s2844_s21  ;;  %p2850_p5 = scmp.lt.s32.totalorder %s2844_s21, %s2844_s21 }
   0xc   :  { %p2851_p6 = por %p2850_p5, %p2849_p4 }
   0xe   :  { %p2852_p7 = pnand %p2851_p6, %p2845_p3 }
  0x10   :  { %2855 = shalt.err (!%p2852_p7)
}
  0x11   :  { %s2929_s22 = smov 1024   ;;  %s2930_s23 = smov 64  }
  0x12   :  { %32 = dma.hbm_to_vmem [thread:$0]  %s3172_s1, 50176, %s27_s13, [#allocation6], %s2929_s22, %s2929_s22, %s2930_s23  }
  0x13   :  { %s2931_s26 = smov [#allocation2]   ;;  %s2932_s28 = smov [#allocation7]  }
  0x14   :  { %s17_s27 = sshll.u32 %s2931_s26, 4  ;;  %s39_s29 = sshll.u32 %s2932_s28, 4  ;;  %s18_s27 = int_to_ptr.vmem [resolvable:$true] %s17_s27  ;;  %s40_s29 = int_to_ptr.vmem [resolvable:$true] %s39_s29 }
  0x15   :  { %s2856_s5 = scalar_lea.hbm %s3171_s0, 896 }
  0x16   :  { %p2857_p8 = scmp.ne.s32.totalorder %s3171_s0, %s2856_s5  ;;  %p2860_p9 = scmp.lt.u32.totalorder %s2856_s5, %s3171_s0 }
  0x18   :  { %p2862_p10 = pnand %p2860_p9, %p2857_p8 }
  0x1a   :  { %2865 = shalt.err (!%p2862_p10)
}
  0x1b   :  { %s2866_s1 = scalar_lea.vmem %s18_s27, 896  ;;  %p2871_p12 = scmp.lt.s32.totalorder %s18_s27, %s18_s27 }
  0x1c   :  { %p2867_p11 = scmp.ne.s32.totalorder %s18_s27, %s2866_s1  ;;  %p2872_p13 = scmp.lt.s32.totalorder %s2866_s1, %s2866_s1 }
  0x1e   :  { %p2873_p0 = por %p2872_p13, %p2871_p12 }
  0x20   :  { %p2874_p1 = pnand %p2873_p0, %p2867_p11 }
  0x22   :  { %2877 = shalt.err (!%p2874_p1)
}
  0x23   :  { %20 = dma.hbm_to_vmem [thread:$0]  %s3171_s0, 896, %s18_s27, [#allocation3]  }
  0x24   :  { %s2878_s14 = scalar_lea.hbm %s3173_s2, 1024 }
  0x25   :  { %p2879_p2 = scmp.ne.s32.totalorder %s3173_s2, %s2878_s14  ;;  %p2882_p3 = scmp.lt.u32.totalorder %s2878_s14, %s3173_s2 }
  0x27   :  { %p2884_p4 = pnand %p2882_p3, %p2879_p2 }
  0x29   :  { %2887 = shalt.err (!%p2884_p4)
}
  0x2a   :  { %s2888_s19 = scalar_lea.vmem %s40_s29, 1024  ;;  %p2893_p6 = scmp.lt.s32.totalorder %s40_s29, %s40_s29 }
  0x2b   :  { %p2889_p5 = scmp.ne.s32.totalorder %s40_s29, %s2888_s19  ;;  %p2894_p7 = scmp.lt.s32.totalorder %s2888_s19, %s2888_s19 }
  0x2d   :  { %p2895_p8 = por %p2894_p7, %p2893_p6 }
  0x2f   :  { %p2896_p9 = pnand %p2895_p8, %p2889_p5 }
  0x31   :  { %2899 = shalt.err (!%p2896_p9)
}
  0x32   :  { %42 = dma.hbm_to_vmem [thread:$0]  %s3173_s2, 1024, %s40_s29, [#allocation6]  }
  0x33   :  { %2922 = dma.done.wait [#allocation3], 896  }
  0x34   :  { %2923 = vsyncadd [#allocation3], 4294966400 }
  0x35   :  { %2924 = dma.done.wait [#allocation6], 51200  }
  0x36   :  { %2925 = vsyncadd [#allocation6], 4294916096  ;;  %v68_v0 = vld [vmem:[#allocation5 + $0x8] sm:$0xff]  ;;  %v70_v1 = vld [vmem:[#allocation5 + $0x18] sm:$0xff]  ;;  %vm659_vm0 = vcmask 130048   ;;  %vm2935_vm13 = vmmov 0  }
  0x37   :  { %v67_v2 = vld [vmem:[#allocation5] sm:$0xff]  ;;  %v268_v3 = vunpack.c.l.s8.bf16 %v68_v0  ;;  %v276_v4 = vunpack.c.h.s8.bf16 %v68_v0  ;;  %v270_v5 = vunpack.c.l.s8.bf16 %v70_v1  ;;  %v278_v6 = vunpack.c.h.s8.bf16 %v70_v1  ;;  %v69_v7 = vld [vmem:[#allocation5 + $0x10] sm:$0xff]  ;;  %v76_v10 = vld [vmem:[#allocation5 + $0x48] sm:$0xff]  ;;  %s2936_s2 = smov [#allocation8]  }
  0x38   :  { %v267_v8 = vunpack.c.l.s8.bf16 %v67_v2  ;;  %v269_v9 = vunpack.c.l.s8.bf16 %v69_v7  ;;  %v78_v11 = vld [vmem:[#allocation5 + $0x58] sm:$0xff]  ;;  %v275_v12 = vunpack.c.h.s8.bf16 %v67_v2  ;;  %v277_v13 = vunpack.c.h.s8.bf16 %v69_v7  ;;  %v75_v16 = vld [vmem:[#allocation5 + $0x40] sm:$0xff]  ;;  %v77_v17 = vld [vmem:[#allocation5 + $0x50] sm:$0xff]  ;;  %s2662_s21 = sshll.u32 %s2936_s2, 4  ;;  %s2663_s21 = int_to_ptr.vmem [resolvable:$true] %s2662_s21 }
  0x39   :  { %663 = vmatprep.subr.bf16.mxu0 %v268_v3  ;;  %827 = vmatprep.subr.bf16.mxu1 %v270_v5  ;;  %v284_v14 = vunpack.c.l.s8.bf16 %v76_v10  ;;  %v286_v15 = vunpack.c.l.s8.bf16 %v78_v11  ;;  %v283_v18 = vunpack.c.l.s8.bf16 %v75_v16  ;;  %v285_v19 = vunpack.c.l.s8.bf16 %v77_v17  ;;  %v84_v22 = vld [vmem:[#allocation5 + $0x88] sm:$0xff]  ;;  %v86_v23 = vld [vmem:[#allocation5 + $0x98] sm:$0xff]  ;;  %v83_v28 = vld [vmem:[#allocation5 + $0x80] sm:$0xff]  ;;  %s2900_s22 = scalar_lea.vmem %s2663_s21, 64  ;;  %p2905_p11 = scmp.lt.s32.totalorder %s2663_s21, %s2663_s21 }
  0x3a   :  { %664 = vmatpush1.bf16.msra.mxu0 %v267_v8  ;;  %828 = vmatpush1.bf16.msra.mxu1 %v269_v9  ;;  %v292_v20 = vunpack.c.h.s8.bf16 %v76_v10  ;;  %v294_v21 = vunpack.c.h.s8.bf16 %v78_v11  ;;  %v291_v24 = vunpack.c.h.s8.bf16 %v75_v16  ;;  %v293_v25 = vunpack.c.h.s8.bf16 %v77_v17  ;;  %v85_v29 = vld [vmem:[#allocation5 + $0x90] sm:$0xff]  ;;  %v92_v36 = vld [vmem:[#allocation5 + $0xc8] sm:$0xff]  ;;  %v94_v37 = vld [vmem:[#allocation5 + $0xd8] sm:$0xff]  ;;  %p2901_p10 = scmp.ne.s32.totalorder %s2663_s21, %s2900_s22  ;;  %p2906_p12 = scmp.lt.s32.totalorder %s2900_s22, %s2900_s22 }
  0x3b   :  { %665 = vmatprep.subr.bf16.mxu0 %v276_v4  ;;  %829 = vmatprep.subr.bf16.mxu1 %v278_v6  ;;  %v300_v26 = vunpack.c.l.s8.bf16 %v84_v22  ;;  %v302_v27 = vunpack.c.l.s8.bf16 %v86_v23  ;;  %v54_v30 = vld [vmem:[#allocation2 + $0x8] sm:$0xff]  ;;  %v299_v31 = vunpack.c.l.s8.bf16 %v83_v28  ;;  %v301_v32 = vunpack.c.l.s8.bf16 %v85_v29  ;;  %v91_v42 = vld [vmem:[#allocation5 + $0xc0] sm:$0xff]  ;;  %v100_v48 = vld [vmem:[#allocation5 + $0x108] sm:$0xff] }
  0x3c   :  { %v308_v33 = vunpack.c.h.s8.bf16 %v84_v22  ;;  %v310_v34 = vunpack.c.h.s8.bf16 %v86_v23  ;;  %v2993_v35 = vpack.c.bf16 %v54_v30, %v54_v30  ;;  %v307_v38 = vunpack.c.h.s8.bf16 %v83_v28  ;;  %v93_v43 = vld [vmem:[#allocation5 + $0xd0] sm:$0xff]  ;;  %v102_v49 = vld [vmem:[#allocation5 + $0x118] sm:$0xff]  ;;  %v99_v54 = vld [vmem:[#allocation5 + $0x100] sm:$0xff]  ;;  %p2907_p13 = por %p2906_p12, %p2905_p11 }
  0x3d   :  { %v309_v39 = vunpack.c.h.s8.bf16 %v85_v29  ;;  %v316_v40 = vunpack.c.l.s8.bf16 %v92_v36  ;;  %v318_v41 = vunpack.c.l.s8.bf16 %v94_v37  ;;  %v315_v44 = vunpack.c.l.s8.bf16 %v91_v42  ;;  %v101_v55 = vld [vmem:[#allocation5 + $0x110] sm:$0xff]  ;;  %v108_v60 = vld [vmem:[#allocation5 + $0x148] sm:$0xff]  ;;  %v110_v61 = vld [vmem:[#allocation5 + $0x158] sm:$0xff] }
  0x3e   :  { %666 = vmatpush1.bf16.msra.mxu0 %v275_v12  ;;  %830 = vmatpush1.bf16.msra.mxu1 %v277_v13  ;;  %v317_v45 = vunpack.c.l.s8.bf16 %v93_v43  ;;  %v324_v46 = vunpack.c.h.s8.bf16 %v92_v36  ;;  %v326_v47 = vunpack.c.h.s8.bf16 %v94_v37  ;;  %v323_v50 = vunpack.c.h.s8.bf16 %v91_v42  ;;  %v107_v2 = vld [vmem:[#allocation5 + $0x140] sm:$0xff]  ;;  %v109_v3 = vld [vmem:[#allocation5 + $0x150] sm:$0xff]  ;;  %v116_v8 = vld [vmem:[#allocation5 + $0x188] sm:$0xff]  ;;  %p2908_p0 = pnand %p2907_p13, %p2901_p10 }
  0x3f   :  { %667 = vmatprep.subr.bf16.mxu0 %v284_v14  ;;  %831 = vmatprep.subr.bf16.mxu1 %v286_v15  ;;  %v325_v51 = vunpack.c.h.s8.bf16 %v93_v43  ;;  %v332_v52 = vunpack.c.l.s8.bf16 %v100_v48  ;;  %v334_v53 = vunpack.c.l.s8.bf16 %v102_v49  ;;  %v331_v56 = vunpack.c.l.s8.bf16 %v99_v54  ;;  %v118_v9 = vld [vmem:[#allocation5 + $0x198] sm:$0xff]  ;;  %v115_v14 = vld [vmem:[#allocation5 + $0x180] sm:$0xff]  ;;  %v117_v15 = vld [vmem:[#allocation5 + $0x190] sm:$0xff] }
  0x40   :  { %695 = vmatprep.mubr.bf16.mxu0 %v2993_v35  ;;  %859 = vmatprep.mubr.bf16.mxu1 %v2993_v35  ;;  %v333_v57 = vunpack.c.l.s8.bf16 %v101_v55  ;;  %v340_v58 = vunpack.c.h.s8.bf16 %v100_v48  ;;  %v342_v59 = vunpack.c.h.s8.bf16 %v102_v49  ;;  %v339_v62 = vunpack.c.h.s8.bf16 %v99_v54  ;;  %v53_v37 = vld [vmem:[#allocation2] sm:$0xff]  ;;  %v56_v43 = vld [vmem:[#allocation2 + $0x18] sm:$0xff]  ;;  %v142_v49 = vld [vmem:[#allocation5 + $0x258] sm:$0xff] }
  0x41   :  { %v341_v63 = vunpack.c.h.s8.bf16 %v101_v55  ;;  %v348_v0 = vunpack.c.l.s8.bf16 %v108_v60  ;;  %v350_v1 = vunpack.c.l.s8.bf16 %v110_v61  ;;  %v347_v4 = vunpack.c.l.s8.bf16 %v107_v2  ;;  %v140_v48 = vld [vmem:[#allocation5 + $0x248] sm:$0xff]  ;;  %v139_v55 = vld [vmem:[#allocation5 + $0x240] sm:$0xff] }
  0x42   :  { %668 = vmatpush1.bf16.msra.mxu0 %v283_v18  ;;  %832 = vmatpush1.bf16.msra.mxu1 %v285_v19  ;;  %v349_v5 = vunpack.c.l.s8.bf16 %v109_v3  ;;  %v356_v6 = vunpack.c.h.s8.bf16 %v108_v60  ;;  %v358_v7 = vunpack.c.h.s8.bf16 %v110_v61  ;;  %v355_v10 = vunpack.c.h.s8.bf16 %v107_v2  ;;  %v148_v61 = vld [vmem:[#allocation5 + $0x288] sm:$0xff] }
  0x43   :  { %669 = vmatprep.subr.bf16.mxu0 %v292_v20  ;;  %833 = vmatprep.subr.bf16.mxu1 %v294_v21  ;;  %v357_v11 = vunpack.c.h.s8.bf16 %v109_v3  ;;  %v364_v12 = vunpack.c.l.s8.bf16 %v116_v8  ;;  %v366_v13 = vunpack.c.l.s8.bf16 %v118_v9  ;;  %v363_v16 = vunpack.c.l.s8.bf16 %v115_v14  ;;  %v124_v20 = vld [vmem:[#allocation5 + $0x1c8] sm:$0xff]  ;;  %v126_v21 = vld [vmem:[#allocation5 + $0x1d8] sm:$0xff]  ;;  %v147_v3 = vld [vmem:[#allocation5 + $0x280] sm:$0xff] }
  0x44   :  { %v365_v17 = vunpack.c.l.s8.bf16 %v117_v15  ;;  %v372_v18 = vunpack.c.h.s8.bf16 %v116_v8  ;;  %v374_v19 = vunpack.c.h.s8.bf16 %v118_v9  ;;  %v371_v22 = vunpack.c.h.s8.bf16 %v115_v14  ;;  %v156_v9 = vld [vmem:[#allocation5 + $0x2c8] sm:$0xff] }
  0x45   :  { %v373_v23 = vunpack.c.h.s8.bf16 %v117_v15  ;;  %v388_v30 = vunpack.c.h.s8.bf16 %v124_v20  ;;  %v2997_v42 = vpack.c.bf16 %v53_v37, %v53_v37  ;;  %v414_v54 = vunpack.c.l.s8.bf16 %v142_v49  ;;  %v155_v15 = vld [vmem:[#allocation5 + $0x2c0] sm:$0xff] }
  0x46   :  { %670 = vmatpush1.bf16.msra.mxu0 %v291_v24  ;;  %834 = vmatpush1.bf16.msra.mxu1 %v293_v25  ;;  %v380_v24 = vunpack.c.l.s8.bf16 %v124_v20  ;;  %v382_v25 = vunpack.c.l.s8.bf16 %v126_v21  ;;  %v422_v60 = vunpack.c.h.s8.bf16 %v142_v49 }
  0x47   :  { %671 = vmatprep.subr.bf16.mxu0 %v300_v26  ;;  %835 = vmatprep.subr.bf16.mxu1 %v302_v27  ;;  %v123_v26 = vld [vmem:[#allocation5 + $0x1c0] sm:$0xff]  ;;  %v125_v27 = vld [vmem:[#allocation5 + $0x1d0] sm:$0xff] }
  0x48   :  { %v379_v28 = vunpack.c.l.s8.bf16 %v123_v26  ;;  %v381_v29 = vunpack.c.l.s8.bf16 %v125_v27  ;;  %v389_v36 = vunpack.c.h.s8.bf16 %v125_v27  ;;  %v163_v27 = vld [vmem:[#allocation5 + $0x300] sm:$0xff] }
  0x4a   :  { %672 = vmatpush1.bf16.msra.mxu0 %v299_v31  ;;  %836 = vmatpush1.bf16.msra.mxu1 %v301_v32  ;;  %v390_v31 = vunpack.c.h.s8.bf16 %v126_v21  ;;  %v132_v32 = vld [vmem:[#allocation5 + $0x208] sm:$0xff] }
  0x4b   :  { %673 = vmatprep.subr.bf16.mxu0 %v308_v33  ;;  %837 = vmatprep.subr.bf16.mxu1 %v310_v34  ;;  %v134_v33 = vld [vmem:[#allocation5 + $0x218] sm:$0xff]  ;;  %v387_v34 = vunpack.c.h.s8.bf16 %v123_v26  ;;  %v164_v21 = vld [vmem:[#allocation5 + $0x308] sm:$0xff] }
  0x4e   :  { %674 = vmatpush1.bf16.msra.mxu0 %v307_v38  ;;  %838 = vmatpush1.bf16.msra.mxu1 %v309_v39  ;;  %v396_v38 = vunpack.c.l.s8.bf16 %v132_v32  ;;  %v398_v39 = vunpack.c.l.s8.bf16 %v134_v33 }
  0x4f   :  { %675 = vmatprep.subr.bf16.mxu0 %v316_v40  ;;  %839 = vmatprep.subr.bf16.mxu1 %v318_v41  ;;  %v131_v40 = vld [vmem:[#allocation5 + $0x200] sm:$0xff]  ;;  %v133_v41 = vld [vmem:[#allocation5 + $0x210] sm:$0xff] }
  0x52   :  { %676 = vmatpush1.bf16.msra.mxu0 %v315_v44  ;;  %840 = vmatpush1.bf16.msra.mxu1 %v317_v45  ;;  %v395_v44 = vunpack.c.l.s8.bf16 %v131_v40  ;;  %v397_v45 = vunpack.c.l.s8.bf16 %v133_v41 }
  0x53   :  { %677 = vmatprep.subr.bf16.mxu0 %v324_v46  ;;  %841 = vmatprep.subr.bf16.mxu1 %v326_v47  ;;  %v404_v46 = vunpack.c.h.s8.bf16 %v132_v32  ;;  %v406_v47 = vunpack.c.h.s8.bf16 %v134_v33  ;;  %v172_v33 = vld [vmem:[#allocation5 + $0x348] sm:$0xff] }
  0x56   :  { %678 = vmatpush1.bf16.msra.mxu0 %v323_v50  ;;  %842 = vmatpush1.bf16.msra.mxu1 %v325_v51  ;;  %v2999_v50 = vpack.c.bf16 %v56_v43, %v56_v43  ;;  %v403_v51 = vunpack.c.h.s8.bf16 %v131_v40  ;;  %v171_v40 = vld [vmem:[#allocation5 + $0x340] sm:$0xff] }
  0x57   :  { %679 = vmatprep.subr.bf16.mxu0 %v332_v52  ;;  %843 = vmatprep.subr.bf16.mxu1 %v334_v53  ;;  %v405_v52 = vunpack.c.h.s8.bf16 %v133_v41  ;;  %v412_v53 = vunpack.c.l.s8.bf16 %v140_v48  ;;  %v173_v41 = vld [vmem:[#allocation5 + $0x350] sm:$0xff]  ;;  %v475_v43 = vunpack.c.l.s8.bf16 %v171_v40  ;;  %v483_v49 = vunpack.c.h.s8.bf16 %v171_v40 }
  0x5a   :  { %680 = vmatpush1.bf16.msra.mxu0 %v331_v56  ;;  %844 = vmatpush1.bf16.msra.mxu1 %v333_v57  ;;  %v141_v56 = vld [vmem:[#allocation5 + $0x250] sm:$0xff]  ;;  %v411_v57 = vunpack.c.l.s8.bf16 %v139_v55 }
  0x5b   :  { %681 = vmatprep.subr.bf16.mxu0 %v340_v58  ;;  %845 = vmatprep.subr.bf16.mxu1 %v342_v59  ;;  %v413_v58 = vunpack.c.l.s8.bf16 %v141_v56  ;;  %v420_v59 = vunpack.c.h.s8.bf16 %v140_v48  ;;  %v182_v48 = vld [vmem:[#allocation5 + $0x398] sm:$0xff] }
  0x5e   :  { %682 = vmatpush1.bf16.msra.mxu0 %v339_v62  ;;  %846 = vmatpush1.bf16.msra.mxu1 %v341_v63  ;;  %v150_v62 = vld [vmem:[#allocation5 + $0x298] sm:$0xff]  ;;  %v419_v63 = vunpack.c.h.s8.bf16 %v139_v55  ;;  %v181_v55 = vld [vmem:[#allocation5 + $0x390] sm:$0xff] }
  0x5f   :  { %683 = vmatprep.subr.bf16.mxu0 %v348_v0  ;;  %847 = vmatprep.subr.bf16.mxu1 %v350_v1  ;;  %v421_v0 = vunpack.c.h.s8.bf16 %v141_v56  ;;  %v428_v1 = vunpack.c.l.s8.bf16 %v148_v61  ;;  %v430_v2 = vunpack.c.l.s8.bf16 %v150_v62  ;;  %v438_v8 = vunpack.c.h.s8.bf16 %v150_v62 }
  0x62   :  { %684 = vmatpush1.bf16.msra.mxu0 %v347_v4  ;;  %848 = vmatpush1.bf16.msra.mxu1 %v349_v5  ;;  %v149_v4 = vld [vmem:[#allocation5 + $0x290] sm:$0xff]  ;;  %v427_v5 = vunpack.c.l.s8.bf16 %v147_v3 }
  0x63   :  { %685 = vmatprep.subr.bf16.mxu0 %v356_v6  ;;  %849 = vmatprep.subr.bf16.mxu1 %v358_v7  ;;  %v429_v6 = vunpack.c.l.s8.bf16 %v149_v4  ;;  %v436_v7 = vunpack.c.h.s8.bf16 %v148_v61  ;;  %v190_v61 = vld [vmem:[#allocation5 + $0x3d8] sm:$0xff] }
  0x66   :  { %686 = vmatpush1.bf16.msra.mxu0 %v355_v10  ;;  %850 = vmatpush1.bf16.msra.mxu1 %v357_v11  ;;  %v158_v10 = vld [vmem:[#allocation5 + $0x2d8] sm:$0xff]  ;;  %v435_v11 = vunpack.c.h.s8.bf16 %v147_v3  ;;  %v189_v3 = vld [vmem:[#allocation5 + $0x3d0] sm:$0xff] }
  0x67   :  { %687 = vmatprep.subr.bf16.mxu0 %v364_v12  ;;  %851 = vmatprep.subr.bf16.mxu1 %v366_v13  ;;  %v437_v12 = vunpack.c.h.s8.bf16 %v149_v4  ;;  %v444_v13 = vunpack.c.l.s8.bf16 %v156_v9  ;;  %v446_v14 = vunpack.c.l.s8.bf16 %v158_v10  ;;  %v454_v20 = vunpack.c.h.s8.bf16 %v158_v10 }
  0x6a   :  { %688 = vmatpush1.bf16.msra.mxu0 %v363_v16  ;;  %852 = vmatpush1.bf16.msra.mxu1 %v365_v17  ;;  %v157_v16 = vld [vmem:[#allocation5 + $0x2d0] sm:$0xff]  ;;  %v443_v17 = vunpack.c.l.s8.bf16 %v155_v15 }
  0x6b   :  { %689 = vmatprep.subr.bf16.mxu0 %v372_v18  ;;  %853 = vmatprep.subr.bf16.mxu1 %v374_v19  ;;  %v445_v18 = vunpack.c.l.s8.bf16 %v157_v16  ;;  %v452_v19 = vunpack.c.h.s8.bf16 %v156_v9  ;;  %v198_v9 = vld [vmem:[#allocation5 + $0x418] sm:$0xff] }
  0x6e   :  { %690 = vmatpush1.bf16.msra.mxu0 %v371_v22  ;;  %854 = vmatpush1.bf16.msra.mxu1 %v373_v23  ;;  %v166_v22 = vld [vmem:[#allocation5 + $0x318] sm:$0xff]  ;;  %v451_v23 = vunpack.c.h.s8.bf16 %v155_v15  ;;  %v195_v15 = vld [vmem:[#allocation5 + $0x400] sm:$0xff] }
  0x6f   :  { %691 = vmatprep.subr.bf16.mxu0 %v380_v24  ;;  %855 = vmatprep.subr.bf16.mxu1 %v382_v25  ;;  %v453_v24 = vunpack.c.h.s8.bf16 %v157_v16  ;;  %v460_v25 = vunpack.c.l.s8.bf16 %v164_v21  ;;  %v462_v26 = vunpack.c.l.s8.bf16 %v166_v22  ;;  %v470_v32 = vunpack.c.h.s8.bf16 %v166_v22  ;;  %v197_v16 = vld [vmem:[#allocation5 + $0x410] sm:$0xff] }
  0x70   :  { %v534_v22 = vunpack.c.h.s8.bf16 %v198_v9 }
  0x72   :  { %692 = vmatpush1.bf16.msra.mxu0 %v379_v28  ;;  %856 = vmatpush1.bf16.msra.mxu1 %v381_v29  ;;  %v165_v28 = vld [vmem:[#allocation5 + $0x310] sm:$0xff]  ;;  %v459_v29 = vunpack.c.l.s8.bf16 %v163_v27 }
  0x73   :  { %693 = vmatprep.subr.bf16.mxu0 %v388_v30  ;;  %857 = vmatprep.subr.bf16.mxu1 %v390_v31  ;;  %v461_v30 = vunpack.c.l.s8.bf16 %v165_v28  ;;  %v468_v31 = vunpack.c.h.s8.bf16 %v164_v21  ;;  %v469_v37 = vunpack.c.h.s8.bf16 %v165_v28 }
  0x76   :  { %694 = vmatpush1.bf16.msra.mxu0 %v387_v34  ;;  %858 = vmatpush1.bf16.msra.mxu1 %v389_v36  ;;  %v174_v34 = vld [vmem:[#allocation5 + $0x358] sm:$0xff]  ;;  %v467_v36 = vunpack.c.h.s8.bf16 %v163_v27  ;;  %v533_v27 = vunpack.c.h.s8.bf16 %v197_v16 }
  0x77   :  { %704 = vmatprep.subr.bf16.mxu0 %v396_v38  ;;  %868 = vmatprep.subr.bf16.mxu1 %v398_v39  ;;  %v476_v38 = vunpack.c.l.s8.bf16 %v172_v33  ;;  %v478_v39 = vunpack.c.l.s8.bf16 %v174_v34 }
  0x79   :  { %696 = vmatmul.mubr.bf16.vlgmr.msra.gmra.mrb[0].mxu0 %v2997_v42  ;;  %860 = vmatmul.mubr.bf16.vlgmr.msra.gmra.mrb[0].mxu1 %v2997_v42 }
  0x7a   :  { %705 = vmatpush1.bf16.msra.mxu0 %v395_v44  ;;  %869 = vmatpush1.bf16.msra.mxu1 %v397_v45  ;;  %v477_v44 = vunpack.c.l.s8.bf16 %v173_v41  ;;  %v484_v45 = vunpack.c.h.s8.bf16 %v172_v33 }
  0x7b   :  { %706 = vmatprep.subr.bf16.mxu0 %v404_v46  ;;  %870 = vmatprep.subr.bf16.mxu1 %v406_v47  ;;  %v486_v46 = vunpack.c.h.s8.bf16 %v174_v34  ;;  %v180_v47 = vld [vmem:[#allocation5 + $0x388] sm:$0xff] }
  0x7c   :  { %736 = vmatprep.mubr.bf16.mxu0 %v2999_v50  ;;  %900 = vmatprep.mubr.bf16.mxu1 %v2999_v50 }
  0x7e   :  { %707 = vmatpush1.bf16.msra.mxu0 %v403_v51  ;;  %871 = vmatpush1.bf16.msra.mxu1 %v405_v52  ;;  %v485_v51 = vunpack.c.h.s8.bf16 %v173_v41  ;;  %v492_v52 = vunpack.c.l.s8.bf16 %v180_v47 }
  0x7f   :  { %708 = vmatprep.subr.bf16.mxu0 %v412_v53  ;;  %872 = vmatprep.subr.bf16.mxu1 %v414_v54  ;;  %v494_v53 = vunpack.c.l.s8.bf16 %v182_v48  ;;  %v179_v54 = vld [vmem:[#allocation5 + $0x380] sm:$0xff] }
  0x80   :  { %v491_v56 = vunpack.c.l.s8.bf16 %v179_v54  ;;  %v499_v62 = vunpack.c.h.s8.bf16 %v179_v54 }
  0x82   :  { %709 = vmatpush1.bf16.msra.mxu0 %v411_v57  ;;  %873 = vmatpush1.bf16.msra.mxu1 %v413_v58  ;;  %v493_v57 = vunpack.c.l.s8.bf16 %v181_v55  ;;  %v500_v58 = vunpack.c.h.s8.bf16 %v180_v47 }
  0x83   :  { %710 = vmatprep.subr.bf16.mxu0 %v420_v59  ;;  %874 = vmatprep.subr.bf16.mxu1 %v422_v60  ;;  %v502_v59 = vunpack.c.h.s8.bf16 %v182_v48  ;;  %v188_v60 = vld [vmem:[#allocation5 + $0x3c8] sm:$0xff] }
  0x86   :  { %711 = vmatpush1.bf16.msra.mxu0 %v419_v63  ;;  %875 = vmatpush1.bf16.msra.mxu1 %v421_v0  ;;  %v501_v63 = vunpack.c.h.s8.bf16 %v181_v55  ;;  %v508_v0 = vunpack.c.l.s8.bf16 %v188_v60 }
  0x87   :  { %712 = vmatprep.subr.bf16.mxu0 %v428_v1  ;;  %876 = vmatprep.subr.bf16.mxu1 %v430_v2  ;;  %v510_v1 = vunpack.c.l.s8.bf16 %v190_v61  ;;  %v187_v2 = vld [vmem:[#allocation5 + $0x3c0] sm:$0xff] }
  0x88   :  { %v507_v4 = vunpack.c.l.s8.bf16 %v187_v2  ;;  %v515_v10 = vunpack.c.h.s8.bf16 %v187_v2 }
  0x8a   :  { %713 = vmatpush1.bf16.msra.mxu0 %v427_v5  ;;  %877 = vmatpush1.bf16.msra.mxu1 %v429_v6  ;;  %v509_v5 = vunpack.c.l.s8.bf16 %v189_v3  ;;  %v516_v6 = vunpack.c.h.s8.bf16 %v188_v60 }
  0x8b   :  { %714 = vmatprep.subr.bf16.mxu0 %v436_v7  ;;  %878 = vmatprep.subr.bf16.mxu1 %v438_v8  ;;  %v518_v7 = vunpack.c.h.s8.bf16 %v190_v61  ;;  %v196_v8 = vld [vmem:[#allocation5 + $0x408] sm:$0xff] }
  0x8c   :  { %v532_v21 = vunpack.c.h.s8.bf16 %v196_v8 }
  0x8e   :  { %715 = vmatpush1.bf16.msra.mxu0 %v435_v11  ;;  %879 = vmatpush1.bf16.msra.mxu1 %v437_v12  ;;  %v517_v11 = vunpack.c.h.s8.bf16 %v189_v3  ;;  %v55_v12 = vld [vmem:[#allocation2 + $0x10] sm:$0xff] }
  0x8f   :  { %716 = vmatprep.subr.bf16.mxu0 %v444_v13  ;;  %880 = vmatprep.subr.bf16.mxu1 %v446_v14  ;;  %v524_v13 = vunpack.c.l.s8.bf16 %v196_v8  ;;  %v526_v14 = vunpack.c.l.s8.bf16 %v198_v9 }
  0x92   :  { %717 = vmatpush1.bf16.msra.mxu0 %v443_v17  ;;  %881 = vmatpush1.bf16.msra.mxu1 %v445_v18  ;;  %v3005_v17 = vpack.c.bf16 %v55_v12, %v55_v12  ;;  %v58_v18 = vld [vmem:[#allocation2 + $0x28] sm:$0xff]  ;;  %v238_v12 = vld [vmem:[#allocation5 + $0x558] sm:$0xff] }
  0x93   :  { %718 = vmatprep.subr.bf16.mxu0 %v452_v19  ;;  %882 = vmatprep.subr.bf16.mxu1 %v454_v20  ;;  %v523_v19 = vunpack.c.l.s8.bf16 %v195_v15  ;;  %v525_v20 = vunpack.c.l.s8.bf16 %v197_v16  ;;  %v606_v16 = vunpack.c.l.s8.bf16 %v238_v12 }
  0x96   :  { %719 = vmatpush1.bf16.msra.mxu0 %v451_v23  ;;  %883 = vmatpush1.bf16.msra.mxu1 %v453_v24  ;;  %v204_v23 = vld [vmem:[#allocation5 + $0x448] sm:$0xff]  ;;  %v206_v24 = vld [vmem:[#allocation5 + $0x458] sm:$0xff] }
  0x97   :  { %720 = vmatprep.subr.bf16.mxu0 %v460_v25  ;;  %884 = vmatprep.subr.bf16.mxu1 %v462_v26  ;;  %v3007_v25 = vpack.c.bf16 %v58_v18, %v58_v18  ;;  %v531_v26 = vunpack.c.h.s8.bf16 %v195_v15  ;;  %v540_v28 = vunpack.c.l.s8.bf16 %v204_v23  ;;  %v548_v34 = vunpack.c.h.s8.bf16 %v204_v23  ;;  %v235_v18 = vld [vmem:[#allocation5 + $0x540] sm:$0xff] }
  0x98   :  { %v614_v23 = vunpack.c.h.s8.bf16 %v238_v12  ;;  %v82_v12 = vld [vmem:[#allocation5 + $0x78] sm:$0xff] }
  0x9a   :  { %721 = vmatpush1.bf16.msra.mxu0 %v459_v29  ;;  %885 = vmatpush1.bf16.msra.mxu1 %v461_v30  ;;  %v542_v29 = vunpack.c.l.s8.bf16 %v206_v24  ;;  %v203_v30 = vld [vmem:[#allocation5 + $0x440] sm:$0xff] }
  0x9b   :  { %722 = vmatprep.subr.bf16.mxu0 %v468_v31  ;;  %886 = vmatprep.subr.bf16.mxu1 %v470_v32  ;;  %v205_v31 = vld [vmem:[#allocation5 + $0x450] sm:$0xff]  ;;  %v539_v32 = vunpack.c.l.s8.bf16 %v203_v30 }
  0x9c   :  { %v541_v33 = vunpack.c.l.s8.bf16 %v205_v31  ;;  %v549_v40 = vunpack.c.h.s8.bf16 %v205_v31  ;;  %v243_v31 = vld [vmem:[#allocation5 + $0x580] sm:$0xff] }
  0x9e   :  { %723 = vmatpush1.bf16.msra.mxu0 %v467_v36  ;;  %887 = vmatpush1.bf16.msra.mxu1 %v469_v37  ;;  %v550_v36 = vunpack.c.h.s8.bf16 %v206_v24  ;;  %v212_v37 = vld [vmem:[#allocation5 + $0x488] sm:$0xff] }
  0x9f   :  { %724 = vmatprep.subr.bf16.mxu0 %v476_v38  ;;  %888 = vmatprep.subr.bf16.mxu1 %v478_v39  ;;  %v214_v38 = vld [vmem:[#allocation5 + $0x498] sm:$0xff]  ;;  %v547_v39 = vunpack.c.h.s8.bf16 %v203_v30  ;;  %v556_v41 = vunpack.c.l.s8.bf16 %v212_v37  ;;  %v564_v48 = vunpack.c.h.s8.bf16 %v212_v37  ;;  %v244_v24 = vld [vmem:[#allocation5 + $0x588] sm:$0xff] }
  0xa2   :  { %725 = vmatpush1.bf16.msra.mxu0 %v475_v43  ;;  %889 = vmatpush1.bf16.msra.mxu1 %v477_v44  ;;  %v558_v43 = vunpack.c.l.s8.bf16 %v214_v38  ;;  %v211_v44 = vld [vmem:[#allocation5 + $0x480] sm:$0xff] }
  0xa3   :  { %726 = vmatprep.subr.bf16.mxu0 %v484_v45  ;;  %890 = vmatprep.subr.bf16.mxu1 %v486_v46  ;;  %v213_v45 = vld [vmem:[#allocation5 + $0x490] sm:$0xff]  ;;  %v555_v46 = vunpack.c.l.s8.bf16 %v211_v44 }
  0xa4   :  { %v557_v47 = vunpack.c.l.s8.bf16 %v213_v45  ;;  %v565_v54 = vunpack.c.h.s8.bf16 %v213_v45  ;;  %v251_v45 = vld [vmem:[#allocation5 + $0x5c0] sm:$0xff] }
  0xa6   :  { %727 = vmatpush1.bf16.msra.mxu0 %v483_v49  ;;  %891 = vmatpush1.bf16.msra.mxu1 %v485_v51  ;;  %v566_v49 = vunpack.c.h.s8.bf16 %v214_v38  ;;  %v220_v51 = vld [vmem:[#allocation5 + $0x4c8] sm:$0xff] }
  0xa7   :  { %728 = vmatprep.subr.bf16.mxu0 %v492_v52  ;;  %892 = vmatprep.subr.bf16.mxu1 %v494_v53  ;;  %v222_v52 = vld [vmem:[#allocation5 + $0x4d8] sm:$0xff]  ;;  %v563_v53 = vunpack.c.h.s8.bf16 %v211_v44  ;;  %v572_v55 = vunpack.c.l.s8.bf16 %v220_v51  ;;  %v580_v61 = vunpack.c.h.s8.bf16 %v220_v51  ;;  %v252_v38 = vld [vmem:[#allocation5 + $0x5c8] sm:$0xff] }
  0xaa   :  { %729 = vmatpush1.bf16.msra.mxu0 %v491_v56  ;;  %893 = vmatpush1.bf16.msra.mxu1 %v493_v57  ;;  %v574_v56 = vunpack.c.l.s8.bf16 %v222_v52  ;;  %v219_v57 = vld [vmem:[#allocation5 + $0x4c0] sm:$0xff] }
  0xab   :  { %730 = vmatprep.subr.bf16.mxu0 %v500_v58  ;;  %894 = vmatprep.subr.bf16.mxu1 %v502_v59  ;;  %v221_v58 = vld [vmem:[#allocation5 + $0x4d0] sm:$0xff]  ;;  %v571_v59 = vunpack.c.l.s8.bf16 %v219_v57 }
  0xac   :  { %v573_v60 = vunpack.c.l.s8.bf16 %v221_v58  ;;  %v581_v2 = vunpack.c.h.s8.bf16 %v221_v58 }
  0xae   :  { %731 = vmatpush1.bf16.msra.mxu0 %v499_v62  ;;  %895 = vmatpush1.bf16.msra.mxu1 %v501_v63  ;;  %v582_v62 = vunpack.c.h.s8.bf16 %v222_v52  ;;  %v228_v63 = vld [vmem:[#allocation5 + $0x508] sm:$0xff] }
  0xaf   :  { %732 = vmatprep.subr.bf16.mxu0 %v508_v0  ;;  %896 = vmatprep.subr.bf16.mxu1 %v510_v1  ;;  %v230_v0 = vld [vmem:[#allocation5 + $0x518] sm:$0xff]  ;;  %v579_v1 = vunpack.c.h.s8.bf16 %v219_v57  ;;  %v588_v3 = vunpack.c.l.s8.bf16 %v228_v63  ;;  %v596_v9 = vunpack.c.h.s8.bf16 %v228_v63  ;;  %v260_v52 = vld [vmem:[#allocation5 + $0x600] ss:$8 sps:$4 sm:$0xff]  }
  0xb0   :  { %v652_v57 = vunpack.c.h.s8.bf16 %v260_v52 }
  0xb2   :  { %733 = vmatpush1.bf16.msra.mxu0 %v507_v4  ;;  %897 = vmatpush1.bf16.msra.mxu1 %v509_v5  ;;  %v590_v4 = vunpack.c.l.s8.bf16 %v230_v0  ;;  %v227_v5 = vld [vmem:[#allocation5 + $0x500] sm:$0xff] }
  0xb3   :  { %734 = vmatprep.subr.bf16.mxu0 %v516_v6  ;;  %898 = vmatprep.subr.bf16.mxu1 %v518_v7  ;;  %v229_v6 = vld [vmem:[#allocation5 + $0x510] sm:$0xff]  ;;  %v587_v7 = vunpack.c.l.s8.bf16 %v227_v5 }
  0xb4   :  { %v589_v8 = vunpack.c.l.s8.bf16 %v229_v6 }
  0xb6   :  { %735 = vmatpush1.bf16.msra.mxu0 %v515_v10  ;;  %899 = vmatpush1.bf16.msra.mxu1 %v517_v11  ;;  %v598_v10 = vunpack.c.h.s8.bf16 %v230_v0  ;;  %v236_v11 = vld [vmem:[#allocation5 + $0x548] sm:$0xff] }
  0xb7   :  { %745 = vmatprep.subr.bf16.mxu0 %v524_v13  ;;  %909 = vmatprep.subr.bf16.mxu1 %v526_v14  ;;  %v595_v13 = vunpack.c.h.s8.bf16 %v227_v5  ;;  %v597_v14 = vunpack.c.h.s8.bf16 %v229_v6  ;;  %v604_v15 = vunpack.c.l.s8.bf16 %v236_v11  ;;  %v73_v5 = vld [vmem:[#allocation5 + $0x30] sm:$0xff] }
  0xb9   :  { %737 = vmatmul.mubr.bf16.vlgmr.msra.gmra.mrb[0].mxu0 %v3005_v17  ;;  %901 = vmatmul.mubr.bf16.vlgmr.msra.gmra.mrb[0].mxu1 %v3005_v17 }
  0xba   :  { %746 = vmatpush1.bf16.msra.mxu0 %v523_v19  ;;  %910 = vmatpush1.bf16.msra.mxu1 %v525_v20  ;;  %v237_v19 = vld [vmem:[#allocation5 + $0x550] sm:$0xff]  ;;  %v603_v20 = vunpack.c.l.s8.bf16 %v235_v18 }
  0xbb   :  { %747 = vmatprep.subr.bf16.mxu0 %v532_v21  ;;  %911 = vmatprep.subr.bf16.mxu1 %v534_v22  ;;  %v605_v21 = vunpack.c.l.s8.bf16 %v237_v19  ;;  %v612_v22 = vunpack.c.h.s8.bf16 %v236_v11  ;;  %v80_v11 = vld [vmem:[#allocation5 + $0x68] sm:$0xff] }
  0xbc   :  { %777 = vmatprep.mubr.bf16.mxu0 %v3007_v25  ;;  %941 = vmatprep.mubr.bf16.mxu1 %v3007_v25 }
  0xbe   :  { %748 = vmatpush1.bf16.msra.mxu0 %v531_v26  ;;  %912 = vmatpush1.bf16.msra.mxu1 %v533_v27  ;;  %v246_v26 = vld [vmem:[#allocation5 + $0x598] sm:$0xff]  ;;  %v611_v27 = vunpack.c.h.s8.bf16 %v235_v18  ;;  %v79_v18 = vld [vmem:[#allocation5 + $0x60] sm:$0xff] }
  0xbf   :  { %749 = vmatprep.subr.bf16.mxu0 %v540_v28  ;;  %913 = vmatprep.subr.bf16.mxu1 %v542_v29  ;;  %v613_v28 = vunpack.c.h.s8.bf16 %v237_v19  ;;  %v620_v29 = vunpack.c.l.s8.bf16 %v244_v24  ;;  %v622_v30 = vunpack.c.l.s8.bf16 %v246_v26  ;;  %v630_v37 = vunpack.c.h.s8.bf16 %v246_v26  ;;  %v81_v19 = vld [vmem:[#allocation5 + $0x70] sm:$0xff]  ;;  %v90_v26 = vld [vmem:[#allocation5 + $0xb8] sm:$0xff] }
  0xc2   :  { %750 = vmatpush1.bf16.msra.mxu0 %v539_v32  ;;  %914 = vmatpush1.bf16.msra.mxu1 %v541_v33  ;;  %v245_v32 = vld [vmem:[#allocation5 + $0x590] sm:$0xff]  ;;  %v619_v33 = vunpack.c.l.s8.bf16 %v243_v31 }
  0xc3   :  { %751 = vmatprep.subr.bf16.mxu0 %v548_v34  ;;  %915 = vmatprep.subr.bf16.mxu1 %v550_v36  ;;  %v621_v34 = vunpack.c.l.s8.bf16 %v245_v32  ;;  %v628_v36 = vunpack.c.h.s8.bf16 %v244_v24  ;;  %v88_v24 = vld [vmem:[#allocation5 + $0xa8] sm:$0xff] }
  0xc6   :  { %752 = vmatpush1.bf16.msra.mxu0 %v547_v39  ;;  %916 = vmatpush1.bf16.msra.mxu1 %v549_v40  ;;  %v254_v39 = vld [vmem:[#allocation5 + $0x5d8] sm:$0xff]  ;;  %v627_v40 = vunpack.c.h.s8.bf16 %v243_v31  ;;  %v87_v31 = vld [vmem:[#allocation5 + $0xa0] sm:$0xff] }
  0xc7   :  { %753 = vmatprep.subr.bf16.mxu0 %v556_v41  ;;  %917 = vmatprep.subr.bf16.mxu1 %v558_v43  ;;  %v629_v41 = vunpack.c.h.s8.bf16 %v245_v32  ;;  %v636_v43 = vunpack.c.l.s8.bf16 %v252_v38  ;;  %v638_v44 = vunpack.c.l.s8.bf16 %v254_v39  ;;  %v646_v51 = vunpack.c.h.s8.bf16 %v254_v39 }
  0xc8   :  { %v303_v32 = vunpack.c.l.s8.bf16 %v87_v31  ;;  %v311_v39 = vunpack.c.h.s8.bf16 %v87_v31 }
  0xca   :  { %754 = vmatpush1.bf16.msra.mxu0 %v555_v46  ;;  %918 = vmatpush1.bf16.msra.mxu1 %v557_v47  ;;  %v253_v46 = vld [vmem:[#allocation5 + $0x5d0] sm:$0xff]  ;;  %v635_v47 = vunpack.c.l.s8.bf16 %v251_v45 }
  0xcb   :  { %755 = vmatprep.subr.bf16.mxu0 %v564_v48  ;;  %919 = vmatprep.subr.bf16.mxu1 %v566_v49  ;;  %v637_v48 = vunpack.c.l.s8.bf16 %v253_v46  ;;  %v644_v49 = vunpack.c.h.s8.bf16 %v252_v38  ;;  %v98_v38 = vld [vmem:[#allocation5 + $0xf8] sm:$0xff] }
  0xce   :  { %756 = vmatpush1.bf16.msra.mxu0 %v563_v53  ;;  %920 = vmatpush1.bf16.msra.mxu1 %v565_v54  ;;  %v262_v53 = vld [vmem:[#allocation5 + $0x610] ss:$8 sps:$4 sm:$0xff]   ;;  %v643_v54 = vunpack.c.h.s8.bf16 %v251_v45 }
  0xcf   :  { %757 = vmatprep.subr.bf16.mxu0 %v572_v55  ;;  %921 = vmatprep.subr.bf16.mxu1 %v574_v56  ;;  %v645_v55 = vunpack.c.h.s8.bf16 %v253_v46  ;;  %v57_v56 = vld [vmem:[#allocation2 + $0x20] sm:$0xff]  ;;  %v654_v58 = vunpack.c.h.s8.bf16 %v262_v53  ;;  %v653_v63 = vunpack.c.l.s8.bf16 %v262_v53  ;;  %v97_v45 = vld [vmem:[#allocation5 + $0xf0] sm:$0xff] }
  0xd2   :  { %758 = vmatpush1.bf16.msra.mxu0 %v571_v59  ;;  %922 = vmatpush1.bf16.msra.mxu1 %v573_v60  ;;  %v3013_v59 = vpack.c.bf16 %v57_v56, %v57_v56  ;;  %v72_v60 = vld [vmem:[#allocation5 + $0x28] sm:$0xff] }
  0xd3   :  { %759 = vmatprep.subr.bf16.mxu0 %v580_v61  ;;  %923 = vmatprep.subr.bf16.mxu1 %v582_v62  ;;  %v74_v61 = vld [vmem:[#allocation5 + $0x38] sm:$0xff]  ;;  %v651_v62 = vunpack.c.l.s8.bf16 %v260_v52  ;;  %v272_v0 = vunpack.c.l.s8.bf16 %v72_v60 }
  0xd4   :  { %v106_v52 = vld [vmem:[#allocation5 + $0x138] sm:$0xff] }
  0xd5   :  { %v338_v56 = vunpack.c.l.s8.bf16 %v106_v52 }
  0xd6   :  { %760 = vmatpush1.bf16.msra.mxu0 %v579_v1  ;;  %924 = vmatpush1.bf16.msra.mxu1 %v581_v2  ;;  %v274_v1 = vunpack.c.l.s8.bf16 %v74_v61  ;;  %v2933_v2 = vmov 0  }
  0xd7   :  { %761 = vmatprep.subr.bf16.mxu0 %v588_v3  ;;  %925 = vmatprep.subr.bf16.mxu1 %v590_v4  ;;  %v59_v3 = vld [vmem:[#allocation2 + $0x30] sm:$0xff]  ;;  %v71_v4 = vld [vmem:[#allocation5 + $0x20] sm:$0xff] }
  0xd8   :  { %v3019_v6 = vpack.c.bf16 %v59_v3, %v59_v3 }
  0xda   :  { %762 = vmatpush1.bf16.msra.mxu0 %v587_v7  ;;  %926 = vmatpush1.bf16.msra.mxu1 %v589_v8  ;;  %v271_v7 = vunpack.c.l.s8.bf16 %v71_v4  ;;  %v273_v8 = vunpack.c.l.s8.bf16 %v73_v5 }
  0xdb   :  { %763 = vmatprep.subr.bf16.mxu0 %v596_v9  ;;  %927 = vmatprep.subr.bf16.mxu1 %v598_v10  ;;  %v280_v9 = vunpack.c.h.s8.bf16 %v72_v60  ;;  %v282_v10 = vunpack.c.h.s8.bf16 %v74_v61 }
  0xde   :  { %764 = vmatpush1.bf16.msra.mxu0 %v595_v13  ;;  %928 = vmatpush1.bf16.msra.mxu1 %v597_v14  ;;  %v279_v13 = vunpack.c.h.s8.bf16 %v71_v4  ;;  %v281_v14 = vunpack.c.h.s8.bf16 %v73_v5 }
  0xdf   :  { %765 = vmatprep.subr.bf16.mxu0 %v604_v15  ;;  %929 = vmatprep.subr.bf16.mxu1 %v606_v16  ;;  %v288_v15 = vunpack.c.l.s8.bf16 %v80_v11  ;;  %v290_v16 = vunpack.c.l.s8.bf16 %v82_v12 }
  0xe2   :  { %766 = vmatpush1.bf16.msra.mxu0 %v603_v20  ;;  %930 = vmatpush1.bf16.msra.mxu1 %v605_v21  ;;  %v287_v20 = vunpack.c.l.s8.bf16 %v79_v18  ;;  %v289_v21 = vunpack.c.l.s8.bf16 %v81_v19 }
  0xe3   :  { %767 = vmatprep.subr.bf16.mxu0 %v612_v22  ;;  %931 = vmatprep.subr.bf16.mxu1 %v614_v23  ;;  %v296_v22 = vunpack.c.h.s8.bf16 %v80_v11  ;;  %v298_v23 = vunpack.c.h.s8.bf16 %v82_v12 }
  0xe6   :  { %768 = vmatpush1.bf16.msra.mxu0 %v611_v27  ;;  %932 = vmatpush1.bf16.msra.mxu1 %v613_v28  ;;  %v295_v27 = vunpack.c.h.s8.bf16 %v79_v18  ;;  %v297_v28 = vunpack.c.h.s8.bf16 %v81_v19 }
  0xe7   :  { %769 = vmatprep.subr.bf16.mxu0 %v620_v29  ;;  %933 = vmatprep.subr.bf16.mxu1 %v622_v30  ;;  %v304_v29 = vunpack.c.l.s8.bf16 %v88_v24  ;;  %v306_v30 = vunpack.c.l.s8.bf16 %v90_v26 }
  0xea   :  { %770 = vmatpush1.bf16.msra.mxu0 %v619_v33  ;;  %934 = vmatpush1.bf16.msra.mxu1 %v621_v34  ;;  %v312_v34 = vunpack.c.h.s8.bf16 %v88_v24 }
  0xeb   :  { %771 = vmatprep.subr.bf16.mxu0 %v628_v36  ;;  %935 = vmatprep.subr.bf16.mxu1 %v630_v37  ;;  %v314_v36 = vunpack.c.h.s8.bf16 %v90_v26  ;;  %v96_v37 = vld [vmem:[#allocation5 + $0xe8] sm:$0xff] }
  0xee   :  { %772 = vmatpush1.bf16.msra.mxu0 %v627_v40  ;;  %936 = vmatpush1.bf16.msra.mxu1 %v629_v41  ;;  %v320_v41 = vunpack.c.l.s8.bf16 %v96_v37 }
  0xef   :  { %773 = vmatprep.subr.bf16.mxu0 %v636_v43  ;;  %937 = vmatprep.subr.bf16.mxu1 %v638_v44  ;;  %v322_v43 = vunpack.c.l.s8.bf16 %v98_v38  ;;  %v95_v44 = vld [vmem:[#allocation5 + $0xe0] sm:$0xff] }
  0xf0   :  { %v319_v46 = vunpack.c.l.s8.bf16 %v95_v44  ;;  %v327_v53 = vunpack.c.h.s8.bf16 %v95_v44 }
  0xf2   :  { %774 = vmatpush1.bf16.msra.mxu0 %v635_v47  ;;  %938 = vmatpush1.bf16.msra.mxu1 %v637_v48  ;;  %v321_v47 = vunpack.c.l.s8.bf16 %v97_v45  ;;  %v328_v48 = vunpack.c.h.s8.bf16 %v96_v37 }
  0xf3   :  { %775 = vmatprep.subr.bf16.mxu0 %v644_v49  ;;  %939 = vmatprep.subr.bf16.mxu1 %v646_v51  ;;  %v330_v49 = vunpack.c.h.s8.bf16 %v98_v38  ;;  %v104_v51 = vld [vmem:[#allocation5 + $0x128] sm:$0xff] }
  0xf6   :  { %776 = vmatpush1.bf16.msra.mxu0 %v643_v54  ;;  %940 = vmatpush1.bf16.msra.mxu1 %v645_v55  ;;  %v329_v54 = vunpack.c.h.s8.bf16 %v97_v45  ;;  %v336_v55 = vunpack.c.l.s8.bf16 %v104_v51 }
  0xf7   :  { %786 = vmatprep.subr.bf16.mxu0 %v652_v57  ;;  %950 = vmatprep.subr.bf16.mxu1 %v654_v58  ;;  %v103_v57 = vld [vmem:[#allocation5 + $0x120] sm:$0xff]  ;;  %v105_v58 = vld [vmem:[#allocation5 + $0x130] sm:$0xff] }
  0xf8   :  { %v335_v60 = vunpack.c.l.s8.bf16 %v103_v57  ;;  %v337_v61 = vunpack.c.l.s8.bf16 %v105_v58  ;;  %v343_v3 = vunpack.c.h.s8.bf16 %v103_v57  ;;  %v345_v4 = vunpack.c.h.s8.bf16 %v105_v58 }
  0xf9   :  { %778 = vmatmul.mubr.bf16.vlgmr.msra.gmra.mrb[0].mxu0 %v3013_v59  ;;  %942 = vmatmul.mubr.bf16.vlgmr.msra.gmra.mrb[0].mxu1 %v3013_v59 }
  0xfa   :  { %787 = vmatpush1.bf16.msra.mxu0 %v651_v62  ;;  %951 = vmatpush1.bf16.msra.mxu1 %v653_v63  ;;  %v344_v62 = vunpack.c.h.s8.bf16 %v104_v51  ;;  %v346_v63 = vunpack.c.h.s8.bf16 %v106_v52 }
  0xfb   :  { %818 = vmatprep.mubr.bf16.mxu0 %v2933_v2  ;;  %982 = vmatprep.mubr.bf16.mxu1 %v2933_v2 }
  0xfc   :  { %991 = vmatprep.subr.bf16.mxu0 %v272_v0  ;;  %1155 = vmatprep.subr.bf16.mxu1 %v274_v1  ;;  %v112_v0 = vld [vmem:[#allocation5 + $0x168] sm:$0xff]  ;;  %v114_v1 = vld [vmem:[#allocation5 + $0x178] sm:$0xff] }
  0xfd   :  { %v352_v5 = vunpack.c.l.s8.bf16 %v112_v0  ;;  %v360_v12 = vunpack.c.h.s8.bf16 %v112_v0 }
 0x105   :  { %2672 = vmatmul.mubr.msk.bf16.vlgmr.msra.gmra.mrb[0].mxu0 %vm659_vm0, %v3019_v6  ;;  %2673 = vmatmul.mubr.msk.bf16.vlgmr.msra.gmra.mrb[0].mxu1 %vm659_vm0, %v3019_v6 }
 0x106   :  { %992 = vmatpush1.bf16.msra.mxu0 %v271_v7  ;;  %1156 = vmatpush1.bf16.msra.mxu1 %v273_v8  ;;  %v354_v7 = vunpack.c.l.s8.bf16 %v114_v1  ;;  %v111_v8 = vld [vmem:[#allocation5 + $0x160] sm:$0xff] }
 0x107   :  { %993 = vmatprep.subr.bf16.mxu0 %v280_v9  ;;  %1157 = vmatprep.subr.bf16.mxu1 %v282_v10  ;;  %v113_v9 = vld [vmem:[#allocation5 + $0x170] sm:$0xff]  ;;  %v351_v10 = vunpack.c.l.s8.bf16 %v111_v8 }
 0x108   :  { %1023 = vmatprep.mubr.bf16.mxu0 %v2993_v35  ;;  %1187 = vmatprep.mubr.bf16.mxu1 %v2993_v35  ;;  %v89_v35 = vld [vmem:[#allocation5 + $0xb0] sm:$0xff]  ;;  %v353_v11 = vunpack.c.l.s8.bf16 %v113_v9  ;;  %v361_v18 = vunpack.c.h.s8.bf16 %v113_v9 }
 0x109   :  { %v305_v33 = vunpack.c.l.s8.bf16 %v89_v35  ;;  %v313_v40 = vunpack.c.h.s8.bf16 %v89_v35 }
 0x10a   :  { %994 = vmatpush1.bf16.msra.mxu0 %v279_v13  ;;  %1158 = vmatpush1.bf16.msra.mxu1 %v281_v14  ;;  %v362_v13 = vunpack.c.h.s8.bf16 %v114_v1  ;;  %v120_v14 = vld [vmem:[#allocation5 + $0x1a8] sm:$0xff] }
 0x10b   :  { %995 = vmatprep.subr.bf16.mxu0 %v288_v15  ;;  %1159 = vmatprep.subr.bf16.mxu1 %v290_v16  ;;  %v122_v15 = vld [vmem:[#allocation5 + $0x1b8] sm:$0xff]  ;;  %v359_v16 = vunpack.c.h.s8.bf16 %v111_v8  ;;  %v368_v19 = vunpack.c.l.s8.bf16 %v120_v14  ;;  %v376_v26 = vunpack.c.h.s8.bf16 %v120_v14 }
 0x10e   :  { %996 = vmatpush1.bf16.msra.mxu0 %v287_v20  ;;  %1160 = vmatpush1.bf16.msra.mxu1 %v289_v21  ;;  %v370_v20 = vunpack.c.l.s8.bf16 %v122_v15  ;;  %v119_v21 = vld [vmem:[#allocation5 + $0x1a0] sm:$0xff] }
 0x10f   :  { %997 = vmatprep.subr.bf16.mxu0 %v296_v22  ;;  %1161 = vmatprep.subr.bf16.mxu1 %v298_v23  ;;  %v121_v22 = vld [vmem:[#allocation5 + $0x1b0] sm:$0xff]  ;;  %v367_v23 = vunpack.c.l.s8.bf16 %v119_v21 }
 0x110   :  { %v369_v24 = vunpack.c.l.s8.bf16 %v121_v22  ;;  %v377_v31 = vunpack.c.h.s8.bf16 %v121_v22  ;;  %v159_v22 = vld [vmem:[#allocation5 + $0x2e0] sm:$0xff] }
 0x112   :  { %998 = vmatpush1.bf16.msra.mxu0 %v295_v27  ;;  %1162 = vmatpush1.bf16.msra.mxu1 %v297_v28  ;;  %v378_v27 = vunpack.c.h.s8.bf16 %v122_v15  ;;  %v128_v28 = vld [vmem:[#allocation5 + $0x1e8] sm:$0xff] }
 0x113   :  { %999 = vmatprep.subr.bf16.mxu0 %v304_v29  ;;  %1163 = vmatprep.subr.bf16.mxu1 %v306_v30  ;;  %v130_v29 = vld [vmem:[#allocation5 + $0x1f8] sm:$0xff]  ;;  %v375_v30 = vunpack.c.h.s8.bf16 %v119_v21  ;;  %v384_v35 = vunpack.c.l.s8.bf16 %v128_v28  ;;  %v392_v38 = vunpack.c.h.s8.bf16 %v128_v28  ;;  %v160_v15 = vld [vmem:[#allocation5 + $0x2e8] sm:$0xff] }
 0x116   :  { %1000 = vmatpush1.bf16.msra.mxu0 %v303_v32  ;;  %1164 = vmatpush1.bf16.msra.mxu1 %v305_v33  ;;  %v386_v32 = vunpack.c.l.s8.bf16 %v130_v29  ;;  %v127_v33 = vld [vmem:[#allocation5 + $0x1e0] sm:$0xff] }
 0x117   :  { %1001 = vmatprep.subr.bf16.mxu0 %v312_v34  ;;  %1165 = vmatprep.subr.bf16.mxu1 %v314_v36  ;;  %v129_v34 = vld [vmem:[#allocation5 + $0x1f0] sm:$0xff]  ;;  %v383_v36 = vunpack.c.l.s8.bf16 %v127_v33 }
 0x118   :  { %v385_v37 = vunpack.c.l.s8.bf16 %v129_v34  ;;  %v393_v44 = vunpack.c.h.s8.bf16 %v129_v34  ;;  %v167_v34 = vld [vmem:[#allocation5 + $0x320] sm:$0xff] }
 0x11a   :  { %1002 = vmatpush1.bf16.msra.mxu0 %v311_v39  ;;  %1166 = vmatpush1.bf16.msra.mxu1 %v313_v40  ;;  %v394_v39 = vunpack.c.h.s8.bf16 %v130_v29  ;;  %v136_v40 = vld [vmem:[#allocation5 + $0x228] sm:$0xff] }
 0x11b   :  { %1003 = vmatprep.subr.bf16.mxu0 %v320_v41  ;;  %1167 = vmatprep.subr.bf16.mxu1 %v322_v43  ;;  %v138_v41 = vld [vmem:[#allocation5 + $0x238] sm:$0xff]  ;;  %v391_v43 = vunpack.c.h.s8.bf16 %v127_v33  ;;  %v400_v45 = vunpack.c.l.s8.bf16 %v136_v40  ;;  %v408_v52 = vunpack.c.h.s8.bf16 %v136_v40  ;;  %v168_v29 = vld [vmem:[#allocation5 + $0x328] sm:$0xff] }
 0x11e   :  { %1004 = vmatpush1.bf16.msra.mxu0 %v319_v46  ;;  %1168 = vmatpush1.bf16.msra.mxu1 %v321_v47  ;;  %v402_v46 = vunpack.c.l.s8.bf16 %v138_v41  ;;  %v135_v47 = vld [vmem:[#allocation5 + $0x220] sm:$0xff] }
 0x11f   :  { %1005 = vmatprep.subr.bf16.mxu0 %v328_v48  ;;  %1169 = vmatprep.subr.bf16.mxu1 %v330_v49  ;;  %v137_v48 = vld [vmem:[#allocation5 + $0x230] sm:$0xff]  ;;  %v399_v49 = vunpack.c.l.s8.bf16 %v135_v47 }
 0x120   :  { %v401_v51 = vunpack.c.l.s8.bf16 %v137_v48  ;;  %v409_v57 = vunpack.c.h.s8.bf16 %v137_v48  ;;  %v175_v48 = vld [vmem:[#allocation5 + $0x360] sm:$0xff] }
 0x122   :  { %1006 = vmatpush1.bf16.msra.mxu0 %v327_v53  ;;  %1170 = vmatpush1.bf16.msra.mxu1 %v329_v54  ;;  %v410_v53 = vunpack.c.h.s8.bf16 %v138_v41  ;;  %v144_v54 = vld [vmem:[#allocation5 + $0x268] sm:$0xff] }
 0x123   :  { %1007 = vmatprep.subr.bf16.mxu0 %v336_v55  ;;  %1171 = vmatprep.subr.bf16.mxu1 %v338_v56  ;;  %v146_v55 = vld [vmem:[#allocation5 + $0x278] sm:$0xff]  ;;  %v407_v56 = vunpack.c.h.s8.bf16 %v135_v47  ;;  %v416_v58 = vunpack.c.l.s8.bf16 %v144_v54  ;;  %v176_v41 = vld [vmem:[#allocation5 + $0x368] sm:$0xff] }
 0x124   :  { %v426_v1 = vunpack.c.h.s8.bf16 %v146_v55 }
 0x126   :  { %1008 = vmatpush1.bf16.msra.mxu0 %v335_v60  ;;  %1172 = vmatpush1.bf16.msra.mxu1 %v337_v61  ;;  %v418_v60 = vunpack.c.l.s8.bf16 %v146_v55  ;;  %v143_v61 = vld [vmem:[#allocation5 + $0x260] sm:$0xff]  ;;  %v184_v55 = vld [vmem:[#allocation5 + $0x3a8] sm:$0xff] }
 0x127   :  { %1009 = vmatprep.subr.bf16.mxu0 %v344_v62  ;;  %1173 = vmatprep.subr.bf16.mxu1 %v346_v63  ;;  %v145_v62 = vld [vmem:[#allocation5 + $0x270] sm:$0xff]  ;;  %v415_v63 = vunpack.c.l.s8.bf16 %v143_v61 }
 0x128   :  { %v417_v0 = vunpack.c.l.s8.bf16 %v145_v62 }
 0x12a   :  { %1010 = vmatpush1.bf16.msra.mxu0 %v343_v3  ;;  %1174 = vmatpush1.bf16.msra.mxu1 %v345_v4  ;;  %v152_v3 = vld [vmem:[#allocation5 + $0x2a8] sm:$0xff]  ;;  %v154_v4 = vld [vmem:[#allocation5 + $0x2b8] sm:$0xff] }
 0x12b   :  { %1011 = vmatprep.subr.bf16.mxu0 %v352_v5  ;;  %1175 = vmatprep.subr.bf16.mxu1 %v354_v7  ;;  %v423_v5 = vunpack.c.h.s8.bf16 %v143_v61  ;;  %v425_v7 = vunpack.c.h.s8.bf16 %v145_v62  ;;  %v432_v8 = vunpack.c.l.s8.bf16 %v152_v3  ;;  %v434_v9 = vunpack.c.l.s8.bf16 %v154_v4  ;;  %v183_v62 = vld [vmem:[#allocation5 + $0x3a0] sm:$0xff] }
 0x12c   :  { %v442_v14 = vunpack.c.h.s8.bf16 %v154_v4  ;;  %v192_v4 = vld [vmem:[#allocation5 + $0x3e8] sm:$0xff] }
 0x12e   :  { %1012 = vmatpush1.bf16.msra.mxu0 %v351_v10  ;;  %1176 = vmatpush1.bf16.msra.mxu1 %v353_v11  ;;  %v151_v10 = vld [vmem:[#allocation5 + $0x2a0] sm:$0xff] }
 0x12f   :  { %1013 = vmatprep.subr.bf16.mxu0 %v360_v12  ;;  %1177 = vmatprep.subr.bf16.mxu1 %v362_v13  ;;  %v431_v11 = vunpack.c.l.s8.bf16 %v151_v10  ;;  %v440_v13 = vunpack.c.h.s8.bf16 %v152_v3 }
 0x132   :  { %1014 = vmatpush1.bf16.msra.mxu0 %v359_v16  ;;  %1178 = vmatpush1.bf16.msra.mxu1 %v361_v18  ;;  %v162_v16 = vld [vmem:[#allocation5 + $0x2f8] sm:$0xff]  ;;  %v439_v18 = vunpack.c.h.s8.bf16 %v151_v10 }
 0x133   :  { %1015 = vmatprep.subr.bf16.mxu0 %v368_v19  ;;  %1179 = vmatprep.subr.bf16.mxu1 %v370_v20  ;;  %v448_v20 = vunpack.c.l.s8.bf16 %v160_v15  ;;  %v450_v21 = vunpack.c.l.s8.bf16 %v162_v16  ;;  %v458_v28 = vunpack.c.h.s8.bf16 %v162_v16  ;;  %v200_v16 = vld [vmem:[#allocation5 + $0x428] sm:$0xff] }
 0x136   :  { %1016 = vmatpush1.bf16.msra.mxu0 %v367_v23  ;;  %1180 = vmatpush1.bf16.msra.mxu1 %v369_v24  ;;  %v161_v23 = vld [vmem:[#allocation5 + $0x2f0] sm:$0xff]  ;;  %v447_v24 = vunpack.c.l.s8.bf16 %v159_v22 }
 0x137   :  { %1017 = vmatprep.subr.bf16.mxu0 %v376_v26  ;;  %1181 = vmatprep.subr.bf16.mxu1 %v378_v27  ;;  %v449_v26 = vunpack.c.l.s8.bf16 %v161_v23  ;;  %v456_v27 = vunpack.c.h.s8.bf16 %v160_v15 }
 0x13a   :  { %1018 = vmatpush1.bf16.msra.mxu0 %v375_v30  ;;  %1182 = vmatpush1.bf16.msra.mxu1 %v377_v31  ;;  %v170_v30 = vld [vmem:[#allocation5 + $0x338] sm:$0xff]  ;;  %v455_v31 = vunpack.c.h.s8.bf16 %v159_v22 }
 0x13b   :  { %1019 = vmatprep.subr.bf16.mxu0 %v384_v35  ;;  %1183 = vmatprep.subr.bf16.mxu1 %v386_v32  ;;  %v457_v35 = vunpack.c.h.s8.bf16 %v161_v23  ;;  %v464_v32 = vunpack.c.l.s8.bf16 %v168_v29  ;;  %v466_v33 = vunpack.c.l.s8.bf16 %v170_v30  ;;  %v474_v40 = vunpack.c.h.s8.bf16 %v170_v30  ;;  %v199_v23 = vld [vmem:[#allocation5 + $0x420] sm:$0xff]  ;;  %v208_v30 = vld [vmem:[#allocation5 + $0x468] sm:$0xff] }
 0x13e   :  { %1020 = vmatpush1.bf16.msra.mxu0 %v383_v36  ;;  %1184 = vmatpush1.bf16.msra.mxu1 %v385_v37  ;;  %v169_v36 = vld [vmem:[#allocation5 + $0x330] sm:$0xff]  ;;  %v463_v37 = vunpack.c.l.s8.bf16 %v167_v34 }
 0x13f   :  { %1021 = vmatprep.subr.bf16.mxu0 %v392_v38  ;;  %1185 = vmatprep.subr.bf16.mxu1 %v394_v39  ;;  %v465_v38 = vunpack.c.l.s8.bf16 %v169_v36  ;;  %v472_v39 = vunpack.c.h.s8.bf16 %v168_v29 }
 0x142   :  { %1022 = vmatpush1.bf16.msra.mxu0 %v391_v43  ;;  %1186 = vmatpush1.bf16.msra.mxu1 %v393_v44  ;;  %v178_v43 = vld [vmem:[#allocation5 + $0x378] sm:$0xff]  ;;  %v471_v44 = vunpack.c.h.s8.bf16 %v167_v34 }
 0x143   :  { %1032 = vmatprep.subr.bf16.mxu0 %v400_v45  ;;  %1196 = vmatprep.subr.bf16.mxu1 %v402_v46  ;;  %v473_v45 = vunpack.c.h.s8.bf16 %v169_v36  ;;  %v480_v46 = vunpack.c.l.s8.bf16 %v176_v41  ;;  %v482_v47 = vunpack.c.l.s8.bf16 %v178_v43  ;;  %v207_v36 = vld [vmem:[#allocation5 + $0x460] sm:$0xff] }
 0x145   :  { %1024 = vmatmul.mubr.bf16.vlgmr.msra.gmra.mrb[4].mxu0 %v2997_v42  ;;  %1188 = vmatmul.mubr.bf16.vlgmr.msra.gmra.mrb[4].mxu1 %v2997_v42  ;;  %v424_v42 = vunpack.c.h.s8.bf16 %v144_v54  ;;  %v490_v54 = vunpack.c.h.s8.bf16 %v178_v43  ;;  %v218_v43 = vld [vmem:[#allocation5 + $0x4b8] sm:$0xff] }
 0x146   :  { %1033 = vmatpush1.bf16.msra.mxu0 %v399_v49  ;;  %1197 = vmatpush1.bf16.msra.mxu1 %v401_v51  ;;  %v177_v49 = vld [vmem:[#allocation5 + $0x370] sm:$0xff]  ;;  %v479_v51 = vunpack.c.l.s8.bf16 %v175_v48 }
 0x147   :  { %1034 = vmatprep.subr.bf16.mxu0 %v408_v52  ;;  %1198 = vmatprep.subr.bf16.mxu1 %v410_v53  ;;  %v481_v52 = vunpack.c.l.s8.bf16 %v177_v49  ;;  %v488_v53 = vunpack.c.h.s8.bf16 %v176_v41  ;;  %v216_v41 = vld [vmem:[#allocation5 + $0x4a8] sm:$0xff] }
 0x148   :  { %1064 = vmatprep.mubr.bf16.mxu0 %v2999_v50  ;;  %1228 = vmatprep.mubr.bf16.mxu1 %v2999_v50  ;;  %v153_v50 = vld [vmem:[#allocation5 + $0x2b0] sm:$0xff] }
 0x149   :  { %v433_v12 = vunpack.c.l.s8.bf16 %v153_v50  ;;  %v441_v19 = vunpack.c.h.s8.bf16 %v153_v50  ;;  %v191_v50 = vld [vmem:[#allocation5 + $0x3e0] sm:$0xff] }
 0x14a   :  { %1035 = vmatpush1.bf16.msra.mxu0 %v407_v56  ;;  %1199 = vmatpush1.bf16.msra.mxu1 %v409_v57  ;;  %v186_v56 = vld [vmem:[#allocation5 + $0x3b8] sm:$0xff]  ;;  %v487_v57 = vunpack.c.h.s8.bf16 %v175_v48  ;;  %v215_v48 = vld [vmem:[#allocation5 + $0x4a0] sm:$0xff] }
 0x14b   :  { %1036 = vmatprep.subr.bf16.mxu0 %v416_v58  ;;  %1200 = vmatprep.subr.bf16.mxu1 %v418_v60  ;;  %v489_v58 = vunpack.c.h.s8.bf16 %v177_v49  ;;  %v496_v60 = vunpack.c.l.s8.bf16 %v184_v55  ;;  %v498_v61 = vunpack.c.l.s8.bf16 %v186_v56  ;;  %v506_v3 = vunpack.c.h.s8.bf16 %v186_v56 }
 0x14c   :  { %v559_v49 = vunpack.c.l.s8.bf16 %v215_v48  ;;  %v567_v56 = vunpack.c.h.s8.bf16 %v215_v48  ;;  %v257_v48 = vld [vmem:[#allocation5 + $0x5f0] sm:$0xff] }
 0x14e   :  { %1037 = vmatpush1.bf16.msra.mxu0 %v415_v63  ;;  %1201 = vmatpush1.bf16.msra.mxu1 %v417_v0  ;;  %v185_v63 = vld [vmem:[#allocation5 + $0x3b0] sm:$0xff]  ;;  %v495_v0 = vunpack.c.l.s8.bf16 %v183_v62 }
 0x14f   :  { %1038 = vmatprep.subr.bf16.mxu0 %v424_v42  ;;  %1202 = vmatprep.subr.bf16.mxu1 %v426_v1  ;;  %v497_v42 = vunpack.c.l.s8.bf16 %v185_v63  ;;  %v504_v1 = vunpack.c.h.s8.bf16 %v184_v55  ;;  %v226_v55 = vld [vmem:[#allocation5 + $0x4f8] sm:$0xff] }
 0x152   :  { %1039 = vmatpush1.bf16.msra.mxu0 %v423_v5  ;;  %1203 = vmatpush1.bf16.msra.mxu1 %v425_v7  ;;  %v194_v5 = vld [vmem:[#allocation5 + $0x3f8] sm:$0xff]  ;;  %v503_v7 = vunpack.c.h.s8.bf16 %v183_v62  ;;  %v225_v62 = vld [vmem:[#allocation5 + $0x4f0] sm:$0xff] }
 0x153   :  { %1040 = vmatprep.subr.bf16.mxu0 %v432_v8  ;;  %1204 = vmatprep.subr.bf16.mxu1 %v434_v9  ;;  %v505_v8 = vunpack.c.h.s8.bf16 %v185_v63  ;;  %v512_v9 = vunpack.c.l.s8.bf16 %v192_v4  ;;  %v514_v10 = vunpack.c.l.s8.bf16 %v194_v5  ;;  %v522_v15 = vunpack.c.h.s8.bf16 %v194_v5 }
 0x156   :  { %1041 = vmatpush1.bf16.msra.mxu0 %v431_v11  ;;  %1205 = vmatpush1.bf16.msra.mxu1 %v433_v12  ;;  %v193_v11 = vld [vmem:[#allocation5 + $0x3f0] sm:$0xff]  ;;  %v511_v12 = vunpack.c.l.s8.bf16 %v191_v50 }
 0x157   :  { %1042 = vmatprep.subr.bf16.mxu0 %v440_v13  ;;  %1206 = vmatprep.subr.bf16.mxu1 %v442_v14  ;;  %v513_v13 = vunpack.c.l.s8.bf16 %v193_v11  ;;  %v520_v14 = vunpack.c.h.s8.bf16 %v192_v4  ;;  %v234_v4 = vld [vmem:[#allocation5 + $0x538] sm:$0xff] }
 0x15a   :  { %1043 = vmatpush1.bf16.msra.mxu0 %v439_v18  ;;  %1207 = vmatpush1.bf16.msra.mxu1 %v441_v19  ;;  %v202_v18 = vld [vmem:[#allocation5 + $0x438] sm:$0xff]  ;;  %v519_v19 = vunpack.c.h.s8.bf16 %v191_v50  ;;  %v233_v50 = vld [vmem:[#allocation5 + $0x530] sm:$0xff] }
 0x15b   :  { %1044 = vmatprep.subr.bf16.mxu0 %v448_v20  ;;  %1208 = vmatprep.subr.bf16.mxu1 %v450_v21  ;;  %v521_v20 = vunpack.c.h.s8.bf16 %v193_v11  ;;  %v528_v21 = vunpack.c.l.s8.bf16 %v200_v16  ;;  %v530_v22 = vunpack.c.l.s8.bf16 %v202_v18  ;;  %v538_v29 = vunpack.c.h.s8.bf16 %v202_v18 }
 0x15e   :  { %1045 = vmatpush1.bf16.msra.mxu0 %v447_v24  ;;  %1209 = vmatpush1.bf16.msra.mxu1 %v449_v26  ;;  %v201_v24 = vld [vmem:[#allocation5 + $0x430] sm:$0xff]  ;;  %v527_v26 = vunpack.c.l.s8.bf16 %v199_v23 }
 0x15f   :  { %1046 = vmatprep.subr.bf16.mxu0 %v456_v27  ;;  %1210 = vmatprep.subr.bf16.mxu1 %v458_v28  ;;  %v529_v27 = vunpack.c.l.s8.bf16 %v201_v24  ;;  %v536_v28 = vunpack.c.h.s8.bf16 %v200_v16  ;;  %v242_v16 = vld [vmem:[#allocation5 + $0x578] sm:$0xff] }
 0x162   :  { %1047 = vmatpush1.bf16.msra.mxu0 %v455_v31  ;;  %1211 = vmatpush1.bf16.msra.mxu1 %v457_v35  ;;  %v210_v31 = vld [vmem:[#allocation5 + $0x478] sm:$0xff]  ;;  %v535_v35 = vunpack.c.h.s8.bf16 %v199_v23  ;;  %v241_v23 = vld [vmem:[#allocation5 + $0x570] sm:$0xff] }
 0x163   :  { %1048 = vmatprep.subr.bf16.mxu0 %v464_v32  ;;  %1212 = vmatprep.subr.bf16.mxu1 %v466_v33  ;;  %v537_v32 = vunpack.c.h.s8.bf16 %v201_v24  ;;  %v544_v33 = vunpack.c.l.s8.bf16 %v208_v30  ;;  %v546_v34 = vunpack.c.l.s8.bf16 %v210_v31 }
 0x166   :  { %1049 = vmatpush1.bf16.msra.mxu0 %v463_v37  ;;  %1213 = vmatpush1.bf16.msra.mxu1 %v465_v38  ;;  %v209_v37 = vld [vmem:[#allocation5 + $0x470] sm:$0xff]  ;;  %v543_v38 = vunpack.c.l.s8.bf16 %v207_v36 }
 0x167   :  { %1050 = vmatprep.subr.bf16.mxu0 %v472_v39  ;;  %1214 = vmatprep.subr.bf16.mxu1 %v474_v40  ;;  %v545_v39 = vunpack.c.l.s8.bf16 %v209_v37  ;;  %v554_v40 = vunpack.c.h.s8.bf16 %v210_v31 }
 0x16a   :  { %1051 = vmatpush1.bf16.msra.mxu0 %v471_v44  ;;  %1215 = vmatpush1.bf16.msra.mxu1 %v473_v45  ;;  %v551_v44 = vunpack.c.h.s8.bf16 %v207_v36  ;;  %v553_v45 = vunpack.c.h.s8.bf16 %v209_v37  ;;  %v249_v36 = vld [vmem:[#allocation5 + $0x5b0] sm:$0xff] }
 0x16b   :  { %1052 = vmatprep.subr.bf16.mxu0 %v480_v46  ;;  %1216 = vmatprep.subr.bf16.mxu1 %v482_v47  ;;  %v560_v46 = vunpack.c.l.s8.bf16 %v216_v41  ;;  %v562_v47 = vunpack.c.l.s8.bf16 %v218_v43 }
 0x16e   :  { %1053 = vmatpush1.bf16.msra.mxu0 %v479_v51  ;;  %1217 = vmatpush1.bf16.msra.mxu1 %v481_v52  ;;  %v568_v52 = vunpack.c.h.s8.bf16 %v216_v41  ;;  %v258_v41 = vld [vmem:[#allocation5 + $0x5f8] sm:$0xff] }
 0x16f   :  { %1054 = vmatprep.subr.bf16.mxu0 %v488_v53  ;;  %1218 = vmatprep.subr.bf16.mxu1 %v490_v54  ;;  %v570_v53 = vunpack.c.h.s8.bf16 %v218_v43  ;;  %v224_v54 = vld [vmem:[#allocation5 + $0x4e8] sm:$0xff] }
 0x172   :  { %1055 = vmatpush1.bf16.msra.mxu0 %v487_v57  ;;  %1219 = vmatpush1.bf16.msra.mxu1 %v489_v58  ;;  %v576_v58 = vunpack.c.l.s8.bf16 %v224_v54 }
 0x173   :  { %1056 = vmatprep.subr.bf16.mxu0 %v496_v60  ;;  %1220 = vmatprep.subr.bf16.mxu1 %v498_v61  ;;  %v578_v60 = vunpack.c.l.s8.bf16 %v226_v55  ;;  %v223_v61 = vld [vmem:[#allocation5 + $0x4e0] sm:$0xff] }
 0x174   :  { %v575_v63 = vunpack.c.l.s8.bf16 %v223_v61  ;;  %v583_v5 = vunpack.c.h.s8.bf16 %v223_v61  ;;  %v1651_v61 = vld [vmem:[#allocation5 + $0x678] sm:$0xff] }
 0x176   :  { %1057 = vmatpush1.bf16.msra.mxu0 %v495_v0  ;;  %1221 = vmatpush1.bf16.msra.mxu1 %v497_v42  ;;  %v577_v0 = vunpack.c.l.s8.bf16 %v225_v62  ;;  %v584_v42 = vunpack.c.h.s8.bf16 %v224_v54  ;;  %v266_v54 = vld [vmem:[#allocation5 + $0x630] ss:$8 sps:$4 sm:$0xff]  }
 0x177   :  { %1058 = vmatprep.subr.bf16.mxu0 %v504_v1  ;;  %1222 = vmatprep.subr.bf16.mxu1 %v506_v3  ;;  %v586_v1 = vunpack.c.h.s8.bf16 %v226_v55  ;;  %v232_v3 = vld [vmem:[#allocation5 + $0x528] sm:$0xff] }
 0x17a   :  { %1059 = vmatpush1.bf16.msra.mxu0 %v503_v7  ;;  %1223 = vmatpush1.bf16.msra.mxu1 %v505_v8  ;;  %v585_v7 = vunpack.c.h.s8.bf16 %v225_v62  ;;  %v592_v8 = vunpack.c.l.s8.bf16 %v232_v3 }
 0x17b   :  { %1060 = vmatprep.subr.bf16.mxu0 %v512_v9  ;;  %1224 = vmatprep.subr.bf16.mxu1 %v514_v10  ;;  %v594_v9 = vunpack.c.l.s8.bf16 %v234_v4  ;;  %v231_v10 = vld [vmem:[#allocation5 + $0x520] sm:$0xff] }
 0x17c   :  { %v591_v11 = vunpack.c.l.s8.bf16 %v231_v10  ;;  %v599_v18 = vunpack.c.h.s8.bf16 %v231_v10  ;;  %v1655_v10 = vld [vmem:[#allocation5 + $0x6b8] sm:$0xff] }
 0x17e   :  { %1061 = vmatpush1.bf16.msra.mxu0 %v511_v12  ;;  %1225 = vmatpush1.bf16.msra.mxu1 %v513_v13  ;;  %v593_v12 = vunpack.c.l.s8.bf16 %v233_v50  ;;  %v600_v13 = vunpack.c.h.s8.bf16 %v232_v3  ;;  %v1650_v3 = vld [vmem:[#allocation5 + $0x670] sm:$0xff] }
 0x17f   :  { %1062 = vmatprep.subr.bf16.mxu0 %v520_v14  ;;  %1226 = vmatprep.subr.bf16.mxu1 %v522_v15  ;;  %v602_v14 = vunpack.c.h.s8.bf16 %v234_v4  ;;  %v240_v15 = vld [vmem:[#allocation5 + $0x568] sm:$0xff] }
 0x182   :  { %1063 = vmatpush1.bf16.msra.mxu0 %v519_v19  ;;  %1227 = vmatpush1.bf16.msra.mxu1 %v521_v20  ;;  %v601_v19 = vunpack.c.h.s8.bf16 %v233_v50  ;;  %v608_v20 = vunpack.c.l.s8.bf16 %v240_v15  ;;  %v1718_v50 = vunpack.c.h.s8.bf16 %v1650_v3 }
 0x183   :  { %1073 = vmatprep.subr.bf16.mxu0 %v528_v21  ;;  %1237 = vmatprep.subr.bf16.mxu1 %v530_v22  ;;  %v610_v21 = vunpack.c.l.s8.bf16 %v242_v16  ;;  %v239_v22 = vld [vmem:[#allocation5 + $0x560] sm:$0xff] }
 0x184   :  { %v607_v24 = vunpack.c.l.s8.bf16 %v239_v22  ;;  %v615_v31 = vunpack.c.h.s8.bf16 %v239_v22  ;;  %v1659_v22 = vld [vmem:[#allocation5 + $0x6f8] sm:$0xff] }
 0x185   :  { %1065 = vmatmul.mubr.bf16.vlgmr.msra.gmra.mrb[4].mxu0 %v3005_v17  ;;  %1229 = vmatmul.mubr.bf16.vlgmr.msra.gmra.mrb[4].mxu1 %v3005_v17  ;;  %v552_v17 = vunpack.c.h.s8.bf16 %v208_v30  ;;  %v250_v30 = vld [vmem:[#allocation5 + $0x5b8] sm:$0xff] }
 0x186   :  { %1074 = vmatpush1.bf16.msra.mxu0 %v527_v26  ;;  %1238 = vmatpush1.bf16.msra.mxu1 %v529_v27  ;;  %v609_v26 = vunpack.c.l.s8.bf16 %v241_v23  ;;  %v616_v27 = vunpack.c.h.s8.bf16 %v240_v15 }
 0x187   :  { %1075 = vmatprep.subr.bf16.mxu0 %v536_v28  ;;  %1239 = vmatprep.subr.bf16.mxu1 %v538_v29  ;;  %v618_v28 = vunpack.c.h.s8.bf16 %v242_v16  ;;  %v248_v29 = vld [vmem:[#allocation5 + $0x5a8] sm:$0xff] }
 0x188   :  { %1105 = vmatprep.mubr.bf16.mxu0 %v3007_v25  ;;  %1269 = vmatprep.mubr.bf16.mxu1 %v3007_v25  ;;  %v217_v25 = vld [vmem:[#allocation5 + $0x4b0] sm:$0xff] }
 0x189   :  { %v561_v51 = vunpack.c.l.s8.bf16 %v217_v25  ;;  %v569_v57 = vunpack.c.h.s8.bf16 %v217_v25 }
 0x18a   :  { %1076 = vmatpush1.bf16.msra.mxu0 %v535_v35  ;;  %1240 = vmatpush1.bf16.msra.mxu1 %v537_v32  ;;  %v617_v35 = vunpack.c.h.s8.bf16 %v241_v23  ;;  %v624_v32 = vunpack.c.l.s8.bf16 %v248_v29 }
 0x18b   :  { %1077 = vmatprep.subr.bf16.mxu0 %v544_v33  ;;  %1241 = vmatprep.subr.bf16.mxu1 %v546_v34  ;;  %v626_v33 = vunpack.c.l.s8.bf16 %v250_v30  ;;  %v247_v34 = vld [vmem:[#allocation5 + $0x5a0] sm:$0xff] }
 0x18c   :  { %v623_v37 = vunpack.c.l.s8.bf16 %v247_v34  ;;  %v631_v43 = vunpack.c.h.s8.bf16 %v247_v34  ;;  %v1658_v34 = vld [vmem:[#allocation5 + $0x6f0] sm:$0xff] }
 0x18e   :  { %1078 = vmatpush1.bf16.msra.mxu0 %v543_v38  ;;  %1242 = vmatpush1.bf16.msra.mxu1 %v545_v39  ;;  %v625_v38 = vunpack.c.l.s8.bf16 %v249_v36  ;;  %v632_v39 = vunpack.c.h.s8.bf16 %v248_v29 }
 0x18f   :  { %1079 = vmatprep.subr.bf16.mxu0 %v552_v17  ;;  %1243 = vmatprep.subr.bf16.mxu1 %v554_v40  ;;  %v634_v17 = vunpack.c.h.s8.bf16 %v250_v30  ;;  %v256_v40 = vld [vmem:[#allocation5 + $0x5e8] sm:$0xff] }
 0x192   :  { %1080 = vmatpush1.bf16.msra.mxu0 %v551_v44  ;;  %1244 = vmatpush1.bf16.msra.mxu1 %v553_v45  ;;  %v633_v44 = vunpack.c.h.s8.bf16 %v249_v36  ;;  %v640_v45 = vunpack.c.l.s8.bf16 %v256_v40 }
 0x193   :  { %1081 = vmatprep.subr.bf16.mxu0 %v560_v46  ;;  %1245 = vmatprep.subr.bf16.mxu1 %v562_v47  ;;  %v642_v46 = vunpack.c.l.s8.bf16 %v258_v41  ;;  %v255_v47 = vld [vmem:[#allocation5 + $0x5e0] sm:$0xff] }
 0x194   :  { %v639_v25 = vunpack.c.l.s8.bf16 %v255_v47  ;;  %v647_v55 = vunpack.c.h.s8.bf16 %v255_v47  ;;  %v1662_v47 = vld [vmem:[#allocation5 + $0x730] sm:$0xff] }
 0x196   :  { %1082 = vmatpush1.bf16.msra.mxu0 %v559_v49  ;;  %1246 = vmatpush1.bf16.msra.mxu1 %v561_v51  ;;  %v641_v49 = vunpack.c.l.s8.bf16 %v257_v48  ;;  %v648_v51 = vunpack.c.h.s8.bf16 %v256_v40  ;;  %v1663_v40 = vld [vmem:[#allocation5 + $0x738] sm:$0xff] }
 0x197   :  { %1083 = vmatprep.subr.bf16.mxu0 %v568_v52  ;;  %1247 = vmatprep.subr.bf16.mxu1 %v570_v53  ;;  %v650_v52 = vunpack.c.h.s8.bf16 %v258_v41  ;;  %v264_v53 = vld [vmem:[#allocation5 + $0x620] ss:$8 sps:$4 sm:$0xff]  }
 0x198   :  { %v655_v62 = vunpack.c.l.s8.bf16 %v264_v53 }
 0x19a   :  { %1084 = vmatpush1.bf16.msra.mxu0 %v567_v56  ;;  %1248 = vmatpush1.bf16.msra.mxu1 %v569_v57  ;;  %v649_v56 = vunpack.c.h.s8.bf16 %v257_v48  ;;  %v656_v57 = vunpack.c.h.s8.bf16 %v264_v53  ;;  %v1667_v53 = vld [vmem:[#allocation5 + $0x778] sm:$0xff] }
 0x19b   :  { %1085 = vmatprep.subr.bf16.mxu0 %v576_v58  ;;  %1249 = vmatprep.subr.bf16.mxu1 %v578_v60  ;;  %v658_v58 = vunpack.c.h.s8.bf16 %v266_v54  ;;  %v1649_v60 = vld [vmem:[#allocation5 + $0x668] sm:$0xff] }
 0x19e   :  { %1086 = vmatpush1.bf16.msra.mxu0 %v575_v63  ;;  %1250 = vmatpush1.bf16.msra.mxu1 %v577_v0  ;;  %v657_v63 = vunpack.c.l.s8.bf16 %v266_v54  ;;  %v1713_v0 = vunpack.c.l.s8.bf16 %v1649_v60 }
 0x19f   :  { %1087 = vmatprep.subr.bf16.mxu0 %v584_v42  ;;  %1251 = vmatprep.subr.bf16.mxu1 %v586_v1  ;;  %v1715_v42 = vunpack.c.l.s8.bf16 %v1651_v61  ;;  %v1648_v1 = vld [vmem:[#allocation5 + $0x660] sm:$0xff] }
 0x1a0   :  { %v1712_v4 = vunpack.c.l.s8.bf16 %v1648_v1 }
 0x1a2   :  { %1088 = vmatpush1.bf16.msra.mxu0 %v583_v5  ;;  %1252 = vmatpush1.bf16.msra.mxu1 %v585_v7  ;;  %v1714_v5 = vunpack.c.l.s8.bf16 %v1650_v3  ;;  %v1717_v7 = vunpack.c.h.s8.bf16 %v1649_v60  ;;  %v1666_v60 = vld [vmem:[#allocation5 + $0x770] sm:$0xff] }
 0x1a3   :  { %1089 = vmatprep.subr.bf16.mxu0 %v592_v8  ;;  %1253 = vmatprep.subr.bf16.mxu1 %v594_v9  ;;  %v1719_v8 = vunpack.c.h.s8.bf16 %v1651_v61  ;;  %v1653_v9 = vld [vmem:[#allocation5 + $0x6a8] sm:$0xff] }
 0x1a6   :  { %1090 = vmatpush1.bf16.msra.mxu0 %v591_v11  ;;  %1254 = vmatpush1.bf16.msra.mxu1 %v593_v12  ;;  %v1721_v11 = vunpack.c.l.s8.bf16 %v1653_v9  ;;  %v1723_v12 = vunpack.c.l.s8.bf16 %v1655_v10 }
 0x1a7   :  { %1091 = vmatprep.subr.bf16.mxu0 %v600_v13  ;;  %1255 = vmatprep.subr.bf16.mxu1 %v602_v14  ;;  %v1652_v13 = vld [vmem:[#allocation5 + $0x6a0] sm:$0xff]  ;;  %v1654_v14 = vld [vmem:[#allocation5 + $0x6b0] sm:$0xff] }
 0x1a8   :  { %v1720_v15 = vunpack.c.l.s8.bf16 %v1652_v13  ;;  %v1722_v16 = vunpack.c.l.s8.bf16 %v1654_v14  ;;  %v1726_v29 = vunpack.c.h.s8.bf16 %v1654_v14 }
 0x1aa   :  { %1092 = vmatpush1.bf16.msra.mxu0 %v599_v18  ;;  %1256 = vmatpush1.bf16.msra.mxu1 %v601_v19  ;;  %v1725_v18 = vunpack.c.h.s8.bf16 %v1653_v9  ;;  %v1727_v19 = vunpack.c.h.s8.bf16 %v1655_v10  ;;  %v1670_v9 = vld [vmem:[#allocation5 + $0x7b0] sm:$0xff] }
 0x1ab   :  { %1093 = vmatprep.subr.bf16.mxu0 %v608_v20  ;;  %1257 = vmatprep.subr.bf16.mxu1 %v610_v21  ;;  %v1657_v21 = vld [vmem:[#allocation5 + $0x6e8] sm:$0xff] }
 0x1ae   :  { %1094 = vmatpush1.bf16.msra.mxu0 %v607_v24  ;;  %1258 = vmatpush1.bf16.msra.mxu1 %v609_v26 }
 0x1af   :  { %1095 = vmatprep.subr.bf16.mxu0 %v616_v27  ;;  %1259 = vmatprep.subr.bf16.mxu1 %v618_v28  ;;  %v1724_v28 = vunpack.c.h.s8.bf16 %v1652_v13  ;;  %v1675_v13 = vld [vmem:[#allocation5 + $0x7f8] sm:$0xff] }
 0x1b2   :  { %1096 = vmatpush1.bf16.msra.mxu0 %v615_v31  ;;  %1260 = vmatpush1.bf16.msra.mxu1 %v617_v35  ;;  %v1729_v35 = vunpack.c.l.s8.bf16 %v1657_v21 }
 0x1b3   :  { %1097 = vmatprep.subr.bf16.mxu0 %v624_v32  ;;  %1261 = vmatprep.subr.bf16.mxu1 %v626_v33  ;;  %v1731_v32 = vunpack.c.l.s8.bf16 %v1659_v22  ;;  %v1656_v33 = vld [vmem:[#allocation5 + $0x6e0] sm:$0xff] }
 0x1b4   :  { %v1728_v36 = vunpack.c.l.s8.bf16 %v1656_v33  ;;  %v1732_v41 = vunpack.c.h.s8.bf16 %v1656_v33 }
 0x1b6   :  { %1098 = vmatpush1.bf16.msra.mxu0 %v623_v37  ;;  %1262 = vmatpush1.bf16.msra.mxu1 %v625_v38  ;;  %v1730_v37 = vunpack.c.l.s8.bf16 %v1658_v34  ;;  %v1733_v38 = vunpack.c.h.s8.bf16 %v1657_v21  ;;  %v1674_v21 = vld [vmem:[#allocation5 + $0x7f0] sm:$0xff] }
 0x1b7   :  { %1099 = vmatprep.subr.bf16.mxu0 %v632_v39  ;;  %1263 = vmatprep.subr.bf16.mxu1 %v634_v17  ;;  %v1735_v39 = vunpack.c.h.s8.bf16 %v1659_v22  ;;  %v1661_v17 = vld [vmem:[#allocation5 + $0x728] sm:$0xff] }
 0x1ba   :  { %1100 = vmatpush1.bf16.msra.mxu0 %v631_v43  ;;  %1264 = vmatpush1.bf16.msra.mxu1 %v633_v44  ;;  %v1734_v43 = vunpack.c.h.s8.bf16 %v1658_v34  ;;  %v1737_v44 = vunpack.c.l.s8.bf16 %v1661_v17  ;;  %v1676_v34 = vld [vmem:[#allocation5 + $0x820] sm:$0xff] }
 0x1bb   :  { %1101 = vmatprep.subr.bf16.mxu0 %v640_v45  ;;  %1265 = vmatprep.subr.bf16.mxu1 %v642_v46  ;;  %v1739_v45 = vunpack.c.l.s8.bf16 %v1663_v40  ;;  %v1660_v46 = vld [vmem:[#allocation5 + $0x720] sm:$0xff] }
 0x1bc   :  { %v1736_v48 = vunpack.c.l.s8.bf16 %v1660_v46  ;;  %v1740_v54 = vunpack.c.h.s8.bf16 %v1660_v46 }
 0x1be   :  { %1102 = vmatpush1.bf16.msra.mxu0 %v639_v25  ;;  %1266 = vmatpush1.bf16.msra.mxu1 %v641_v49  ;;  %v1738_v25 = vunpack.c.l.s8.bf16 %v1662_v47  ;;  %v1741_v49 = vunpack.c.h.s8.bf16 %v1661_v17 }
 0x1bf   :  { %1103 = vmatprep.subr.bf16.mxu0 %v648_v51  ;;  %1267 = vmatprep.subr.bf16.mxu1 %v650_v52  ;;  %v1743_v51 = vunpack.c.h.s8.bf16 %v1663_v40  ;;  %v1665_v52 = vld [vmem:[#allocation5 + $0x768] sm:$0xff]  ;;  %v1772_v40 = vunpack.c.h.s8.bf16 %v1676_v34 }
 0x1c2   :  { %1104 = vmatpush1.bf16.msra.mxu0 %v647_v55  ;;  %1268 = vmatpush1.bf16.msra.mxu1 %v649_v56  ;;  %v1742_v55 = vunpack.c.h.s8.bf16 %v1662_v47  ;;  %v1745_v56 = vunpack.c.l.s8.bf16 %v1665_v52  ;;  %v1324_v47 = vlaneseq }
 0x1c3   :  { %1114 = vmatprep.subr.bf16.mxu0 %v656_v57  ;;  %1278 = vmatprep.subr.bf16.mxu1 %v658_v58  ;;  %v1747_v57 = vunpack.c.l.s8.bf16 %v1667_v53  ;;  %v1664_v58 = vld [vmem:[#allocation5 + $0x760] sm:$0xff] }
 0x1c4   :  { %v1744_v61 = vunpack.c.l.s8.bf16 %v1664_v58  ;;  %v1748_v3 = vunpack.c.h.s8.bf16 %v1664_v58 }
 0x1c5   :  { %1106 = vmatmul.mubr.bf16.vlgmr.msra.gmra.mrb[4].mxu0 %v3013_v59  ;;  %1270 = vmatmul.mubr.bf16.vlgmr.msra.gmra.mrb[4].mxu1 %v3013_v59  ;;  %v1716_v59 = vunpack.c.h.s8.bf16 %v1648_v1  ;;  %v1671_v1 = vld [vmem:[#allocation5 + $0x7b8] sm:$0xff] }
 0x1c6   :  { %1115 = vmatpush1.bf16.msra.mxu0 %v655_v62  ;;  %1279 = vmatpush1.bf16.msra.mxu1 %v657_v63  ;;  %v1746_v62 = vunpack.c.l.s8.bf16 %v1666_v60  ;;  %v1749_v63 = vunpack.c.h.s8.bf16 %v1665_v52 }
 0x1c7   :  { %1146 = vmatprep.mubr.bf16.mxu0 %v2933_v2  ;;  %1310 = vmatprep.mubr.bf16.mxu1 %v2933_v2 }
 0x1c8   :  { %1840 = vmatprep.subr.bf16.mxu0 %v1713_v0  ;;  %1922 = vmatprep.subr.bf16.mxu1 %v1715_v42  ;;  %v1751_v0 = vunpack.c.h.s8.bf16 %v1667_v53  ;;  %v1669_v42 = vld [vmem:[#allocation5 + $0x7a8] sm:$0xff] }
 0x1c9   :  { %v1373_v53 = vld [vmem:[#allocation7] ss:$8 sm:$0xf0] }
 0x1d1   :  { %2674 = vmatmul.mubr.msk.bf16.vlgmr.msra.gmra.mrb[4].mxu0 %vm659_vm0, %v3019_v6  ;;  %2675 = vmatmul.mubr.msk.bf16.vlgmr.msra.gmra.mrb[4].mxu1 %vm659_vm0, %v3019_v6 }
 0x1d2   :  { %1841 = vmatpush1.bf16.msra.mxu0 %v1712_v4  ;;  %1923 = vmatpush1.bf16.msra.mxu1 %v1714_v5  ;;  %v1750_v4 = vunpack.c.h.s8.bf16 %v1666_v60  ;;  %v1753_v5 = vunpack.c.l.s8.bf16 %v1669_v42 }
 0x1d3   :  { %1842 = vmatprep.subr.bf16.mxu0 %v1717_v7  ;;  %1924 = vmatprep.subr.bf16.mxu1 %v1719_v8  ;;  %v1755_v7 = vunpack.c.l.s8.bf16 %v1671_v1  ;;  %v1668_v8 = vld [vmem:[#allocation5 + $0x7a0] sm:$0xff] }
 0x1d4   :  { %v1752_v10 = vunpack.c.l.s8.bf16 %v1668_v8  ;;  %v1756_v14 = vunpack.c.h.s8.bf16 %v1668_v8 }
 0x1d6   :  { %1843 = vmatpush1.bf16.msra.mxu0 %v1716_v59  ;;  %1925 = vmatpush1.bf16.msra.mxu1 %v1718_v50  ;;  %v1754_v59 = vunpack.c.l.s8.bf16 %v1670_v9  ;;  %v1757_v50 = vunpack.c.h.s8.bf16 %v1669_v42 }
 0x1d7   :  { %1844 = vmatprep.subr.bf16.mxu0 %v1721_v11  ;;  %1926 = vmatprep.subr.bf16.mxu1 %v1723_v12  ;;  %v1759_v11 = vunpack.c.h.s8.bf16 %v1671_v1  ;;  %v1673_v12 = vld [vmem:[#allocation5 + $0x7e8] sm:$0xff] }
 0x1d8   :  { %v3043_v20 = vpop.f32.mrb[0].mxu0  ;;  %v3045_v6 = vpop.f32.mrb[0].mxu1 }
 0x1d9   :  { %v3047_v23 = vpop.f32.mrb[1].mxu0  ;;  %v3049_v24 = vpop.f32.mrb[1].mxu1 }
 0x1da   :  { %v824_v26 = vpop.f32.mrb[2].mxu0  ;;  %v988_v27 = vpop.f32.mrb[2].mxu1  ;;  %1845 = vmatpush1.bf16.msra.mxu0 %v1720_v15  ;;  %1927 = vmatpush1.bf16.msra.mxu1 %v1722_v16  ;;  %v1758_v15 = vunpack.c.h.s8.bf16 %v1670_v9  ;;  %v1761_v16 = vunpack.c.l.s8.bf16 %v1673_v12 }
 0x1db   :  { %v825_v30 = vpop.f32.mrb[3].mxu0  ;;  %v989_v31 = vpop.f32.mrb[3].mxu1  ;;  %1846 = vmatprep.subr.bf16.mxu0 %v1725_v18  ;;  %1928 = vmatprep.subr.bf16.mxu1 %v1727_v19  ;;  %v1763_v18 = vunpack.c.l.s8.bf16 %v1675_v13  ;;  %v1672_v19 = vld [vmem:[#allocation5 + $0x7e0] sm:$0xff]  ;;  %v1762_v26 = vunpack.c.l.s8.bf16 %v1674_v21  ;;  %v1765_v27 = vunpack.c.h.s8.bf16 %v1673_v12 }
 0x1dc   :  { %v1760_v22 = vunpack.c.l.s8.bf16 %v1672_v19  ;;  %v1766_v30 = vunpack.c.h.s8.bf16 %v1674_v21  ;;  %v1677_v31 = vld [vmem:[#allocation5 + $0x828] sm:$0xff] }
 0x1de   :  { %1847 = vmatpush1.bf16.msra.mxu0 %v1724_v28  ;;  %1929 = vmatpush1.bf16.msra.mxu1 %v1726_v29  ;;  %v1767_v28 = vunpack.c.h.s8.bf16 %v1675_v13  ;;  %v1764_v29 = vunpack.c.h.s8.bf16 %v1672_v19 }
 0x1df   :  { %1848 = vmatprep.subr.bf16.mxu0 %v1729_v35  ;;  %1930 = vmatprep.subr.bf16.mxu1 %v1731_v32  ;;  %v1679_v35 = vld [vmem:[#allocation5 + $0x838] sm:$0xff]  ;;  %v1769_v32 = vunpack.c.l.s8.bf16 %v1677_v31 }
 0x1e0   :  { %v1771_v33 = vunpack.c.l.s8.bf16 %v1679_v35  ;;  %v1775_v17 = vunpack.c.h.s8.bf16 %v1679_v35 }
 0x1e2   :  { %1849 = vmatpush1.bf16.msra.mxu0 %v1728_v36  ;;  %1931 = vmatpush1.bf16.msra.mxu1 %v1730_v37  ;;  %v1678_v36 = vld [vmem:[#allocation5 + $0x830] sm:$0xff]  ;;  %v1768_v37 = vunpack.c.l.s8.bf16 %v1676_v34 }
 0x1e3   :  { %1850 = vmatprep.subr.bf16.mxu0 %v1733_v38  ;;  %1932 = vmatprep.subr.bf16.mxu1 %v1735_v39  ;;  %v1770_v38 = vunpack.c.l.s8.bf16 %v1678_v36  ;;  %v1773_v39 = vunpack.c.h.s8.bf16 %v1677_v31 }
 0x1e6   :  { %1851 = vmatpush1.bf16.msra.mxu0 %v1732_v41  ;;  %1933 = vmatpush1.bf16.msra.mxu1 %v1734_v43  ;;  %v1774_v41 = vunpack.c.h.s8.bf16 %v1678_v36  ;;  %v3051_v43 = vld [vmem:[#allocation5 + $0x868] sm:$0xff] }
 0x1e7   :  { %1852 = vmatprep.subr.bf16.mxu0 %v1737_v44  ;;  %1934 = vmatprep.subr.bf16.mxu1 %v1739_v45  ;;  %v3053_v44 = vld [vmem:[#allocation5 + $0x878] sm:$0xff]  ;;  %v1777_v45 = vunpack.c.l.s8.bf16 %v3051_v43  ;;  %v1781_v31 = vunpack.c.h.s8.bf16 %v3051_v43 }
 0x1e8   :  { %v1779_v46 = vunpack.c.l.s8.bf16 %v3053_v44  ;;  %v1783_v35 = vunpack.c.h.s8.bf16 %v3053_v44 }
 0x1ea   :  { %1853 = vmatpush1.bf16.msra.mxu0 %v1736_v48  ;;  %1935 = vmatpush1.bf16.msra.mxu1 %v1738_v25  ;;  %v3057_v48 = vshrl.u32 %v1324_v47, 7  ;;  %v1320_v25 = vld [vmem:[#allocation7 + $0x1] ss:$8 sm:$0xf] }
 0x1eb   :  { %1854 = vmatprep.subr.bf16.mxu0 %v1741_v49  ;;  %1936 = vmatprep.subr.bf16.mxu1 %v1743_v51  ;;  %v1321_v49 = vld [vmem:[#allocation7 + $0x1] ss:$8 sm:$0xf0]  ;;  %v1372_v51 = vld [vmem:[#allocation7] ss:$8 sm:$0xf] }
 0x1ec   :  { %v1342_v52 = vsub.s32 4, %v3057_v48  ;;  %v1691_v47 = vld [vmem:[#allocation5 + $0x8f8] sm:$0xff] }
 0x1ee   :  { %1855 = vmatpush1.bf16.msra.mxu0 %v1740_v54  ;;  %1937 = vmatpush1.bf16.msra.mxu1 %v1742_v55  ;;  %v1346_v54 = vsub.s32 5, %v3057_v48  ;;  %v1354_v55 = vsub.s32 7, %v3057_v48 }
 0x1ef   :  { %1856 = vmatprep.subr.bf16.mxu0 %v1745_v56  ;;  %1938 = vmatprep.subr.bf16.mxu1 %v1747_v57  ;;  %v3062_v56 = vor.u32 %v1321_v49, %v1320_v25  ;;  %v3064_v57 = vor.u32 %v1373_v53, %v1372_v51  ;;  %v1688_v53 = vld [vmem:[#allocation5 + $0x8e0] sm:$0xff] }
 0x1f1   :  { %v1343_v58 = vrot.slane %v3062_v56, %v1342_v52  ;;  %v1347_v60 = vrot.slane %v3062_v56, %v1346_v54  ;;  %v1399_v42 = vrot.slane %v3064_v57, %v1346_v54  ;;  %v1407_v1 = vrot.slane %v3064_v57, %v1354_v55  ;;  %v1690_v54 = vld [vmem:[#allocation5 + $0x8f0] sm:$0xff] }
 0x1f2   :  { %1857 = vmatpush1.bf16.msra.mxu0 %v1744_v61  ;;  %1939 = vmatpush1.bf16.msra.mxu1 %v1746_v62  ;;  %v1355_v61 = vrot.slane %v3062_v56, %v1354_v55  ;;  %v1395_v62 = vrot.slane %v3064_v57, %v1342_v52  ;;  %v1795_v52 = vunpack.c.l.s8.bf16 %v1691_v47  ;;  %v1792_v55 = vunpack.c.l.s8.bf16 %v1688_v53 }
 0x1f3   :  { %1858 = vmatprep.subr.bf16.mxu0 %v1749_v63  ;;  %1940 = vmatprep.subr.bf16.mxu1 %v1751_v0 }
 0x1f6   :  { %1859 = vmatpush1.bf16.msra.mxu0 %v1748_v3  ;;  %1941 = vmatpush1.bf16.msra.mxu1 %v1750_v4 }
 0x1f7   :  { %1860 = vmatprep.subr.bf16.mxu0 %v1753_v5  ;;  %1942 = vmatprep.subr.bf16.mxu1 %v1755_v7 }
 0x1fa   :  { %1861 = vmatpush1.bf16.msra.mxu0 %v1752_v10  ;;  %1943 = vmatpush1.bf16.msra.mxu1 %v1754_v59 }
 0x1fb   :  { %1862 = vmatprep.subr.bf16.mxu0 %v1757_v50  ;;  %1944 = vmatprep.subr.bf16.mxu1 %v1759_v11 }
 0x1fe   :  { %1863 = vmatpush1.bf16.msra.mxu0 %v1756_v14  ;;  %1945 = vmatpush1.bf16.msra.mxu1 %v1758_v15  ;;  %v1680_v15 = vld [vmem:[#allocation5 + $0x860] sm:$0xff] }
 0x1ff   :  { %1864 = vmatprep.subr.bf16.mxu0 %v1761_v16  ;;  %1946 = vmatprep.subr.bf16.mxu1 %v1763_v18  ;;  %v1682_v16 = vld [vmem:[#allocation5 + $0x870] sm:$0xff]  ;;  %v1780_v36 = vunpack.c.h.s8.bf16 %v1680_v15 }
 0x202   :  { %1865 = vmatpush1.bf16.msra.mxu0 %v1760_v22  ;;  %1947 = vmatpush1.bf16.msra.mxu1 %v1762_v26 }
 0x203   :  { %1866 = vmatprep.subr.bf16.mxu0 %v1765_v27  ;;  %1948 = vmatprep.subr.bf16.mxu1 %v1767_v28  ;;  %v1776_v27 = vunpack.c.l.s8.bf16 %v1680_v15  ;;  %v1778_v28 = vunpack.c.l.s8.bf16 %v1682_v16 }
 0x206   :  { %1867 = vmatpush1.bf16.msra.mxu0 %v1764_v29  ;;  %1949 = vmatpush1.bf16.msra.mxu1 %v1766_v30 }
 0x207   :  { %1868 = vmatprep.subr.bf16.mxu0 %v1769_v32  ;;  %1950 = vmatprep.subr.bf16.mxu1 %v1771_v33  ;;  %v1685_v32 = vld [vmem:[#allocation5 + $0x8a8] sm:$0xff]  ;;  %v1687_v33 = vld [vmem:[#allocation5 + $0x8b8] sm:$0xff] }
 0x208   :  { %v1789_v44 = vunpack.c.h.s8.bf16 %v1685_v32 }
 0x20a   :  { %1869 = vmatpush1.bf16.msra.mxu0 %v1768_v37  ;;  %1951 = vmatpush1.bf16.msra.mxu1 %v1770_v38  ;;  %v1782_v37 = vunpack.c.h.s8.bf16 %v1682_v16  ;;  %v1785_v38 = vunpack.c.l.s8.bf16 %v1685_v32  ;;  %v1696_v16 = vld [vmem:[#allocation5 + $0x960] sm:$0xff] }
 0x20b   :  { %1870 = vmatprep.subr.bf16.mxu0 %v1773_v39  ;;  %1952 = vmatprep.subr.bf16.mxu1 %v1775_v17  ;;  %v1787_v39 = vunpack.c.l.s8.bf16 %v1687_v33  ;;  %v1684_v17 = vld [vmem:[#allocation5 + $0x8a0] sm:$0xff] }
 0x20c   :  { %v1788_v25 = vunpack.c.h.s8.bf16 %v1684_v17  ;;  %v1700_v32 = vld [vmem:[#allocation5 + $0x9a0] sm:$0xff] }
 0x20e   :  { %1871 = vmatpush1.bf16.msra.mxu0 %v1772_v40  ;;  %1953 = vmatpush1.bf16.msra.mxu1 %v1774_v41  ;;  %v1686_v40 = vld [vmem:[#allocation5 + $0x8b0] sm:$0xff]  ;;  %v1784_v41 = vunpack.c.l.s8.bf16 %v1684_v17  ;;  %v1705_v17 = vld [vmem:[#allocation5 + $0x9e8] sm:$0xff] }
 0x20f   :  { %1881 = vmatprep.subr.bf16.mxu0 %v1777_v45  ;;  %1963 = vmatprep.subr.bf16.mxu1 %v1779_v46  ;;  %v1786_v43 = vunpack.c.l.s8.bf16 %v1686_v40  ;;  %v1791_v45 = vunpack.c.h.s8.bf16 %v1687_v33  ;;  %v1689_v46 = vld [vmem:[#allocation5 + $0x8e8] sm:$0xff]  ;;  %v1790_v49 = vunpack.c.h.s8.bf16 %v1686_v40  ;;  %v1702_v33 = vld [vmem:[#allocation5 + $0x9b0] sm:$0xff]  ;;  %v1707_v40 = vld [vmem:[#allocation5 + $0x9f8] sm:$0xff] }
 0x210   :  { %v1793_v51 = vunpack.c.l.s8.bf16 %v1689_v46 }
 0x2a4   :  { %v1148_v63 = vpop.f32.mrb[4].mxu0  ;;  %v3070_v0 = vpop.f32.mrb[4].mxu1 }
 0x2a5   :  { %v1368_v3 = vmul.f32 %v1343_v58, %v1148_v63  ;;  %v1150_v4 = vpop.f32.mrb[5].mxu0  ;;  %v1314_v5 = vpop.f32.mrb[5].mxu1  ;;  %v1794_v58 = vunpack.c.l.s8.bf16 %v1690_v54  ;;  %v1695_v63 = vld [vmem:[#allocation5 + $0x938] sm:$0xff] }
 0x2a6   :  { %v1369_v7 = vmul.f32 %v1347_v60, %v1150_v4  ;;  %v1371_v8 = vmul.f32 %v1355_v61, %v1314_v5  ;;  %v1152_v9 = vpop.f32.mrb[6].mxu0  ;;  %v1316_v10 = vpop.f32.mrb[6].mxu1  ;;  %v1797_v60 = vunpack.c.h.s8.bf16 %v1689_v46  ;;  %v1799_v61 = vunpack.c.h.s8.bf16 %v1691_v47  ;;  %v1692_v5 = vld [vmem:[#allocation5 + $0x920] sm:$0xff] }
 0x2a7   :  { %v1420_v59 = vadd.f32 %v1395_v62, %v1368_v3  ;;  %v1153_v50 = vpop.f32.mrb[7].mxu0  ;;  %v1317_v11 = vpop.f32.mrb[7].mxu1  ;;  %v1693_v62 = vld [vmem:[#allocation5 + $0x928] sm:$0xff]  ;;  %v1803_v4 = vunpack.c.l.s8.bf16 %v1695_v63  ;;  %v1827_v46 = vunpack.c.l.s8.bf16 %v1707_v40  ;;  %v1704_v47 = vld [vmem:[#allocation5 + $0x9e0] sm:$0xff] }
 0x2a8   :  { %v1421_v12 = vadd.f32 %v1399_v42, %v1369_v7  ;;  %v1423_v13 = vadd.f32 %v1407_v1, %v1371_v8  ;;  %v1796_v42 = vunpack.c.h.s8.bf16 %v1688_v53  ;;  %v1798_v1 = vunpack.c.h.s8.bf16 %v1690_v54  ;;  %v1694_v7 = vld [vmem:[#allocation5 + $0x930] sm:$0xff]  ;;  %v1697_v50 = vld [vmem:[#allocation5 + $0x968] sm:$0xff]  ;;  %v1699_v11 = vld [vmem:[#allocation5 + $0x978] sm:$0xff] }
 0x2a9   :  { %vm1428_vm1 = vcmp.gt.f32.partialorder %v1420_v59, 0.0  ;;  %v1436_v14 = vmul.f32 0.2, %v1420_v59  ;;  %v1801_v3 = vunpack.c.l.s8.bf16 %v1693_v62  ;;  %v1800_v8 = vunpack.c.l.s8.bf16 %v1692_v5 }
 0x2aa   :  { %v1437_v18 = vmul.f32 0.2, %v1421_v12  ;;  %v1439_v19 = vmul.f32 0.2, %v1423_v13  ;;  %vm1429_vm2 = vcmp.gt.f32.partialorder %v1421_v12, 0.0  ;;  %vm1431_vm3 = vcmp.gt.f32.partialorder %v1423_v13, 0.0 }
 0x2ab   :  { %v1444_v21 = vsel %vm1428_vm1, %v1420_v59, %v1436_v14  ;;  %v1802_v9 = vunpack.c.l.s8.bf16 %v1694_v7  ;;  %v1805_v10 = vunpack.c.h.s8.bf16 %v1693_v62  ;;  %v1807_v59 = vunpack.c.h.s8.bf16 %v1695_v63  ;;  %v1711_v62 = vld [vmem:[#allocation5 + $0xa38] sm:$0xff] }
 0x2ac   :  { %v1445_v22 = vsel %vm1429_vm2, %v1421_v12, %v1437_v18  ;;  %v1447_v29 = vsel %vm1431_vm3, %v1423_v13, %v1439_v19  ;;  %v1452_v30 = vpack.c.bf16 %v1444_v21, %v1444_v21  ;;  %v1804_v12 = vunpack.c.h.s8.bf16 %v1692_v5  ;;  %v1698_v18 = vld [vmem:[#allocation5 + $0x970] sm:$0xff] }
 0x2ad   :  { %v1453_v26 = vpack.c.bf16 %v1445_v22, %v1445_v22  ;;  %v1455_v34 = vpack.c.bf16 %v1447_v29, %v1447_v29  ;;  %v1806_v13 = vunpack.c.h.s8.bf16 %v1694_v7  ;;  %v1809_v14 = vunpack.c.l.s8.bf16 %v1697_v50  ;;  %v1708_v7 = vld [vmem:[#allocation5 + $0xa20] sm:$0xff] }
 0x2ae   :  { %v1811_v15 = vunpack.c.l.s8.bf16 %v1699_v11  ;;  %v1808_v19 = vunpack.c.l.s8.bf16 %v1696_v16  ;;  %v1810_v21 = vunpack.c.l.s8.bf16 %v1698_v18  ;;  %v1813_v22 = vunpack.c.h.s8.bf16 %v1697_v50 }
 0x2af   :  { %1872 = vmatprep.mubr.bf16.mxu0 %v1453_v26  ;;  %1954 = vmatprep.mubr.bf16.mxu1 %v1453_v26  ;;  %v1815_v26 = vunpack.c.h.s8.bf16 %v1699_v11  ;;  %v1812_v29 = vunpack.c.h.s8.bf16 %v1696_v16  ;;  %v1829_v54 = vunpack.c.h.s8.bf16 %v1705_v17  ;;  %v1835_v5 = vunpack.c.l.s8.bf16 %v1711_v62 }
 0x2b0   :  { %1873 = vmatmul.mubr.bf16.vlgmr.msra.gmra.mrb[8].mxu0 %v1452_v30  ;;  %1955 = vmatmul.mubr.bf16.vlgmr.msra.gmra.mrb[8].mxu1 %v1452_v30  ;;  %v1814_v30 = vunpack.c.h.s8.bf16 %v1698_v18  ;;  %v1839_v50 = vunpack.c.h.s8.bf16 %v1711_v62 }
 0x2b1   :  { %1882 = vmatpush1.bf16.msra.mxu0 %v1776_v27  ;;  %1964 = vmatpush1.bf16.msra.mxu1 %v1778_v28  ;;  %v1701_v27 = vld [vmem:[#allocation5 + $0x9a8] sm:$0xff]  ;;  %v1703_v28 = vld [vmem:[#allocation5 + $0x9b8] sm:$0xff] }
 0x2b2   :  { %1913 = vmatprep.mubr.bf16.mxu0 %v1455_v34  ;;  %1995 = vmatprep.mubr.bf16.mxu1 %v1455_v34  ;;  %v1816_v34 = vunpack.c.l.s8.bf16 %v1700_v32 }
 0x2b3   :  { %1883 = vmatprep.subr.bf16.mxu0 %v1781_v31  ;;  %1965 = vmatprep.subr.bf16.mxu1 %v1783_v35  ;;  %v1817_v31 = vunpack.c.l.s8.bf16 %v1701_v27  ;;  %v1819_v35 = vunpack.c.l.s8.bf16 %v1703_v28 }
 0x2b5   :  { %1884 = vmatpush1.bf16.msra.mxu0 %v1780_v36  ;;  %1966 = vmatpush1.bf16.msra.mxu1 %v1782_v37  ;;  %v1818_v36 = vunpack.c.l.s8.bf16 %v1702_v33  ;;  %v1821_v37 = vunpack.c.h.s8.bf16 %v1701_v27 }
 0x2b6   :  { %1885 = vmatprep.subr.bf16.mxu0 %v1785_v38  ;;  %1967 = vmatprep.subr.bf16.mxu1 %v1787_v39  ;;  %v1823_v38 = vunpack.c.h.s8.bf16 %v1703_v28  ;;  %v1350_v39 = vsub.s32 6, %v3057_v48 }
 0x2b9   :  { %1886 = vmatpush1.bf16.msra.mxu0 %v1784_v41  ;;  %1968 = vmatpush1.bf16.msra.mxu1 %v1786_v43  ;;  %v3078_v41 = vsub.s32 1, %v3057_v48  ;;  %v1820_v43 = vunpack.c.h.s8.bf16 %v1700_v32 }
 0x2ba   :  { %1887 = vmatprep.subr.bf16.mxu0 %v1789_v44  ;;  %1969 = vmatprep.subr.bf16.mxu1 %v1791_v45  ;;  %v1822_v44 = vunpack.c.h.s8.bf16 %v1702_v33  ;;  %v1825_v45 = vunpack.c.l.s8.bf16 %v1705_v17  ;;  %v1461_v33 = vld [vmem:[#allocation5 + $0x688] sm:$0xff] }
 0x2bd   :  { %1888 = vmatpush1.bf16.msra.mxu0 %v1788_v25  ;;  %1970 = vmatpush1.bf16.msra.mxu1 %v1790_v49  ;;  %v1706_v25 = vld [vmem:[#allocation5 + $0x9f0] sm:$0xff]  ;;  %v1351_v49 = vrot.slane %v3062_v56, %v1350_v39 }
 0x2be   :  { %1889 = vmatprep.subr.bf16.mxu0 %v1793_v51  ;;  %1971 = vmatprep.subr.bf16.mxu1 %v1795_v52  ;;  %v1331_v51 = vrot.slane %v3062_v56, %v3078_v41  ;;  %v1824_v52 = vunpack.c.l.s8.bf16 %v1704_v47  ;;  %v1826_v53 = vunpack.c.l.s8.bf16 %v1706_v25 }
 0x2c0   :  { %v1365_v63 = vmul.f32 %v1331_v51, %v3047_v23 }
 0x2c1   :  { %1890 = vmatpush1.bf16.msra.mxu0 %v1792_v55  ;;  %1972 = vmatpush1.bf16.msra.mxu1 %v1794_v58  ;;  %v1831_v55 = vunpack.c.h.s8.bf16 %v1707_v40  ;;  %v1370_v58 = vmul.f32 %v1351_v49, %v3070_v0  ;;  %v1462_v40 = vld [vmem:[#allocation5 + $0x690] sm:$0xff] }
 0x2c2   :  { %1891 = vmatprep.subr.bf16.mxu0 %v1797_v60  ;;  %1973 = vmatprep.subr.bf16.mxu1 %v1799_v61  ;;  %v1403_v60 = vrot.slane %v3064_v57, %v1350_v39  ;;  %v1709_v61 = vld [vmem:[#allocation5 + $0xa28] sm:$0xff]  ;;  %v1460_v39 = vld [vmem:[#allocation5 + $0x680] sm:$0xff]  ;;  %v1534_v51 = vunpack.c.h.s8.bf16 %v1462_v40 }
 0x2c3   :  { %v1837_v23 = vunpack.c.h.s8.bf16 %v1709_v61  ;;  %v1532_v49 = vunpack.c.h.s8.bf16 %v1460_v39 }
 0x2c4   :  { %v1422_v0 = vadd.f32 %v1403_v60, %v1370_v58 }
 0x2c5   :  { %1892 = vmatpush1.bf16.msra.mxu0 %v1796_v42  ;;  %1974 = vmatpush1.bf16.msra.mxu1 %v1798_v1  ;;  %v1383_v42 = vrot.slane %v3064_v57, %v3078_v41  ;;  %v1828_v1 = vunpack.c.h.s8.bf16 %v1704_v47  ;;  %v1465_v47 = vld [vmem:[#allocation5 + $0x6c8] sm:$0xff] }
 0x2c6   :  { %1893 = vmatprep.subr.bf16.mxu0 %v1801_v3  ;;  %1975 = vmatprep.subr.bf16.mxu1 %v1803_v4  ;;  %v1830_v3 = vunpack.c.h.s8.bf16 %v1706_v25  ;;  %v1833_v4 = vunpack.c.l.s8.bf16 %v1709_v61  ;;  %v1438_v11 = vmul.f32 0.2, %v1422_v0  ;;  %vm1430_vm4 = vcmp.gt.f32.partialorder %v1422_v0, 0.0  ;;  %v1467_v25 = vld [vmem:[#allocation5 + $0x6d8] sm:$0xff] }
 0x2c7   :  { %v1541_v61 = vunpack.c.h.s8.bf16 %v1465_v47  ;;  %v1543_v62 = vunpack.c.h.s8.bf16 %v1467_v25 }
 0x2c9   :  { %1894 = vmatpush1.bf16.msra.mxu0 %v1800_v8  ;;  %1976 = vmatpush1.bf16.msra.mxu1 %v1802_v9  ;;  %v1710_v8 = vld [vmem:[#allocation5 + $0xa30] sm:$0xff]  ;;  %v1417_v9 = vadd.f32 %v1383_v42, %v1365_v63  ;;  %v1469_v63 = vld [vmem:[#allocation5 + $0x708] sm:$0xff]  ;;  %v1471_v42 = vld [vmem:[#allocation5 + $0x718] sm:$0xff] }
 0x2ca   :  { %1895 = vmatprep.subr.bf16.mxu0 %v1805_v10  ;;  %1977 = vmatprep.subr.bf16.mxu1 %v1807_v59  ;;  %v1832_v10 = vunpack.c.l.s8.bf16 %v1708_v7  ;;  %v1834_v59 = vunpack.c.l.s8.bf16 %v1710_v8  ;;  %v1838_v16 = vunpack.c.h.s8.bf16 %v1710_v8  ;;  %v1470_v8 = vld [vmem:[#allocation5 + $0x710] sm:$0xff] }
 0x2cb   :  { %vm1425_vm5 = vcmp.gt.f32.partialorder %v1417_v9, 0.0 }
 0x2cd   :  { %1896 = vmatpush1.bf16.msra.mxu0 %v1804_v12  ;;  %1978 = vmatpush1.bf16.msra.mxu1 %v1806_v13  ;;  %v1457_v12 = vld [vmem:[#allocation5 + $0x648] sm:$0xff]  ;;  %v1459_v13 = vld [vmem:[#allocation5 + $0x658] sm:$0xff] }
 0x2ce   :  { %1897 = vmatprep.subr.bf16.mxu0 %v1809_v14  ;;  %1979 = vmatprep.subr.bf16.mxu1 %v1811_v15  ;;  %v1433_v14 = vmul.f32 0.2, %v1417_v9  ;;  %v1836_v15 = vunpack.c.h.s8.bf16 %v1708_v7  ;;  %v1521_v18 = vunpack.c.l.s8.bf16 %v1457_v12  ;;  %v1527_v32 = vunpack.c.h.s8.bf16 %v1459_v13 }
 0x2cf   :  { %v1547_v7 = vunpack.c.l.s8.bf16 %v1471_v42 }
 0x2d0   :  { %v1441_v27 = vsel %vm1425_vm5, %v1417_v9, %v1433_v14  ;;  %v1546_v9 = vunpack.c.l.s8.bf16 %v1470_v8  ;;  %v1472_v14 = vld [vmem:[#allocation5 + $0x740] sm:$0xff] }
 0x2d1   :  { %1898 = vmatpush1.bf16.msra.mxu0 %v1808_v19  ;;  %1980 = vmatpush1.bf16.msra.mxu1 %v1810_v21  ;;  %v1523_v19 = vunpack.c.l.s8.bf16 %v1459_v13  ;;  %v1456_v21 = vld [vmem:[#allocation5 + $0x640] sm:$0xff] }
 0x2d2   :  { %1899 = vmatprep.subr.bf16.mxu0 %v1813_v22  ;;  %1981 = vmatprep.subr.bf16.mxu1 %v1815_v26  ;;  %v1446_v22 = vsel %vm1430_vm4, %v1422_v0, %v1438_v11  ;;  %v1458_v26 = vld [vmem:[#allocation5 + $0x650] sm:$0xff]  ;;  %v1520_v28 = vunpack.c.l.s8.bf16 %v1456_v21 }
 0x2d5   :  { %1900 = vmatpush1.bf16.msra.mxu0 %v1812_v29  ;;  %1982 = vmatpush1.bf16.msra.mxu1 %v1814_v30  ;;  %v1454_v29 = vpack.c.bf16 %v1446_v22, %v1446_v22  ;;  %v1522_v30 = vunpack.c.l.s8.bf16 %v1458_v26 }
 0x2d6   :  { %1901 = vmatprep.subr.bf16.mxu0 %v1817_v31  ;;  %1983 = vmatprep.subr.bf16.mxu1 %v1819_v35  ;;  %v1449_v31 = vpack.c.bf16 %v1441_v27, %v1441_v27  ;;  %v1525_v35 = vunpack.c.h.s8.bf16 %v1457_v12  ;;  %v1550_v12 = vunpack.c.h.s8.bf16 %v1470_v8  ;;  %v1479_v27 = vld [vmem:[#allocation5 + $0x798] sm:$0xff]  ;;  %v1486_v8 = vld [vmem:[#allocation5 + $0x810] sm:$0xff] }
 0x2d9   :  { %1902 = vmatpush1.bf16.msra.mxu0 %v1816_v34  ;;  %1984 = vmatpush1.bf16.msra.mxu1 %v1818_v36  ;;  %v1463_v34 = vld [vmem:[#allocation5 + $0x698] sm:$0xff]  ;;  %v1524_v36 = vunpack.c.h.s8.bf16 %v1456_v21 }
 0x2da   :  { %1903 = vmatprep.subr.bf16.mxu0 %v1821_v37  ;;  %1985 = vmatprep.subr.bf16.mxu1 %v1823_v38  ;;  %v1526_v37 = vunpack.c.h.s8.bf16 %v1458_v26  ;;  %v1529_v38 = vunpack.c.l.s8.bf16 %v1461_v33  ;;  %v1531_v17 = vunpack.c.l.s8.bf16 %v1463_v34  ;;  %v1477_v26 = vld [vmem:[#allocation5 + $0x788] sm:$0xff] }
 0x2dd   :  { %1904 = vmatpush1.bf16.msra.mxu0 %v1820_v43  ;;  %1986 = vmatpush1.bf16.msra.mxu1 %v1822_v44  ;;  %v1528_v43 = vunpack.c.l.s8.bf16 %v1460_v39  ;;  %v1530_v44 = vunpack.c.l.s8.bf16 %v1462_v40  ;;  %v1481_v39 = vld [vmem:[#allocation5 + $0x7c8] sm:$0xff]  ;;  %v3092_v40 = vsub.s32 3, %v3057_v48 }
 0x2de   :  { %1905 = vmatprep.subr.bf16.mxu0 %v1825_v45  ;;  %1987 = vmatprep.subr.bf16.mxu1 %v1827_v46  ;;  %v1533_v45 = vunpack.c.h.s8.bf16 %v1461_v33  ;;  %v1535_v46 = vunpack.c.h.s8.bf16 %v1463_v34 }
 0x2e1   :  { %1906 = vmatpush1.bf16.msra.mxu0 %v1824_v52  ;;  %1988 = vmatpush1.bf16.msra.mxu1 %v1826_v53  ;;  %v1537_v52 = vunpack.c.l.s8.bf16 %v1465_v47  ;;  %v1464_v53 = vld [vmem:[#allocation5 + $0x6c0] sm:$0xff] }
 0x2e2   :  { %1907 = vmatprep.subr.bf16.mxu0 %v1829_v54  ;;  %1989 = vmatprep.subr.bf16.mxu1 %v1831_v55  ;;  %v1539_v54 = vunpack.c.l.s8.bf16 %v1467_v25  ;;  %v1466_v55 = vld [vmem:[#allocation5 + $0x6d0] sm:$0xff]  ;;  %v1536_v58 = vunpack.c.l.s8.bf16 %v1464_v53 }
 0x2e3   :  { %v1538_v60 = vunpack.c.l.s8.bf16 %v1466_v55 }
 0x2e5   :  { %1908 = vmatpush1.bf16.msra.mxu0 %v1828_v1  ;;  %1990 = vmatpush1.bf16.msra.mxu1 %v1830_v3  ;;  %v1540_v1 = vunpack.c.h.s8.bf16 %v1464_v53  ;;  %v1542_v3 = vunpack.c.h.s8.bf16 %v1466_v55 }
 0x2e6   :  { %1909 = vmatprep.subr.bf16.mxu0 %v1833_v4  ;;  %1991 = vmatprep.subr.bf16.mxu1 %v1835_v5  ;;  %v1545_v4 = vunpack.c.l.s8.bf16 %v1469_v63  ;;  %v1468_v5 = vld [vmem:[#allocation5 + $0x700] sm:$0xff] }
 0x2e7   :  { %v1544_v0 = vunpack.c.l.s8.bf16 %v1468_v5  ;;  %v1548_v11 = vunpack.c.h.s8.bf16 %v1468_v5  ;;  %v1484_v5 = vld [vmem:[#allocation5 + $0x800] sm:$0xff] }
 0x2e9   :  { %1910 = vmatpush1.bf16.msra.mxu0 %v1832_v10  ;;  %1992 = vmatpush1.bf16.msra.mxu1 %v1834_v59  ;;  %v1549_v10 = vunpack.c.h.s8.bf16 %v1469_v63  ;;  %v1551_v59 = vunpack.c.h.s8.bf16 %v1471_v42  ;;  %v1391_v42 = vrot.slane %v3064_v57, %v3092_v40 }
 0x2ea   :  { %1911 = vmatprep.subr.bf16.mxu0 %v1837_v23  ;;  %1993 = vmatprep.subr.bf16.mxu1 %v1839_v50  ;;  %v1473_v23 = vld [vmem:[#allocation5 + $0x748] sm:$0xff]  ;;  %v1475_v50 = vld [vmem:[#allocation5 + $0x758] sm:$0xff] }
 0x2eb   :  { %v1553_v13 = vunpack.c.l.s8.bf16 %v1473_v23  ;;  %v1557_v21 = vunpack.c.h.s8.bf16 %v1473_v23  ;;  %v1559_v22 = vunpack.c.h.s8.bf16 %v1475_v50 }
 0x2ed   :  { %1912 = vmatpush1.bf16.msra.mxu0 %v1836_v15  ;;  %1994 = vmatpush1.bf16.msra.mxu1 %v1838_v16  ;;  %v1555_v15 = vunpack.c.l.s8.bf16 %v1475_v50  ;;  %v1474_v16 = vld [vmem:[#allocation5 + $0x750] sm:$0xff]  ;;  %v1489_v50 = vld [vmem:[#allocation5 + $0x848] sm:$0xff] }
 0x2ee   :  { %2004 = vmatprep.subr.bf16.mxu0 %v1521_v18  ;;  %2086 = vmatprep.subr.bf16.mxu1 %v1523_v19  ;;  %v1552_v18 = vunpack.c.l.s8.bf16 %v1472_v14  ;;  %v1554_v19 = vunpack.c.l.s8.bf16 %v1474_v16 }
 0x2f0   :  { %1914 = vmatmul.mubr.bf16.vlgmr.msra.gmra.mrb[8].mxu0 %v1454_v29  ;;  %1996 = vmatmul.mubr.bf16.vlgmr.msra.gmra.mrb[8].mxu1 %v1454_v29  ;;  %v1558_v29 = vunpack.c.h.s8.bf16 %v1474_v16  ;;  %v1488_v16 = vld [vmem:[#allocation5 + $0x840] sm:$0xff] }
 0x2f1   :  { %2005 = vmatpush1.bf16.msra.mxu0 %v1520_v28  ;;  %2036 = vmatprep.mubr.bf16.mxu0 %v1449_v31  ;;  %v1556_v28 = vunpack.c.h.s8.bf16 %v1472_v14  ;;  %v1582_v14 = vunpack.c.h.s8.bf16 %v1486_v8 }
 0x2f2   :  { %2087 = vmatpush1.bf16.msra.mxu1 %v1522_v30  ;;  %2118 = vmatprep.mubr.bf16.mxu1 %v1449_v31  ;;  %v1561_v30 = vunpack.c.l.s8.bf16 %v1477_v26  ;;  %v1476_v31 = vld [vmem:[#allocation5 + $0x780] sm:$0xff] }
 0x2f3   :  { %2006 = vmatprep.subr.bf16.mxu0 %v1525_v35  ;;  %2088 = vmatprep.subr.bf16.mxu1 %v1527_v32  ;;  %v1563_v35 = vunpack.c.l.s8.bf16 %v1479_v27  ;;  %v1478_v32 = vld [vmem:[#allocation5 + $0x790] sm:$0xff]  ;;  %v1560_v33 = vunpack.c.l.s8.bf16 %v1476_v31 }
 0x2f4   :  { %v1562_v34 = vunpack.c.l.s8.bf16 %v1478_v32 }
 0x2f5   :  { %2007 = vmatpush1.bf16.msra.mxu0 %v1524_v36  ;;  %v1565_v36 = vunpack.c.h.s8.bf16 %v1477_v26 }
 0x2f6   :  { %2089 = vmatpush1.bf16.msra.mxu1 %v1526_v37  ;;  %2008 = vmatprep.subr.bf16.mxu0 %v1529_v38  ;;  %v3089_v37 = vsub.s32 0, %v3057_v48  ;;  %v1567_v38 = vunpack.c.h.s8.bf16 %v1479_v27 }
 0x2f7   :  { %2090 = vmatprep.subr.bf16.mxu1 %v1531_v17  ;;  %v1483_v17 = vld [vmem:[#allocation5 + $0x7d8] sm:$0xff] }
 0x2f8   :  { %v1327_v47 = vrot.slane %v3062_v56, %v3089_v37  ;;  %v1571_v25 = vunpack.c.l.s8.bf16 %v1483_v17 }
 0x2f9   :  { %2009 = vmatpush1.bf16.msra.mxu0 %v1528_v43  ;;  %v1564_v43 = vunpack.c.h.s8.bf16 %v1476_v31 }
 0x2fa   :  { %2091 = vmatpush1.bf16.msra.mxu1 %v1530_v44  ;;  %2010 = vmatprep.subr.bf16.mxu0 %v1533_v45  ;;  %v1566_v44 = vunpack.c.h.s8.bf16 %v1478_v32  ;;  %v1569_v45 = vunpack.c.l.s8.bf16 %v1481_v39  ;;  %v1364_v55 = vmul.f32 %v1327_v47, %v3043_v20  ;;  %v1495_v32 = vld [vmem:[#allocation5 + $0x898] sm:$0xff]  ;;  %v1497_v47 = vld [vmem:[#allocation5 + $0x8c8] sm:$0xff] }
 0x2fb   :  { %2092 = vmatprep.subr.bf16.mxu1 %v1535_v46  ;;  %v1480_v46 = vld [vmem:[#allocation5 + $0x7c0] sm:$0xff] }
 0x2fd   :  { %2011 = vmatpush1.bf16.msra.mxu0 %v1532_v49  ;;  %v1482_v49 = vld [vmem:[#allocation5 + $0x7d0] sm:$0xff] }
 0x2fe   :  { %2093 = vmatpush1.bf16.msra.mxu1 %v1534_v51  ;;  %2012 = vmatprep.subr.bf16.mxu0 %v1537_v52  ;;  %v1339_v51 = vrot.slane %v3062_v56, %v3092_v40  ;;  %v1568_v52 = vunpack.c.l.s8.bf16 %v1480_v46  ;;  %v1570_v53 = vunpack.c.l.s8.bf16 %v1482_v49 }
 0x2ff   :  { %2094 = vmatprep.subr.bf16.mxu1 %v1539_v54  ;;  %v1573_v54 = vunpack.c.h.s8.bf16 %v1481_v39  ;;  %v1595_v39 = vunpack.c.l.s8.bf16 %v1495_v32 }
 0x300   :  { %v1367_v63 = vmul.f32 %v1339_v51, %v3049_v24  ;;  %v1578_v24 = vunpack.c.l.s8.bf16 %v1486_v8 }
 0x301   :  { %2013 = vmatpush1.bf16.msra.mxu0 %v1536_v58  ;;  %v1379_v58 = vrot.slane %v3064_v57, %v3089_v37 }
 0x302   :  { %2095 = vmatpush1.bf16.msra.mxu1 %v1538_v60  ;;  %2014 = vmatprep.subr.bf16.mxu0 %v1541_v61  ;;  %v1575_v60 = vunpack.c.h.s8.bf16 %v1483_v17  ;;  %v1485_v61 = vld [vmem:[#allocation5 + $0x808] sm:$0xff]  ;;  %v1494_v17 = vld [vmem:[#allocation5 + $0x890] sm:$0xff] }
 0x303   :  { %2096 = vmatprep.subr.bf16.mxu1 %v1543_v62  ;;  %v1487_v62 = vld [vmem:[#allocation5 + $0x818] sm:$0xff]  ;;  %v1416_v20 = vadd.f32 %v1379_v58, %v1364_v55  ;;  %v1598_v51 = vunpack.c.h.s8.bf16 %v1494_v17  ;;  %v1498_v55 = vld [vmem:[#allocation5 + $0x8d0] sm:$0xff] }
 0x304   :  { %v1583_v23 = vunpack.c.h.s8.bf16 %v1487_v62 }
 0x305   :  { %2015 = vmatpush1.bf16.msra.mxu0 %v1540_v1  ;;  %v1572_v1 = vunpack.c.h.s8.bf16 %v1480_v46  ;;  %vm1424_vm6 = vcmp.gt.f32.partialorder %v1416_v20, 0.0  ;;  %v1599_v46 = vunpack.c.h.s8.bf16 %v1495_v32 }
 0x306   :  { %2097 = vmatpush1.bf16.msra.mxu1 %v1542_v3  ;;  %2016 = vmatprep.subr.bf16.mxu0 %v1545_v4  ;;  %v1574_v3 = vunpack.c.h.s8.bf16 %v1482_v49  ;;  %v1577_v4 = vunpack.c.l.s8.bf16 %v1485_v61 }
 0x307   :  { %2098 = vmatprep.subr.bf16.mxu1 %v1547_v7  ;;  %v1579_v7 = vunpack.c.l.s8.bf16 %v1487_v62 }
 0x309   :  { %2017 = vmatpush1.bf16.msra.mxu0 %v1544_v0  ;;  %v1419_v0 = vadd.f32 %v1391_v42, %v1367_v63  ;;  %v1501_v63 = vld [vmem:[#allocation5 + $0x908] sm:$0xff]  ;;  %v1503_v42 = vld [vmem:[#allocation5 + $0x918] sm:$0xff] }
 0x30a   :  { %2099 = vmatpush1.bf16.msra.mxu1 %v1546_v9  ;;  %2018 = vmatprep.subr.bf16.mxu0 %v1549_v10  ;;  %v1576_v9 = vunpack.c.l.s8.bf16 %v1484_v5  ;;  %v1581_v10 = vunpack.c.h.s8.bf16 %v1485_v61  ;;  %v1605_v61 = vunpack.c.h.s8.bf16 %v1497_v47 }
 0x30b   :  { %2100 = vmatprep.subr.bf16.mxu1 %v1551_v59  ;;  %v1432_v59 = vmul.f32 0.2, %v1416_v20  ;;  %vm1427_vm7 = vcmp.gt.f32.partialorder %v1419_v0, 0.0 }
 0x30d   :  { %2019 = vmatpush1.bf16.msra.mxu0 %v1548_v11  ;;  %v1491_v11 = vld [vmem:[#allocation5 + $0x858] sm:$0xff] }
 0x30e   :  { %2101 = vmatpush1.bf16.msra.mxu1 %v1550_v12  ;;  %2020 = vmatprep.subr.bf16.mxu0 %v1553_v13  ;;  %v1435_v12 = vmul.f32 0.2, %v1419_v0  ;;  %v1580_v13 = vunpack.c.h.s8.bf16 %v1484_v5  ;;  %v1500_v5 = vld [vmem:[#allocation5 + $0x900] sm:$0xff] }
 0x30f   :  { %2102 = vmatprep.subr.bf16.mxu1 %v1555_v15  ;;  %v1585_v15 = vunpack.c.l.s8.bf16 %v1489_v50  ;;  %v1608_v8 = vunpack.c.l.s8.bf16 %v1500_v5 }
 0x310   :  { %v1443_v26 = vsel %vm1427_vm7, %v1419_v0, %v1435_v12  ;;  %v1504_v12 = vld [vmem:[#allocation5 + $0x940] sm:$0xff] }
 0x311   :  { %2021 = vmatpush1.bf16.msra.mxu0 %v1552_v18  ;;  %v1440_v18 = vsel %vm1424_vm6, %v1416_v20, %v1432_v59  ;;  %v1451_v31 = vpack.c.bf16 %v1443_v26, %v1443_v26  ;;  %v1611_v20 = vunpack.c.l.s8.bf16 %v1503_v42  ;;  %v1507_v59 = vld [vmem:[#allocation5 + $0x958] sm:$0xff]  ;;  %v1620_v26 = vunpack.c.h.s8.bf16 %v1504_v12 }
 0x312   :  { %2103 = vmatpush1.bf16.msra.mxu1 %v1554_v19  ;;  %2022 = vmatprep.subr.bf16.mxu0 %v1557_v21  ;;  %v1587_v19 = vunpack.c.l.s8.bf16 %v1491_v11  ;;  %v1490_v21 = vld [vmem:[#allocation5 + $0x850] sm:$0xff]  ;;  %v1448_v27 = vpack.c.bf16 %v1440_v18, %v1440_v18 }
 0x313   :  { %2104 = vmatprep.subr.bf16.mxu1 %v1559_v22  ;;  %v1584_v22 = vunpack.c.l.s8.bf16 %v1488_v16 }
 0x315   :  { %2023 = vmatpush1.bf16.msra.mxu0 %v1556_v28  ;;  %v1586_v28 = vunpack.c.l.s8.bf16 %v1490_v21 }
 0x316   :  { %2105 = vmatpush1.bf16.msra.mxu1 %v1558_v29  ;;  %2024 = vmatprep.subr.bf16.mxu0 %v1561_v30  ;;  %v1589_v29 = vunpack.c.h.s8.bf16 %v1489_v50  ;;  %v1493_v30 = vld [vmem:[#allocation5 + $0x888] sm:$0xff] }
 0x317   :  { %2106 = vmatprep.subr.bf16.mxu1 %v1563_v35  ;;  %v1591_v35 = vunpack.c.h.s8.bf16 %v1491_v11 }
 0x319   :  { %2025 = vmatpush1.bf16.msra.mxu0 %v1560_v33  ;;  %v1588_v33 = vunpack.c.h.s8.bf16 %v1488_v16 }
 0x31a   :  { %2107 = vmatpush1.bf16.msra.mxu1 %v1562_v34  ;;  %2026 = vmatprep.subr.bf16.mxu0 %v1565_v36  ;;  %v1590_v34 = vunpack.c.h.s8.bf16 %v1490_v21  ;;  %v1593_v36 = vunpack.c.l.s8.bf16 %v1493_v30  ;;  %v1509_v21 = vld [vmem:[#allocation5 + $0x988] sm:$0xff] }
 0x31b   :  { %2108 = vmatprep.subr.bf16.mxu1 %v1567_v38  ;;  %v1492_v38 = vld [vmem:[#allocation5 + $0x880] sm:$0xff] }
 0x31c   :  { %v1596_v49 = vunpack.c.h.s8.bf16 %v1492_v38 }
 0x31d   :  { %2027 = vmatpush1.bf16.msra.mxu0 %v1564_v43  ;;  %v1592_v43 = vunpack.c.l.s8.bf16 %v1492_v38  ;;  %v1513_v38 = vld [vmem:[#allocation5 + $0x9c8] sm:$0xff] }
 0x31e   :  { %2109 = vmatpush1.bf16.msra.mxu1 %v1566_v44  ;;  %2028 = vmatprep.subr.bf16.mxu0 %v1569_v45  ;;  %v1594_v44 = vunpack.c.l.s8.bf16 %v1494_v17  ;;  %v1597_v45 = vunpack.c.h.s8.bf16 %v1493_v30 }
 0x31f   :  { %2110 = vmatprep.subr.bf16.mxu1 %v1571_v25  ;;  %v1499_v25 = vld [vmem:[#allocation5 + $0x8d8] sm:$0xff] }
 0x320   :  { %v1607_v62 = vunpack.c.h.s8.bf16 %v1499_v25 }
 0x321   :  { %2029 = vmatpush1.bf16.msra.mxu0 %v1568_v52  ;;  %v1601_v52 = vunpack.c.l.s8.bf16 %v1497_v47 }
 0x322   :  { %2111 = vmatpush1.bf16.msra.mxu1 %v1570_v53  ;;  %2030 = vmatprep.subr.bf16.mxu0 %v1573_v54  ;;  %v1496_v53 = vld [vmem:[#allocation5 + $0x8c0] sm:$0xff]  ;;  %v1603_v54 = vunpack.c.l.s8.bf16 %v1499_v25  ;;  %v1514_v25 = vld [vmem:[#allocation5 + $0x9d0] sm:$0xff] }
 0x323   :  { %2112 = vmatprep.subr.bf16.mxu1 %v1575_v60  ;;  %v1600_v58 = vunpack.c.l.s8.bf16 %v1496_v53  ;;  %v1602_v60 = vunpack.c.l.s8.bf16 %v1498_v55 }
 0x325   :  { %2031 = vmatpush1.bf16.msra.mxu0 %v1572_v1  ;;  %v1604_v1 = vunpack.c.h.s8.bf16 %v1496_v53 }
 0x326   :  { %2113 = vmatpush1.bf16.msra.mxu1 %v1574_v3  ;;  %2032 = vmatprep.subr.bf16.mxu0 %v1577_v4  ;;  %v1606_v3 = vunpack.c.h.s8.bf16 %v1498_v55  ;;  %v1609_v4 = vunpack.c.l.s8.bf16 %v1501_v63  ;;  %v1517_v55 = vld [vmem:[#allocation5 + $0xa08] sm:$0xff] }
 0x327   :  { %2114 = vmatprep.subr.bf16.mxu1 %v1579_v7  ;;  %v1502_v7 = vld [vmem:[#allocation5 + $0x910] sm:$0xff] }
 0x328   :  { %v1610_v0 = vunpack.c.l.s8.bf16 %v1502_v7  ;;  %v1614_v50 = vunpack.c.h.s8.bf16 %v1502_v7  ;;  %v2263_v7 = vld [vmem:[#allocation5 + $0xa58] sm:$0xff] }
 0x329   :  { %2033 = vmatpush1.bf16.msra.mxu0 %v1576_v9  ;;  %v1613_v9 = vunpack.c.h.s8.bf16 %v1501_v63 }
 0x32a   :  { %2115 = vmatpush1.bf16.msra.mxu1 %v1578_v24  ;;  %2034 = vmatprep.subr.bf16.mxu0 %v1581_v10  ;;  %v1615_v24 = vunpack.c.h.s8.bf16 %v1503_v42  ;;  %v1505_v10 = vld [vmem:[#allocation5 + $0x948] sm:$0xff] }
 0x32b   :  { %2116 = vmatprep.subr.bf16.mxu1 %v1583_v23  ;;  %v1612_v23 = vunpack.c.h.s8.bf16 %v1500_v5  ;;  %v1617_v11 = vunpack.c.l.s8.bf16 %v1505_v10  ;;  %v1621_v18 = vunpack.c.h.s8.bf16 %v1505_v10 }
 0x32d   :  { %2035 = vmatpush1.bf16.msra.mxu0 %v1580_v13  ;;  %v1619_v13 = vunpack.c.l.s8.bf16 %v1507_v59 }
 0x32e   :  { %2117 = vmatpush1.bf16.msra.mxu1 %v1582_v14  ;;  %2045 = vmatprep.subr.bf16.mxu0 %v1585_v15  ;;  %v1506_v14 = vld [vmem:[#allocation5 + $0x950] sm:$0xff]  ;;  %v1616_v15 = vunpack.c.l.s8.bf16 %v1504_v12 }
 0x32f   :  { %2127 = vmatprep.subr.bf16.mxu1 %v1587_v19  ;;  %v1618_v16 = vunpack.c.l.s8.bf16 %v1506_v14  ;;  %v1623_v19 = vunpack.c.h.s8.bf16 %v1507_v59  ;;  %v2271_v59 = vunpack.c.l.s8.bf16 %v2263_v7 }
 0x330   :  { %2037 = vmatmul.mubr.bf16.vlgmr.msra.gmra.mrb[8].mxu0 %v1448_v27 }
 0x331   :  { %2119 = vmatmul.mubr.bf16.vlgmr.msra.gmra.mrb[8].mxu1 %v1448_v27  ;;  %2046 = vmatpush1.bf16.msra.mxu0 %v1584_v22  ;;  %v1511_v22 = vld [vmem:[#allocation5 + $0x998] sm:$0xff]  ;;  %v1622_v27 = vunpack.c.h.s8.bf16 %v1506_v14  ;;  %v2273_v14 = vunpack.c.h.s8.bf16 %v2263_v7 }
 0x332   :  { %2077 = vmatprep.mubr.bf16.mxu0 %v1451_v31  ;;  %2128 = vmatpush1.bf16.msra.mxu1 %v1586_v28  ;;  %v1625_v28 = vunpack.c.l.s8.bf16 %v1509_v21  ;;  %v1627_v30 = vunpack.c.l.s8.bf16 %v1511_v22 }
 0x333   :  { %2159 = vmatprep.mubr.bf16.mxu1 %v1451_v31  ;;  %2047 = vmatprep.subr.bf16.mxu0 %v1589_v29  ;;  %v1508_v29 = vld [vmem:[#allocation5 + $0x980] sm:$0xff]  ;;  %v1510_v31 = vld [vmem:[#allocation5 + $0x990] sm:$0xff] }
 0x334   :  { %2129 = vmatprep.subr.bf16.mxu1 %v1591_v35  ;;  %v1624_v35 = vunpack.c.l.s8.bf16 %v1508_v29  ;;  %v1626_v32 = vunpack.c.l.s8.bf16 %v1510_v31  ;;  %v1628_v17 = vunpack.c.h.s8.bf16 %v1508_v29 }
 0x335   :  { %2048 = vmatpush1.bf16.msra.mxu0 %v1588_v33  ;;  %v1629_v33 = vunpack.c.h.s8.bf16 %v1509_v21 }
 0x336   :  { %2130 = vmatpush1.bf16.msra.mxu1 %v1590_v34  ;;  %2049 = vmatprep.subr.bf16.mxu0 %v1593_v36  ;;  %v3105_v34 = vsub.s32 2, %v3057_v48  ;;  %v1631_v36 = vunpack.c.h.s8.bf16 %v1511_v22  ;;  %v2240_v22 = vld [vmem:[#allocation5 + $0xa80] sm:$0xff] }
 0x337   :  { %2131 = vmatprep.subr.bf16.mxu1 %v1595_v39  ;;  %v1515_v39 = vld [vmem:[#allocation5 + $0x9d8] sm:$0xff] }
 0x338   :  { %v1635_v47 = vunpack.c.l.s8.bf16 %v1515_v39  ;;  %v1387_v53 = vrot.slane %v3064_v57, %v3105_v34 }
 0x339   :  { %2050 = vmatpush1.bf16.msra.mxu0 %v1592_v43  ;;  %v1630_v43 = vunpack.c.h.s8.bf16 %v1510_v31 }
 0x33a   :  { %2132 = vmatpush1.bf16.msra.mxu1 %v1594_v44  ;;  %2051 = vmatprep.subr.bf16.mxu0 %v1597_v45  ;;  %v1633_v44 = vunpack.c.l.s8.bf16 %v1513_v38  ;;  %v1512_v45 = vld [vmem:[#allocation5 + $0x9c0] sm:$0xff] }
 0x33b   :  { %2133 = vmatprep.subr.bf16.mxu1 %v1599_v46  ;;  %v1335_v46 = vrot.slane %v3062_v56, %v3105_v34  ;;  %v1632_v48 = vunpack.c.l.s8.bf16 %v1512_v45  ;;  %v1636_v56 = vunpack.c.h.s8.bf16 %v1512_v45 }
 0x33d   :  { %2052 = vmatpush1.bf16.msra.mxu0 %v1596_v49  ;;  %v1634_v49 = vunpack.c.l.s8.bf16 %v1514_v25 }
 0x33e   :  { %2134 = vmatpush1.bf16.msra.mxu1 %v1598_v51  ;;  %2053 = vmatprep.subr.bf16.mxu0 %v1601_v52  ;;  %v1637_v51 = vunpack.c.h.s8.bf16 %v1513_v38  ;;  %v1366_v52 = vmul.f32 %v1335_v46, %v3045_v6 }
 0x33f   :  { %2135 = vmatprep.subr.bf16.mxu1 %v1603_v54  ;;  %v1639_v54 = vunpack.c.h.s8.bf16 %v1515_v39  ;;  %v2242_v39 = vld [vmem:[#allocation5 + $0xac0] sm:$0xff] }
 0x340   :  { %v1418_v63 = vadd.f32 %v1387_v53, %v1366_v52  ;;  %v2244_v52 = vld [vmem:[#allocation5 + $0xb00] sm:$0xff] }
 0x341   :  { %2054 = vmatpush1.bf16.msra.mxu0 %v1600_v58  ;;  %v1519_v58 = vld [vmem:[#allocation5 + $0xa18] sm:$0xff]  ;;  %v2258_v53 = vunpack.c.l.s8.bf16 %v2244_v52 }
 0x342   :  { %2136 = vmatpush1.bf16.msra.mxu1 %v1602_v60  ;;  %2055 = vmatprep.subr.bf16.mxu0 %v1605_v61  ;;  %v1638_v60 = vunpack.c.h.s8.bf16 %v1514_v25  ;;  %v1641_v61 = vunpack.c.l.s8.bf16 %v1517_v55  ;;  %v1643_v42 = vunpack.c.l.s8.bf16 %v1519_v58  ;;  %v1647_v5 = vunpack.c.h.s8.bf16 %v1519_v58  ;;  %v2268_v58 = vld [vmem:[#allocation5 + $0xb10] sm:$0xff] }
 0x343   :  { %2137 = vmatprep.subr.bf16.mxu1 %v1607_v62  ;;  %v1516_v62 = vld [vmem:[#allocation5 + $0xa00] sm:$0xff]  ;;  %vm1426_vm8 = vcmp.gt.f32.partialorder %v1418_v63, 0.0  ;;  %v2256_v25 = vunpack.c.h.s8.bf16 %v2242_v39 }
 0x344   :  { %v1640_v6 = vunpack.c.l.s8.bf16 %v1516_v62 }
 0x345   :  { %2056 = vmatpush1.bf16.msra.mxu0 %v1604_v1  ;;  %v1518_v1 = vld [vmem:[#allocation5 + $0xa10] sm:$0xff] }
 0x346   :  { %2138 = vmatpush1.bf16.msra.mxu1 %v1606_v3  ;;  %2057 = vmatprep.subr.bf16.mxu0 %v1609_v4  ;;  %v1642_v57 = vunpack.c.l.s8.bf16 %v1518_v1  ;;  %v1645_v3 = vunpack.c.h.s8.bf16 %v1517_v55  ;;  %v1434_v4 = vmul.f32 0.2, %v1418_v63 }
 0x347   :  { %2139 = vmatprep.subr.bf16.mxu1 %v1611_v20  ;;  %v2239_v20 = vld [vmem:[#allocation5 + $0xa48] sm:$0xff] }
 0x348   :  { %v1442_v10 = vsel %vm1426_vm8, %v1418_v63, %v1434_v4  ;;  %v2284_v63 = vunpack.c.h.s8.bf16 %v2268_v58 }
 0x349   :  { %2058 = vmatpush1.bf16.msra.mxu0 %v1608_v8  ;;  %v1644_v8 = vunpack.c.h.s8.bf16 %v1516_v62 }
 0x34a   :  { %2140 = vmatpush1.bf16.msra.mxu1 %v1610_v0  ;;  %2059 = vmatprep.subr.bf16.mxu0 %v1613_v9  ;;  %v1646_v0 = vunpack.c.h.s8.bf16 %v1518_v1  ;;  %v2247_v9 = vunpack.c.l.s8.bf16 %v2239_v20 }
 0x34b   :  { %2141 = vmatprep.subr.bf16.mxu1 %v1615_v24  ;;  %v2238_v24 = vld [vmem:[#allocation5 + $0xa40] sm:$0xff] }
 0x34d   :  { %2060 = vmatpush1.bf16.msra.mxu0 %v1612_v23  ;;  %v2262_v23 = vld [vmem:[#allocation5 + $0xa50] sm:$0xff] }
 0x34e   :  { %2142 = vmatpush1.bf16.msra.mxu1 %v1614_v50  ;;  %2061 = vmatprep.subr.bf16.mxu0 %v1617_v11  ;;  %v2246_v50 = vunpack.c.l.s8.bf16 %v2238_v24  ;;  %v1450_v11 = vpack.c.bf16 %v1442_v10, %v1442_v10  ;;  %v2270_v12 = vunpack.c.l.s8.bf16 %v2262_v23 }
 0x34f   :  { %2143 = vmatprep.subr.bf16.mxu1 %v1619_v13  ;;  %v2249_v13 = vunpack.c.h.s8.bf16 %v2239_v20 }
 0x351   :  { %2062 = vmatpush1.bf16.msra.mxu0 %v1616_v15  ;;  %v2241_v15 = vld [vmem:[#allocation5 + $0xa88] sm:$0xff] }
 0x352   :  { %2144 = vmatpush1.bf16.msra.mxu1 %v1618_v16  ;;  %2063 = vmatprep.subr.bf16.mxu0 %v1621_v18  ;;  %v2265_v16 = vld [vmem:[#allocation5 + $0xa98] sm:$0xff]  ;;  %v2248_v18 = vunpack.c.h.s8.bf16 %v2238_v24  ;;  %v2251_v21 = vunpack.c.l.s8.bf16 %v2241_v15 }
 0x353   :  { %2145 = vmatprep.subr.bf16.mxu1 %v1623_v19  ;;  %v2272_v19 = vunpack.c.h.s8.bf16 %v2262_v23  ;;  %v2277_v31 = vunpack.c.h.s8.bf16 %v2265_v16 }
 0x355   :  { %2064 = vmatpush1.bf16.msra.mxu0 %v1620_v26  ;;  %v2275_v26 = vunpack.c.l.s8.bf16 %v2265_v16 }
 0x356   :  { %2146 = vmatpush1.bf16.msra.mxu1 %v1622_v27  ;;  %2065 = vmatprep.subr.bf16.mxu0 %v1625_v28  ;;  %v2264_v27 = vld [vmem:[#allocation5 + $0xa90] sm:$0xff]  ;;  %v2250_v28 = vunpack.c.l.s8.bf16 %v2240_v22 }
 0x357   :  { %2147 = vmatprep.subr.bf16.mxu1 %v1627_v30  ;;  %v2274_v29 = vunpack.c.l.s8.bf16 %v2264_v27  ;;  %v2253_v30 = vunpack.c.h.s8.bf16 %v2241_v15 }
 0x359   :  { %2066 = vmatpush1.bf16.msra.mxu0 %v1624_v35  ;;  %v2243_v35 = vld [vmem:[#allocation5 + $0xac8] sm:$0xff] }
 0x35a   :  { %2148 = vmatpush1.bf16.msra.mxu1 %v1626_v32  ;;  %2067 = vmatprep.subr.bf16.mxu0 %v1629_v33  ;;  %v2267_v32 = vld [vmem:[#allocation5 + $0xad8] sm:$0xff]  ;;  %v2252_v33 = vunpack.c.h.s8.bf16 %v2240_v22  ;;  %v2255_v38 = vunpack.c.l.s8.bf16 %v2243_v35  ;;  %v2257_v46 = vunpack.c.h.s8.bf16 %v2243_v35 }
 0x35b   :  { %2149 = vmatprep.subr.bf16.mxu1 %v1631_v36  ;;  %v2276_v36 = vunpack.c.h.s8.bf16 %v2264_v27 }
 0x35d   :  { %2068 = vmatpush1.bf16.msra.mxu0 %v1628_v17  ;;  %v2279_v17 = vunpack.c.l.s8.bf16 %v2267_v32 }
 0x35e   :  { %2150 = vmatpush1.bf16.msra.mxu1 %v1630_v43  ;;  %2069 = vmatprep.subr.bf16.mxu0 %v1633_v44  ;;  %v2266_v43 = vld [vmem:[#allocation5 + $0xad0] sm:$0xff]  ;;  %v2254_v44 = vunpack.c.l.s8.bf16 %v2242_v39  ;;  %v2373_v39 = vld [vmem:[#allocation5 + $0xae8] sm:$0xff] }
 0x35f   :  { %2151 = vmatprep.subr.bf16.mxu1 %v1635_v47  ;;  %v2278_v45 = vunpack.c.l.s8.bf16 %v2266_v43  ;;  %v2281_v47 = vunpack.c.h.s8.bf16 %v2267_v32 }
 0x361   :  { %2070 = vmatpush1.bf16.msra.mxu0 %v1632_v48  ;;  %v2280_v48 = vunpack.c.h.s8.bf16 %v2266_v43  ;;  %v2385_v43 = vunpack.c.l.s8.bf16 %v2373_v39 }
 0x362   :  { %2152 = vmatpush1.bf16.msra.mxu1 %v1634_v49  ;;  %2071 = vmatprep.subr.bf16.mxu0 %v1637_v51  ;;  %v2245_v49 = vld [vmem:[#allocation5 + $0xb08] sm:$0xff] }
 0x363   :  { %2153 = vmatprep.subr.bf16.mxu1 %v1639_v54  ;;  %v2259_v51 = vunpack.c.l.s8.bf16 %v2245_v49  ;;  %v2269_v54 = vld [vmem:[#allocation5 + $0xb18] sm:$0xff] }
 0x364   :  { %v2283_v55 = vunpack.c.l.s8.bf16 %v2269_v54  ;;  %v2285_v62 = vunpack.c.h.s8.bf16 %v2269_v54 }
 0x365   :  { %2072 = vmatpush1.bf16.msra.mxu0 %v1636_v56  ;;  %v2282_v56 = vunpack.c.l.s8.bf16 %v2268_v58 }
 0x366   :  { %2154 = vmatpush1.bf16.msra.mxu1 %v1638_v60  ;;  %2073 = vmatprep.subr.bf16.mxu0 %v1641_v61  ;;  %v2261_v60 = vunpack.c.h.s8.bf16 %v2245_v49  ;;  %v2260_v61 = vunpack.c.h.s8.bf16 %v2244_v52  ;;  %v2375_v49 = vld [vmem:[#allocation5 + $0xb28] sm:$0xff] }
 0x367   :  { %2155 = vmatprep.subr.bf16.mxu1 %v1643_v42  ;;  %v2369_v42 = vld [vmem:[#allocation5 + $0xa68] sm:$0xff]  ;;  %v2389_v52 = vunpack.c.l.s8.bf16 %v2375_v49  ;;  %v2391_v58 = vunpack.c.h.s8.bf16 %v2375_v49 }
 0x368   :  { %v2377_v1 = vunpack.c.l.s8.bf16 %v2369_v42 }
 0x369   :  { %2074 = vmatpush1.bf16.msra.mxu0 %v1640_v6  ;;  %v2169_v6 = vld [vmem:[#allocation7 + $0x3] ss:$8 sm:$0xf] }
 0x36a   :  { %2156 = vmatpush1.bf16.msra.mxu1 %v1642_v57  ;;  %2075 = vmatprep.subr.bf16.mxu0 %v1645_v3  ;;  %v3114_v57 = vld [vmem:[#allocation7 + $0x2] ss:$8 sm:$0xf]  ;;  %v2174_v3 = vrot.slane %v2169_v6, %v3089_v37  ;;  %v2178_v4 = vrot.slane %v2169_v6, %v3078_v41  ;;  %v2186_v20 = vrot.slane %v2169_v6, %v3092_v40 }
 0x36b   :  { %2157 = vmatprep.subr.bf16.mxu1 %v1647_v5  ;;  %v2201_v5 = vrot.slane %v3114_v57, %v3089_v37  ;;  %v2213_v10 = vrot.slane %v3114_v57, %v3092_v40 }
 0x36d   :  { %2076 = vmatpush1.bf16.msra.mxu0 %v1644_v8  ;;  %v2205_v8 = vrot.slane %v3114_v57, %v3078_v41 }
 0x36e   :  { %2158 = vmatpush1.bf16.msra.mxu1 %v1646_v0  ;;  %2327 = vmatprep.subr.bf16.mxu0 %v2247_v9 }
 0x36f   :  { %2286 = vmatprep.subr.bf16.mxu1 %v2271_v59 }
 0x370   :  { %2078 = vmatmul.mubr.bf16.vlgmr.msra.gmra.mrb[8].mxu0 %v1450_v11 }
 0x371   :  { %2160 = vmatmul.mubr.bf16.vlgmr.msra.gmra.mrb[8].mxu1 %v1450_v11  ;;  %2328 = vmatpush1.bf16.msra.mxu0 %v2246_v50 }
 0x372   :  { %2287 = vmatpush1.bf16.msra.mxu1 %v2270_v12  ;;  %2329 = vmatprep.subr.bf16.mxu0 %v2249_v13 }
 0x373   :  { %2288 = vmatprep.subr.bf16.mxu1 %v2273_v14  ;;  %2359 = vmatprep.mubr.bf16.mxu0 %v2933_v2 }
 0x374   :  { %2318 = vmatprep.mubr.bf16.mxu1 %v2933_v2 }
 0x375   :  { %2330 = vmatpush1.bf16.msra.mxu0 %v2248_v18  ;;  %v2368_v18 = vld [vmem:[#allocation5 + $0xa60] sm:$0xff] }
 0x376   :  { %2289 = vmatpush1.bf16.msra.mxu1 %v2272_v19  ;;  %2331 = vmatprep.subr.bf16.mxu0 %v2251_v21  ;;  %v2376_v27 = vunpack.c.l.s8.bf16 %v2368_v18  ;;  %v2378_v35 = vunpack.c.h.s8.bf16 %v2368_v18 }
 0x377   :  { %2290 = vmatprep.subr.bf16.mxu1 %v2275_v26 }
 0x379   :  { %2332 = vmatpush1.bf16.msra.mxu0 %v2250_v28 }
 0x37a   :  { %2291 = vmatpush1.bf16.msra.mxu1 %v2274_v29  ;;  %2333 = vmatprep.subr.bf16.mxu0 %v2253_v30  ;;  %v2379_v29 = vunpack.c.h.s8.bf16 %v2369_v42 }
 0x37b   :  { %2292 = vmatprep.subr.bf16.mxu1 %v2277_v31  ;;  %v2371_v31 = vld [vmem:[#allocation5 + $0xaa8] sm:$0xff] }
 0x37c   :  { %v2381_v32 = vunpack.c.l.s8.bf16 %v2371_v31 }
 0x37d   :  { %2334 = vmatpush1.bf16.msra.mxu0 %v2252_v33  ;;  %v2370_v33 = vld [vmem:[#allocation5 + $0xaa0] sm:$0xff] }
 0x37e   :  { %2293 = vmatpush1.bf16.msra.mxu1 %v2276_v36  ;;  %2335 = vmatprep.subr.bf16.mxu0 %v2255_v38  ;;  %v2380_v36 = vunpack.c.l.s8.bf16 %v2370_v33  ;;  %v2383_v38 = vunpack.c.h.s8.bf16 %v2371_v31 }
 0x37f   :  { %2294 = vmatprep.subr.bf16.mxu1 %v2279_v17  ;;  %v2382_v17 = vunpack.c.h.s8.bf16 %v2370_v33 }
 0x381   :  { %2336 = vmatpush1.bf16.msra.mxu0 %v2254_v44  ;;  %v2372_v44 = vld [vmem:[#allocation5 + $0xae0] sm:$0xff] }
 0x382   :  { %2295 = vmatpush1.bf16.msra.mxu1 %v2278_v45  ;;  %2337 = vmatprep.subr.bf16.mxu0 %v2257_v46  ;;  %v2182_v45 = vrot.slane %v2169_v6, %v3105_v34  ;;  %v2384_v46 = vunpack.c.l.s8.bf16 %v2372_v44 }
 0x383   :  { %2296 = vmatprep.subr.bf16.mxu1 %v2281_v47  ;;  %v2387_v47 = vunpack.c.h.s8.bf16 %v2373_v39 }
 0x385   :  { %2338 = vmatpush1.bf16.msra.mxu0 %v2256_v25 }
 0x386   :  { %2297 = vmatpush1.bf16.msra.mxu1 %v2280_v48  ;;  %2339 = vmatprep.subr.bf16.mxu0 %v2259_v51  ;;  %v2209_v48 = vrot.slane %v3114_v57, %v3105_v34  ;;  %v2386_v51 = vunpack.c.h.s8.bf16 %v2372_v44  ;;  %v2438_v57 = vld [vmem:[#allocation5 + $0xab8] sm:$0xff]  ;;  %v2518_v44 = vld [vmem:[#allocation7 + $0x4] ss:$8 sm:$0x3] }
 0x387   :  { %2298 = vmatprep.subr.bf16.mxu1 %v2283_v55  ;;  %v2527_v49 = vrot.slane %v2518_v44, %v3078_v41 }
 0x389   :  { %2340 = vmatpush1.bf16.msra.mxu0 %v2258_v53  ;;  %v2374_v53 = vld [vmem:[#allocation5 + $0xb20] sm:$0xff] }
 0x38a   :  { %2299 = vmatpush1.bf16.msra.mxu1 %v2282_v56  ;;  %2341 = vmatprep.subr.bf16.mxu0 %v2261_v60  ;;  %v2388_v55 = vunpack.c.l.s8.bf16 %v2374_v53  ;;  %v2436_v60 = vld [vmem:[#allocation5 + $0xa78] sm:$0xff] }
 0x38b   :  { %2300 = vmatprep.subr.bf16.mxu1 %v2285_v62  ;;  %v2444_v62 = vunpack.c.l.s8.bf16 %v2436_v60  ;;  %v2446_v6 = vunpack.c.h.s8.bf16 %v2436_v60 }
 0x38d   :  { %2342 = vmatpush1.bf16.msra.mxu0 %v2260_v61  ;;  %v2390_v61 = vunpack.c.h.s8.bf16 %v2374_v53 }
 0x38e   :  { %2301 = vmatpush1.bf16.msra.mxu1 %v2284_v63  ;;  %2392 = vmatprep.subr.bf16.mxu0 %v2377_v1  ;;  %v2435_v63 = vld [vmem:[#allocation5 + $0xa70] sm:$0xff] }
 0x38f   :  { %v2443_v42 = vunpack.c.l.s8.bf16 %v2435_v63 }
 0x443   :  { %v2079_v7 = vpop.f32.mrb[8].mxu0 }
 0x444   :  { %v2191_v0 = vmul.f32 %v2174_v3, %v2079_v7  ;;  %v2161_v9 = vpop.f32.mrb[8].mxu1  ;;  %v2081_v24 = vpop.f32.mrb[9].mxu0  ;;  %v2445_v3 = vunpack.c.h.s8.bf16 %v2435_v63  ;;  %v2450_v7 = vunpack.c.h.s8.bf16 %v2438_v57  ;;  %v2541_v63 = vld [vmem:[#allocation5 + $0xb80] sm:$0xff] }
 0x445   :  { %v2192_v59 = vmul.f32 %v2178_v4, %v2081_v24  ;;  %v2163_v23 = vpop.f32.mrb[9].mxu1  ;;  %v2083_v50 = vpop.f32.mrb[10].mxu0  ;;  %v2193_v25 = vmul.f32 %v2182_v45, %v2161_v9  ;;  %v2448_v4 = vunpack.c.l.s8.bf16 %v2438_v57  ;;  %v2439_v24 = vld [vmem:[#allocation5 + $0xaf0] sm:$0xff] }
 0x446   :  { %v2218_v11 = vadd.f32 %v2201_v5, %v2191_v0  ;;  %v2194_v12 = vmul.f32 %v2186_v20, %v2163_v23  ;;  %v2165_v13 = vpop.f32.mrb[10].mxu1  ;;  %v2084_v14 = vpop.f32.mrb[11].mxu0  ;;  %v2437_v5 = vld [vmem:[#allocation5 + $0xab0] sm:$0xff]  ;;  %v2442_v23 = vld [vmem:[#allocation5 + $0xb38] sm:$0xff] }
 0x447   :  { %v2219_v15 = vadd.f32 %v2205_v8, %v2192_v59  ;;  %v2166_v16 = vpop.f32.mrb[11].mxu1  ;;  %v2220_v54 = vadd.f32 %v2209_v48, %v2193_v25  ;;  %v2447_v20 = vunpack.c.l.s8.bf16 %v2437_v5  ;;  %v2440_v8 = vld [vmem:[#allocation5 + $0xaf8] sm:$0xff]  ;;  %v2449_v0 = vunpack.c.h.s8.bf16 %v2437_v5  ;;  %v2543_v5 = vld [vmem:[#allocation5 + $0xc00] sm:$0xff] }
 0x448   :  { %vm2222_vm9 = vcmp.gt.f32.partialorder %v2218_v11, 0.0  ;;  %v2226_v19 = vmul.f32 0.2, %v2218_v11  ;;  %v3125_v21 = vadd.f32 %v2213_v10, %v2194_v12  ;;  %v2452_v9 = vunpack.c.l.s8.bf16 %v2440_v8 }
 0x449   :  { %vm2223_vm10 = vcmp.gt.f32.partialorder %v2219_v15, 0.0  ;;  %v2227_v22 = vmul.f32 0.2, %v2219_v15  ;;  %v2228_v56 = vmul.f32 0.2, %v2220_v54  ;;  %vm2224_vm11 = vcmp.gt.f32.partialorder %v2220_v54, 0.0 }
 0x44a   :  { %v2230_v26 = vsel %vm2222_vm9, %v2218_v11, %v2226_v19  ;;  %v2451_v10 = vunpack.c.l.s8.bf16 %v2439_v24  ;;  %v2454_v59 = vunpack.c.h.s8.bf16 %v2440_v8  ;;  %v2456_v50 = vunpack.c.l.s8.bf16 %v2442_v23  ;;  %v2441_v11 = vld [vmem:[#allocation5 + $0xb30] sm:$0xff]  ;;  %v2552_v19 = vld [vmem:[#allocation5 + $0xb48] sm:$0xff] }
 0x44b   :  { %v2234_v28 = vpack.c.bf16 %v2230_v26, %v2230_v26  ;;  %v2231_v40 = vsel %vm2223_vm10, %v2219_v15, %v2227_v22  ;;  %v2232_v34 = vsel %vm2224_vm11, %v2220_v54, %v2228_v56  ;;  %v2455_v12 = vunpack.c.l.s8.bf16 %v2441_v11 }
 0x44c   :  { %v2235_v30 = vpack.c.bf16 %v2231_v40, %v2231_v40  ;;  %v2236_v1 = vpack.c.bf16 %v2232_v34, %v2232_v34  ;;  %v2458_v13 = vunpack.c.h.s8.bf16 %v2442_v23  ;;  %v2229_v14 = vmul.f32 0.2, %v3125_v21 }
 0x44d   :  { %2360 = vmatmul.mubr.bf16.vlgmr.msra.gmra.mrb[12].mxu0 %v2234_v28  ;;  %vm2225_vm12 = vcmp.gt.f32.partialorder %v3125_v21, 0.0  ;;  %v2457_v15 = vunpack.c.h.s8.bf16 %v2441_v11  ;;  %v2934_v22 = vmov 0.0   ;;  %v2556_v26 = vunpack.c.l.s8.bf16 %v2552_v19  ;;  %v2553_v28 = vld [vmem:[#allocation5 + $0xb88] sm:$0xff] }
 0x44e   :  { %2393 = vmatpush1.bf16.msra.mxu0 %v2376_v27  ;;  %2319 = vmatmul.mubr.bf16.vlgmr.msra.gmra.mrb[12].mxu1 %v2235_v30  ;;  %v2233_v16 = vsel %vm2225_vm12, %v3125_v21, %v2229_v14  ;;  %v2557_v27 = vunpack.c.h.s8.bf16 %v2552_v19  ;;  %v2558_v40 = vunpack.c.l.s8.bf16 %v2553_v28  ;;  %v2554_v21 = vld [vmem:[#allocation5 + $0xbc8] sm:$0xff]  ;;  %v2547_v34 = vunpack.c.h.s8.bf16 %v2541_v63 }
 0x44f   :  { %2394 = vmatprep.subr.bf16.mxu0 %v2379_v29  ;;  %2424 = vmatprep.mubr.bf16.mxu0 %v2933_v2  ;;  %v2237_v18 = vpack.c.bf16 %v2233_v16, %v2233_v16  ;;  %v2559_v29 = vunpack.c.h.s8.bf16 %v2553_v28  ;;  %v2560_v30 = vunpack.c.l.s8.bf16 %v2554_v21  ;;  %v2561_v31 = vunpack.c.h.s8.bf16 %v2554_v21 }
 0x450   :  { %2695 = vmatprep.subr.bf16.mxu1 %v2934_v22  ;;  %2711 = vmatprep.mubr.msk.bf16.mxu1 %vm2935_vm13, %v2934_v22 }
 0x451   :  { %2696 = vmatpush3.bf16.msra.mxu1 %v2556_v26 }
 0x452   :  { %2395 = vmatpush1.bf16.msra.mxu0 %v2378_v35  ;;  %2697 = vmatprep.subr.bf16.mxu1 %v2934_v22  ;;  %v2555_v35 = vld [vmem:[#allocation5 + $0xc08] sm:$0xff] }
 0x453   :  { %2396 = vmatprep.subr.bf16.mxu0 %v2381_v32  ;;  %v2562_v32 = vunpack.c.l.s8.bf16 %v2555_v35  ;;  %v2563_v33 = vunpack.c.h.s8.bf16 %v2555_v35 }
 0x455   :  { %2698 = vmatpush3.bf16.msra.mxu1 %v2557_v27 }
 0x456   :  { %2397 = vmatpush1.bf16.msra.mxu0 %v2380_v36  ;;  %2699 = vmatprep.subr.bf16.mxu1 %v2934_v22 }
 0x457   :  { %2398 = vmatprep.subr.bf16.mxu0 %v2383_v38 }
 0x459   :  { %2700 = vmatpush3.bf16.msra.mxu1 %v2558_v40 }
 0x45a   :  { %2399 = vmatpush1.bf16.msra.mxu0 %v2382_v17  ;;  %2701 = vmatprep.subr.bf16.mxu1 %v2934_v22 }
 0x45b   :  { %2400 = vmatprep.subr.bf16.mxu0 %v2385_v43  ;;  %v2503_v43 = vld [vmem:[#allocation7 + $0x5] ss:$8 sm:$0x3] }
 0x45d   :  { %2702 = vmatpush3.bf16.msra.mxu1 %v2559_v29 }
 0x45e   :  { %2401 = vmatpush1.bf16.msra.mxu0 %v2384_v46  ;;  %2703 = vmatprep.subr.bf16.mxu1 %v2934_v22  ;;  %v2512_v46 = vrot.slane %v2503_v43, %v3078_v41  ;;  %v2546_v41 = vunpack.c.l.s8.bf16 %v2541_v63 }
 0x45f   :  { %2402 = vmatprep.subr.bf16.mxu0 %v2387_v47 }
 0x461   :  { %2704 = vmatpush3.bf16.msra.mxu1 %v2560_v30 }
 0x462   :  { %2403 = vmatpush1.bf16.msra.mxu0 %v2386_v51  ;;  %2705 = vmatprep.subr.bf16.mxu1 %v2934_v22 }
 0x463   :  { %2404 = vmatprep.subr.bf16.mxu0 %v2389_v52 }
 0x465   :  { %2706 = vmatpush3.bf16.msra.mxu1 %v2561_v31 }
 0x466   :  { %2405 = vmatpush1.bf16.msra.mxu0 %v2388_v55  ;;  %2707 = vmatprep.subr.bf16.mxu1 %v2934_v22  ;;  %v2540_v55 = vld [vmem:[#allocation5 + $0xb40] sm:$0xff] }
 0x467   :  { %2406 = vmatprep.subr.bf16.mxu0 %v2391_v58  ;;  %v2544_v60 = vunpack.c.l.s8.bf16 %v2540_v55 }
 0x469   :  { %2708 = vmatpush3.bf16.msra.mxu1 %v2562_v32 }
 0x46a   :  { %2407 = vmatpush1.bf16.msra.mxu0 %v2390_v61  ;;  %2709 = vmatprep.subr.bf16.mxu1 %v2934_v22 }
 0x46b   :  { %2459 = vmatprep.subr.bf16.mxu0 %v2444_v62  ;;  %v2545_v62 = vunpack.c.h.s8.bf16 %v2540_v55 }
 0x46d   :  { %2425 = vmatmul.mubr.bf16.vlgmr.msra.gmra.mrb[12].mxu0 %v2236_v1  ;;  %2710 = vmatpush3.bf16.msra.mxu1 %v2563_v33  ;;  %v2508_v1 = vrot.slane %v2503_v43, %v3089_v37 }
 0x46e   :  { %2460 = vmatpush1.bf16.msra.mxu0 %v2443_v42  ;;  %2491 = vmatprep.mubr.bf16.mxu0 %v2933_v2  ;;  %v2453_v2 = vunpack.c.h.s8.bf16 %v2439_v24  ;;  %v2542_v42 = vld [vmem:[#allocation5 + $0xbc0] sm:$0xff] }
 0x46f   :  { %2461 = vmatprep.subr.bf16.mxu0 %v2446_v6  ;;  %2715 = vmatprep.subr.bf16.mxu1 %v2934_v22  ;;  %v2548_v6 = vunpack.c.l.s8.bf16 %v2542_v42 }
 0x472   :  { %2462 = vmatpush1.bf16.msra.mxu0 %v2445_v3  ;;  %v2523_v3 = vrot.slane %v2518_v44, %v3089_v37  ;;  %v2644_v37 = vld [vmem:[#allocation7 + $0x7] ss:$0 sm:$0xff] }
 0x473   :  { %2463 = vmatprep.subr.bf16.mxu0 %v2448_v4  ;;  %v2549_v4 = vunpack.c.h.s8.bf16 %v2542_v42 }
 0x476   :  { %2464 = vmatpush1.bf16.msra.mxu0 %v2447_v20 }
 0x477   :  { %2465 = vmatprep.subr.bf16.mxu0 %v2450_v7  ;;  %v2550_v7 = vunpack.c.l.s8.bf16 %v2543_v5 }
 0x47a   :  { %2466 = vmatpush1.bf16.msra.mxu0 %v2449_v0  ;;  %v2551_v0 = vunpack.c.h.s8.bf16 %v2543_v5 }
 0x47b   :  { %2467 = vmatprep.subr.bf16.mxu0 %v2452_v9 }
 0x47e   :  { %2468 = vmatpush1.bf16.msra.mxu0 %v2451_v10 }
 0x47f   :  { %2469 = vmatprep.subr.bf16.mxu0 %v2454_v59  ;;  %v2646_v59 = vld [vmem:[#allocation7 + $0x6] ss:$0 sm:$0xff] }
 0x482   :  { %2470 = vmatpush1.bf16.msra.mxu0 %v2453_v2 }
 0x483   :  { %2471 = vmatprep.subr.bf16.mxu0 %v2456_v50 }
 0x486   :  { %2472 = vmatpush1.bf16.msra.mxu0 %v2455_v12 }
 0x487   :  { %2473 = vmatprep.subr.bf16.mxu0 %v2458_v13 }
 0x48a   :  { %2474 = vmatpush1.bf16.msra.mxu0 %v2457_v15 }
 0x48d   :  { %2492 = vmatmul.mubr.bf16.vlgmr.msra.gmra.mrb[12].mxu0 %v2237_v18 }
 0x521   :  { %v2320_v36 = vpop.f32.mrb[12].mxu1 }
 0x522   :  { %v2322_v38 = vpop.f32.mrb[13].mxu1 }
 0x523   :  { %v2324_v39 = vpop.f32.mrb[14].mxu1 }
 0x524   :  { %v2325_v17 = vpop.f32.mrb[15].mxu1 }
 0x560   :  { %v2493_v45 = vpop.f32.mrb[12].mxu0 }
 0x561   :  { %v2735_v47 = vadd.f32 %v2493_v45, %v2320_v36  ;;  %v2495_v25 = vpop.f32.mrb[13].mxu0 }
 0x562   :  { %v2736_v48 = vadd.f32 %v2495_v25, %v2322_v38  ;;  %v2497_v51 = vpop.f32.mrb[14].mxu0 }
 0x563   :  { %v2498_v52 = vpop.f32.mrb[15].mxu0  ;;  %v2515_v57 = vmul.f32 %v2735_v47, %v2508_v1 }
 0x564   :  { %v2516_v53 = vmul.f32 %v2736_v48, %v2512_v46 }
 0x565   :  { %v2530_v20 = vadd.f32 %v2523_v3, %v2515_v57 }
 0x566   :  { %v2531_v54 = vadd.f32 %v2527_v49, %v2516_v53 }
 0x567   :  { %v2534_v8 = vmul.f32 0.2, %v2530_v20  ;;  %vm2532_vm15 = vcmp.gt.f32.partialorder %v2530_v20, 0.0 }
 0x568   :  { %vm2533_vm14 = vcmp.gt.f32.partialorder %v2531_v54, 0.0  ;;  %v2535_v58 = vmul.f32 0.2, %v2531_v54 }
 0x569   :  { %v2536_v9 = vsel %vm2532_vm15, %v2530_v20, %v2534_v8 }
 0x56a   :  { %v2537_v56 = vsel %vm2533_vm14, %v2531_v54, %v2535_v58  ;;  %v2538_v24 = vpack.c.bf16 %v2536_v9, %v2536_v9 }
 0x56b   :  { %v2539_v61 = vpack.c.bf16 %v2537_v56, %v2537_v56 }
 0x56d   :  { %2712 = vmatmul.mubr.bf16.vlgmr.msra.gmra.mrb[16].mxu1 %v2539_v61 }
 0x56e   :  { %2716 = vmatpush3.bf16.msra.mxu1 %v2544_v60  ;;  %2731 = vmatprep.mubr.msk.bf16.mxu1 %vm2935_vm13, %v2934_v22 }
 0x56f   :  { %2717 = vmatprep.subr.bf16.mxu1 %v2934_v22 }
 0x572   :  { %2718 = vmatpush3.bf16.msra.mxu1 %v2545_v62 }
 0x573   :  { %2719 = vmatprep.subr.bf16.mxu1 %v2934_v22 }
 0x576   :  { %2720 = vmatpush3.bf16.msra.mxu1 %v2546_v41 }
 0x577   :  { %2721 = vmatprep.subr.bf16.mxu1 %v2934_v22 }
 0x57a   :  { %2722 = vmatpush3.bf16.msra.mxu1 %v2547_v34 }
 0x57b   :  { %2723 = vmatprep.subr.bf16.mxu1 %v2934_v22 }
 0x57e   :  { %2724 = vmatpush3.bf16.msra.mxu1 %v2548_v6 }
 0x57f   :  { %2725 = vmatprep.subr.bf16.mxu1 %v2934_v22 }
 0x582   :  { %2726 = vmatpush3.bf16.msra.mxu1 %v2549_v4 }
 0x583   :  { %2727 = vmatprep.subr.bf16.mxu1 %v2934_v22 }
 0x586   :  { %2728 = vmatpush3.bf16.msra.mxu1 %v2550_v7 }
 0x587   :  { %2729 = vmatprep.subr.bf16.mxu1 %v2934_v22 }
 0x58a   :  { %2730 = vmatpush3.bf16.msra.mxu1 %v2551_v0 }
 0x58d   :  { %2732 = vmatmul.mubr.bf16.vlgmr.msra.gmra.mrb[16].mxu1 %v2538_v24 }
 0x660   :  { %v2638_v10 = vpop.f32.mrb[16].mxu1 }
 0x661   :  { %v2645_v23 = vmul.f32 %v2644_v37, %v2638_v10  ;;  %v2733_v2 = vpop.f32.mrb[17].mxu1 }
 0x662   :  { %v2641_v50 = vpop.f32.mrb[18].mxu1 }
 0x663   :  { %v2647_v11 = vadd.f32 %v2646_v59, %v2645_v23  ;;  %v2734_v12 = vpop.f32.mrb[19].mxu1 }
 0x665   :  { %v2676_v13 = vmul.f32 -1.442695, %v2647_v11 }
 0x667   :  { %2830 = vpow2.f32 %v2676_v13 }
 0x671   :  { %v2831_v14 = vpop.eup %2830 }
 0x672   :  { %v2651_v15 = vadd.f32 1.0, %v2831_v14 }
 0x674   :  { %2832 = vrcp.f32 %v2651_v15 }
 0x67e   :  { %v2833_v16 = vpop.eup %2832 }
 0x67f   :  { %v2654_v18 = vpack.c.bf16 %v2833_v16, %v2833_v16 }
 0x681   :  { %2655 = vst [vmem:[#allocation8] sm:$0xf] %v2654_v18 }
 0x682   :  { %2911 = shalt.err (!%p2908_p0)
}
 0x683   :  { %s2912_s25 = scalar_lea.hbm %s3174_s3, 64 }
 0x684   :  { %p2913_p1 = scmp.ne.s32.totalorder %s3174_s3, %s2912_s25  ;;  %p2916_p2 = scmp.lt.u32.totalorder %s2912_s25, %s3174_s3 }
 0x686   :  { %p2918_p3 = pnand %p2916_p2, %p2913_p1 }
 0x688   :  { %2921 = shalt.err (!%p2918_p3)
}
 0x689   :  { %2665 = dma.vmem_to_hbm [thread:$0]  %s2663_s21, 64, %s3174_s3, [#allocation4]  }
 0x68a   :  { %2926 = dma.done.wait [#allocation4], 64  }
 0x68b   :  { %2927 = vsyncadd [#allocation4], 4294967232 }
 0x68c   :  { %2669 = vsyncpa [#allocation3], 1 }
 0x68d   :  { %2670 = vsyncpa [#allocation6], 1 }
 0x68e   :  { %2671 = vsyncpa [#allocation4], 1 }

</bundles_post_ra>
